<compile_context>
chip_gen: v7x
topology: tpu7x:2x2x1
jax: 0.10.0
libtpu: 0.0.40
codegen_flags: <defaults>
</compile_context>

<pallas_src>
import functools

import jax
import jax.numpy as jnp
from jax import lax
from jax.experimental import pallas as pl
from jax.experimental.pallas import tpu as pltpu


def _round_up(x, m):
    return ((x + m - 1) // m) * m


def _cdiv(a, b):
    return -(-a // b)


# ----------------------------------------------------------------------------
# Pallas kernel: fused  Linear(1024->Hp) -> ReLU -> Linear(Hp->Rp)
# ----------------------------------------------------------------------------
def encoding_head_kernel(emb_ref, w1_ref, b1_ref, w2_ref, b2_ref, out_ref):
    # emb_ref: (tm, C)   bf16   rows = batch entries, lanes = channels
    # w1_ref : (C, Hp)   bf16   b1_ref: (1, Hp) f32
    # w2_ref : (Hp, Rp)  bf16   b2_ref: (1, Rp) f32
    # out_ref: (tm, Rp)  f32    (Rp is a multiple of 128 -> lane-dense store)
    h = jnp.dot(emb_ref[...], w1_ref[...], preferred_element_type=jnp.float32)
    h = jnp.maximum(h + b1_ref[...], 0.0)               # bias + ReLU in f32
    o = jnp.dot(h.astype(w2_ref.dtype), w2_ref[...],
                preferred_element_type=jnp.float32)
    out_ref[...] = (o + b2_ref[...]).astype(out_ref.dtype)


def _resident_spec(shape):
    """BlockSpec for a block whose index never changes across the grid.

    Single-buffered (pl.Buffered(1)): the block is fetched once and reused, so
    the second pipeline buffer is pure VMEM waste.  Falls back to the default
    spec if this JAX version's BlockSpec has no pipeline_mode kwarg.
    """
    index_map = lambda i: (0,) * len(shape)
    try:
        return pl.BlockSpec(shape, index_map, pipeline_mode=pl.Buffered(1))
    except TypeError:                                   # older BlockSpec signature
        return pl.BlockSpec(shape, index_map)


def _tpu_head_tiling_policy():
    """(tm_cap, min_tiles) per TPU generation."""
    kind = ""
    try:
        kind = jax.devices()[0].device_kind.lower()
    except Exception:
        pass
    if "v5" in kind:
        # v5e: 197 TF/s -> a 256-row step is already ~3.4 us; bigger tiles only
        # grow the f32 hidden scratch / spill pressure.
        return 256, 1
    if "7" in kind:
        # v7x: two TensorCores share the (parallel) grid -> keep >= 2 steps.
        return 512, 2
    # v6e (and unknown/newer): big tiles amortize the ~0.35 us grid-step cost.
    return 1024, 1


def _choose_row_tiling(M, tm_cap, min_tiles):
    """Tile-count-first row tiling: tm multiple of 16, minimal pad waste."""
    if M <= 32:
        tm = _round_up(max(M, 1), 16)     # tiny batch: one tile, whole M
        return tm, tm
    n_tiles = max(min_tiles, _cdiv(M, tm_cap))
    tm = _round_up(_cdiv(M, n_tiles), 16)
    return tm, tm * n_tiles


def encoding_fmri_pallas(emb, w1p, b1p, w2p, b2p, nroi):
    """emb: (M, 1024) pooled embeddings (any float dtype) -> (M, nroi) f32."""
    M, C = emb.shape
    Hp = w1p.shape[1]
    Rp = w2p.shape[1]

    tm_cap, min_tiles = _tpu_head_tiling_policy()
    tm_eff, Mp = _choose_row_tiling(M, tm_cap, min_tiles)

    # bf16 operands feed the MXU at full rate and halve DMA/VMEM bytes.
    emb_bf = emb.astype(jnp.bfloat16)
    if Mp != M:                           # guard the pad: no copy when aligned
        emb_bf = jnp.pad(emb_bf, ((0, Mp - M), (0, 0)))
    w1_bf = w1p.astype(jnp.bfloat16)
    w2_bf = w2p.astype(jnp.bfloat16)
    b1_2d = b1p.reshape(1, Hp).astype(jnp.float32)
    b2_2d = b2p.reshape(1, Rp).astype(jnp.float32)

    out = pl.pallas_call(
        encoding_head_kernel,
        out_shape=jax.ShapeDtypeStruct((Mp, Rp), jnp.float32),
        grid_spec=pltpu.PrefetchScalarGridSpec(
            num_scalar_prefetch=0,
            grid=(Mp // tm_eff,),
            in_specs=[
                pl.BlockSpec((tm_eff, C), lambda i: (i, 0)),   # embedding rows
                _resident_spec((C, Hp)),                       # W1 (resident, 1-buf)
                _resident_spec((1, Hp)),                       # b1
                _resident_spec((Hp, Rp)),                      # W2 (resident, 1-buf)
                _resident_spec((1, Rp)),                       # b2
            ],
            out_specs=pl.BlockSpec((tm_eff, Rp), lambda i: (i, 0)),
        ),
        compiler_params=pltpu.CompilerParams(
            dimension_semantics=("parallel",),
            # Footprint <= ~15-17 MiB even at tm=1024 (emb 2x2 MiB, h f32 4 MiB
            # + bf16 copy 2 MiB, out 2x1 MiB, weights ~2.6 MiB single-buffered).
            # Explicit 32 MiB matters on v5e whose default scoped VMEM is 16 MiB.
            vmem_limit_bytes=32 << 20,
        ),
    )(emb_bf, w1_bf, b1_2d, w2_bf, b2_2d)
    return out[:M, :nroi]


# ----------------------------------------------------------------------------
# Frozen SoundNet8 backbone (plain JAX glue; bf16 channels-last convs,
# eval-mode BatchNorm folded in)
# ----------------------------------------------------------------------------
# (cin, cout, kernel, stride, pad, maxpool)
SOUNDNET_CFG = [
    (1, 16, 64, 2, 32, 8),
    (16, 32, 32, 2, 16, 8),
    (32, 64, 16, 2, 8, None),
    (64, 128, 8, 2, 4, None),
    (128, 256, 4, 2, 2, 4),
    (256, 512, 4, 2, 2, None),
    (512, 1024, 4, 2, 2, None),
]


def init_soundnet_params(key, eps=1e-5):
    # Conv + eval-mode BatchNorm per layer; BN scale/shift folded into the conv
    # weight/bias once at init (same math, one fewer elementwise pass).
    # Weights stored channels-last WIO (k, cin, cout) in bf16 for the MXU.
    params = []
    for i, (cin, cout, k, _s, _p, _pool) in enumerate(SOUNDNET_CFG):
        kw, kb = jax.random.split(jax.random.fold_in(key, i))
        scale = 1.0 / jnp.sqrt(float(cin * k))
        w = scale * jax.random.normal(kw, (k, cin, cout), jnp.float32)
        b = 0.01 * jax.random.normal(kb, (cout,), jnp.float32)
        gamma = jnp.ones((cout,), jnp.float32)
        beta = jnp.zeros((cout,), jnp.float32)
        mean = jnp.zeros((cout,), jnp.float32)
        var = jnp.ones((cout,), jnp.float32)
        s_bn = gamma / jnp.sqrt(var + eps)
        params.append(dict(w=(w * s_bn[None, None, :]).astype(jnp.bfloat16),
                           b=((b - mean) * s_bn + beta).astype(jnp.float32)))
    return params


def soundnet_forward(x, params):
    # x: (N, 1, L, 1) NCHW (torch layout) -> (N, T, 1024) bf16, channels last.
    # Frozen (no_grad in torch).  bf16 operands, f32 accumulation, bias+ReLU f32.
    x = jnp.transpose(jnp.squeeze(x, axis=3), (0, 2, 1))      # (N, L, 1)  NWC
    x = x.astype(jnp.bfloat16)
    for (cin, cout, k, s, p, pool), lp in zip(SOUNDNET_CFG, params):
        y = lax.conv_general_dilated(
            x, lp["w"], window_strides=(s,), padding=((p, p),),
            dimension_numbers=("NWC", "WIO", "NWC"),
            preferred_element_type=jnp.float32)
        y = jnp.maximum(y + lp["b"][None, None, :], 0.0)
        if pool is not None:
            y = lax.reduce_window(y, -jnp.inf, lax.max,
                                  (1, pool, 1), (1, pool, 1), "VALID")
        x = y.astype(jnp.bfloat16)
    return x                                                   # (N, T, 1024)


# ----------------------------------------------------------------------------
# encoding_fmri head parameters (padded once to lane-aligned widths)
# ----------------------------------------------------------------------------
def init_head_params(key, fmrihidden=1000, nroi=210):
    k1, k2, k3, k4 = jax.random.split(key, 4)
    Hp = _round_up(fmrihidden, 128)   # 1000 -> 1024
    Rp = _round_up(nroi, 128)         # 210  -> 256
    # torch Linear(1024,H).weight is (H,1024); store transposed + zero-padded.
    w1 = (1.0 / jnp.sqrt(1024.0)) * jax.random.normal(k1, (1024, fmrihidden), jnp.float32)
    b1 = 0.01 * jax.random.normal(k2, (fmrihidden,), jnp.float32)
    w2 = (1.0 / jnp.sqrt(float(fmrihidden))) * jax.random.normal(
        k3, (fmrihidden, nroi), jnp.float32)
    b2 = 0.01 * jax.random.normal(k4, (nroi,), jnp.float32)
    w1p = jnp.zeros((1024, Hp), jnp.float32).at[:, :fmrihidden].set(w1)
    b1p = jnp.zeros((Hp,), jnp.float32).at[:fmrihidden].set(b1)
    w2p = jnp.zeros((Hp, Rp), jnp.float32).at[:fmrihidden, :nroi].set(w2)
    b2p = jnp.zeros((Rp,), jnp.float32).at[:nroi].set(b2)
    return dict(w1p=w1p, b1p=b1p, w2p=w2p, b2p=b2p, nroi=nroi)


# ----------------------------------------------------------------------------
# Full module forward  (hrf_model=None path of SoundNetEncoding.forward)
# ----------------------------------------------------------------------------
def soundnet_encoding_forward(x, onsets, durations, soundnet_params, head_params):
    del onsets, durations            # only used by the (omitted) hrf_model path
    feat = soundnet_forward(x, soundnet_params)                # (N, T, 1024) bf16
    # AdaptiveAvgPool2d((1,1)) + view(-1,1024): mean over time, f32 accumulate.
    # TODO(synk): for very long T this mean-pool could be fused into the Pallas
    # head; at the shapes here T is tiny so XLA fuses the mean + bf16 cast.
    emb = jnp.mean(feat, axis=1, dtype=jnp.float32)            # (N, 1024) f32
    out = encoding_fmri_pallas(emb, head_params["w1p"], head_params["b1p"],
                               head_params["w2p"], head_params["b2p"],
                               nroi=head_params["nroi"])       # (N, nroi)
    return out


if __name__ == "__main__":
    key = jax.random.PRNGKey(0)
    k_x, k_snd, k_head = jax.random.split(key, 3)

    N, L = 2, 8192                       # raw audio, NCHW: (N, 1, L, 1)
    fmrihidden, nroi = 1000, 210
    x = 0.1 * jax.random.normal(k_x, (N, 1, L, 1), jnp.float32)
    onsets = jnp.zeros((N,), jnp.float32)
    durations = jnp.ones((N,), jnp.float32)

    soundnet_params = init_soundnet_params(k_snd)
    head_params = init_head_params(k_head, fmrihidden, nroi)

    fwd = jax.jit(functools.partial(soundnet_encoding_forward,
                                    soundnet_params=soundnet_params,
                                    head_params=head_params))
    out = jax.block_until_ready(fwd(x, onsets, durations))
    assert out.shape == (N, nroi), out.shape
    assert bool(jnp.all(jnp.isfinite(out)))

    # Reference checks of the Pallas head against plain JAX.
    feat = soundnet_forward(x, soundnet_params)
    emb = jnp.mean(feat, axis=1, dtype=jnp.float32)            # (N, 1024) f32
    # (a) dtype-matched reference (same bf16 operand rounding, f32 accumulation)
    embb = emb.astype(jnp.bfloat16).astype(jnp.float32)
    w1b = head_params["w1p"].astype(jnp.bfloat16).astype(jnp.float32)
    w2b = head_params["w2p"].astype(jnp.bfloat16).astype(jnp.float32)
    h = jnp.maximum(embb @ w1b + head_params["b1p"], 0.0)
    h = h.astype(jnp.bfloat16).astype(jnp.float32)
    ref_matched = (h @ w2b + head_params["b2p"])[:, :nroi]
    assert jnp.allclose(out, ref_matched, atol=2e-3, rtol=2e-3), \
        float(jnp.max(jnp.abs(out - ref_matched)))
    # (b) loose check against full-f32 head math (bf16 operands => ~1e-2 rel)
    h32 = jnp.maximum(emb @ head_params["w1p"] + head_params["b1p"], 0.0)
    ref_f32 = (h32 @ head_params["w2p"] + head_params["b2p"])[:, :nroi]
    rel = jnp.max(jnp.abs(out - ref_f32)) / (jnp.max(jnp.abs(ref_f32)) + 1e-6)
    assert float(rel) < 5e-2, float(rel)

    print("KERNEL_OK")
</pallas_src>

<mosaic_0001>
module attributes {stable_mosaic.version = 11 : i64} {
  func.func @encoding_head_kernel(%arg0: i32, %arg1: memref<16x1024xbf16, #tpu.memory_space<vmem>>, %arg2: memref<1024x1024xbf16, #tpu.memory_space<vmem>>, %arg3: memref<1x1024xf32, #tpu.memory_space<vmem>>, %arg4: memref<1024x256xbf16, #tpu.memory_space<vmem>>, %arg5: memref<1x256xf32, #tpu.memory_space<vmem>>, %arg6: memref<16x256xf32, #tpu.memory_space<vmem>>) attributes {dimension_semantics = [#tpu.dimension_semantics<parallel>], iteration_bounds = array<i64: 1>, scalar_prefetch = 0 : i64, scratch_operands = 0 : i64, tpu.core_type = #tpu.core_type<tc>, window_params = [{transform_indices = @transform_0, window_bounds = array<i64: 16, 1024>}, {pipeline_mode = #tpu.pipeline_mode<synchronous>, transform_indices = @transform_1, window_bounds = array<i64: 1024, 1024>}, {pipeline_mode = #tpu.pipeline_mode<synchronous>, transform_indices = @transform_2, window_bounds = array<i64: 1, 1024>}, {pipeline_mode = #tpu.pipeline_mode<synchronous>, transform_indices = @transform_3, window_bounds = array<i64: 1024, 256>}, {pipeline_mode = #tpu.pipeline_mode<synchronous>, transform_indices = @transform_4, window_bounds = array<i64: 1, 256>}, {transform_indices = @transform_5, window_bounds = array<i64: 16, 256>}]} {
    %c0 = arith.constant 0 : index
    %c0_0 = arith.constant 0 : index
    %0 = vector.load %arg1[%c0, %c0_0] : memref<16x1024xbf16, #tpu.memory_space<vmem>>, vector<16x1024xbf16>
    %c0_1 = arith.constant 0 : index
    %c0_2 = arith.constant 0 : index
    %1 = vector.load %arg2[%c0_1, %c0_2] : memref<1024x1024xbf16, #tpu.memory_space<vmem>>, vector<1024x1024xbf16>
    %cst = arith.constant dense<0.000000e+00> : vector<16x1024xf32>
    %2 = tpu.matmul %0, %1, %cst {dimension_numbers = #tpu.dot_dimension_numbers<[1], [0], [0], [1], [0, 0, 1, 1], [], []>} : vector<16x1024xbf16>, vector<1024x1024xbf16>, vector<16x1024xf32> -> vector<16x1024xf32>
    %c0_3 = arith.constant 0 : index
    %c0_4 = arith.constant 0 : index
    %3 = vector.load %arg3[%c0_3, %c0_4] : memref<1x1024xf32, #tpu.memory_space<vmem>>, vector<1x1024xf32>
    %4 = vector.broadcast %3 : vector<1x1024xf32> to vector<16x1024xf32>
    %5 = arith.addf %2, %4 : vector<16x1024xf32>
    %cst_5 = arith.constant 0.000000e+00 : f32
    %6 = vector.broadcast %cst_5 : f32 to vector<16x1024xf32>
    %7 = arith.maximumf %5, %6 : vector<16x1024xf32>
    %8 = arith.truncf %7 : vector<16x1024xf32> to vector<16x1024xbf16>
    %c0_6 = arith.constant 0 : index
    %c0_7 = arith.constant 0 : index
    %9 = vector.load %arg4[%c0_6, %c0_7] : memref<1024x256xbf16, #tpu.memory_space<vmem>>, vector<1024x256xbf16>
    %cst_8 = arith.constant dense<0.000000e+00> : vector<16x256xf32>
    %10 = tpu.matmul %8, %9, %cst_8 {dimension_numbers = #tpu.dot_dimension_numbers<[1], [0], [0], [1], [0, 0, 1, 1], [], []>} : vector<16x1024xbf16>, vector<1024x256xbf16>, vector<16x256xf32> -> vector<16x256xf32>
    %c0_9 = arith.constant 0 : index
    %c0_10 = arith.constant 0 : index
    %11 = vector.load %arg5[%c0_9, %c0_10] : memref<1x256xf32, #tpu.memory_space<vmem>>, vector<1x256xf32>
    %12 = vector.broadcast %11 : vector<1x256xf32> to vector<16x256xf32>
    %13 = arith.addf %10, %12 : vector<16x256xf32>
    %c0_11 = arith.constant 0 : index
    %c0_12 = arith.constant 0 : index
    %14 = vector.load %arg6[%c0_11, %c0_12] : memref<16x256xf32, #tpu.memory_space<vmem>>, vector<16x256xf32>
    tpu.vector_store %arg6[%c0_11, %c0_12], %13 {strides = array<i32>} : memref<16x256xf32, #tpu.memory_space<vmem>>, vector<16x256xf32>,
    return
  }
  func.func @transform_0(%arg0: i32) -> (i32, i32) {
    %c0_i32 = arith.constant 0 : i32
    %c0_i32_0 = arith.constant 0 : i32
    return %arg0, %c0_i32 : i32, i32
  }
  func.func @transform_1(%arg0: i32) -> (i32, i32) {
    %c0_i32 = arith.constant 0 : i32
    %c0_i32_0 = arith.constant 0 : i32
    %c0_i32_1 = arith.constant 0 : i32
    return %c0_i32, %c0_i32_0 : i32, i32
  }
  func.func @transform_2(%arg0: i32) -> (i32, i32) {
    %c0_i32 = arith.constant 0 : i32
    %c0_i32_0 = arith.constant 0 : i32
    %c0_i32_1 = arith.constant 0 : i32
    return %c0_i32, %c0_i32_0 : i32, i32
  }
  func.func @transform_3(%arg0: i32) -> (i32, i32) {
    %c0_i32 = arith.constant 0 : i32
    %c0_i32_0 = arith.constant 0 : i32
    %c0_i32_1 = arith.constant 0 : i32
    return %c0_i32, %c0_i32_0 : i32, i32
  }
  func.func @transform_4(%arg0: i32) -> (i32, i32) {
    %c0_i32 = arith.constant 0 : i32
    %c0_i32_0 = arith.constant 0 : i32
    %c0_i32_1 = arith.constant 0 : i32
    return %c0_i32, %c0_i32_0 : i32, i32
  }
  func.func @transform_5(%arg0: i32) -> (i32, i32) {
    %c0_i32 = arith.constant 0 : i32
    %c0_i32_0 = arith.constant 0 : i32
    return %arg0, %c0_i32 : i32, i32
  }
}

</mosaic_0001>

<bundles_post_ra>
// kernel: soundnet_encoding_forward.1
= control target key start
LH: loop header
LB: loop body
LE: loop exit
PB: predicated region body
PF: predicated region fallthrough
CT: control target
= control target key end

     0   :  { %s7885_s1 = inlined_call_operand.vmem [shape: bf16[1024,1024], index: 1, kind: input, shape index: {}]   ;;  %s7886_s0 = inlined_call_operand.vmem [shape: bf16[16,1024], index: 0, kind: input, shape index: {}]   ;;  %s7887_s3 = inlined_call_operand.vmem [shape: bf16[1024,256], index: 3, kind: input, shape index: {}]   ;;  %s7888_s2 = inlined_call_operand.vmem [shape: f32[1,1024], index: 2, kind: input, shape index: {}]   ;;  %s7889_s4 = inlined_call_operand.vmem [shape: f32[1,256], index: 4, kind: input, shape index: {}]   ;;  %s7890_s5 = inlined_call_operand.vmem [shape: f32[16,256], index: 5, kind: output, shape index: {}]  }
   0x1   :  { %v28_v0 = vld [vmem:[%s7885_s1] sm:$0xff]  ;;  %v5912_v59 = vld [vmem:[%s7886_s0 + $0x10] sm:$0xff] }
   0x2   :  { %v32_v1 = vld [vmem:[%s7885_s1 + $0x20] sm:$0xff]  ;;  %v5923_v62 = vld [vmem:[%s7886_s0 + $0x30] sm:$0xff] }
   0x3   :  { %v284_v2 = vld [vmem:[%s7885_s1 + $0x800] sm:$0xff]  ;;  %v4863_v3 = vcombine.high %v28_v0, %v32_v1  ;;  %v4862_v5 = vcombine.low %v28_v0, %v32_v1  ;;  %v5928_v0 = vcombine.high %v5912_v59, %v5923_v62 }
   0x4   :  { %v288_v4 = vld [vmem:[%s7885_s1 + $0x820] sm:$0xff] }
   0x5   :  { %v36_v6 = vld [vmem:[%s7885_s1 + $0x40] sm:$0xff]  ;;  %v5119_v8 = vcombine.high %v284_v2, %v288_v4  ;;  %v5118_v9 = vcombine.low %v284_v2, %v288_v4  ;;  %3182 = vmatprep.subr.bf16.mxu1 %v4863_v3  ;;  %3300 = vmatprep.mubr.bf16.mxu0 %v5928_v0 }
   0x6   :  { %v40_v7 = vld [vmem:[%s7885_s1 + $0x60] sm:$0xff]  ;;  %3183 = vmatpush1.bf16.msra.mxu1 %v4862_v5 }
   0x7   :  { %v4871_v10 = vcombine.high %v36_v6, %v40_v7  ;;  %v292_v11 = vld [vmem:[%s7885_s1 + $0x840] sm:$0xff]  ;;  %3268 = vmatprep.subr.bf16.mxu0 %v5119_v8  ;;  %v4870_v18 = vcombine.low %v36_v6, %v40_v7 }
   0x8   :  { %v296_v12 = vld [vmem:[%s7885_s1 + $0x860] sm:$0xff]  ;;  %3269 = vmatpush1.bf16.msra.mxu0 %v5118_v9 }
   0x9   :  { %v44_v13 = vld [vmem:[%s7885_s1 + $0x80] sm:$0xff]  ;;  %v5127_v14 = vcombine.high %v292_v11, %v296_v12  ;;  %3184 = vmatprep.subr.bf16.mxu1 %v4871_v10  ;;  %v5126_v19 = vcombine.low %v292_v11, %v296_v12 }
   0xa   :  { %v48_v15 = vld [vmem:[%s7885_s1 + $0xa0] sm:$0xff]  ;;  %3185 = vmatpush1.bf16.msra.mxu1 %v4870_v18 }
   0xb   :  { %v300_v16 = vld [vmem:[%s7885_s1 + $0x880] sm:$0xff]  ;;  %v4879_v20 = vcombine.high %v44_v13, %v48_v15  ;;  %3270 = vmatprep.subr.bf16.mxu0 %v5127_v14  ;;  %v4878_v26 = vcombine.low %v44_v13, %v48_v15 }
   0xc   :  { %v304_v17 = vld [vmem:[%s7885_s1 + $0x8a0] sm:$0xff]  ;;  %3271 = vmatpush1.bf16.msra.mxu0 %v5126_v19 }
   0xd   :  { %v5135_v21 = vcombine.high %v300_v16, %v304_v17  ;;  %v52_v22 = vld [vmem:[%s7885_s1 + $0xc0] sm:$0xff]  ;;  %3186 = vmatprep.subr.bf16.mxu1 %v4879_v20  ;;  %v5134_v27 = vcombine.low %v300_v16, %v304_v17 }
   0xe   :  { %v56_v23 = vld [vmem:[%s7885_s1 + $0xe0] sm:$0xff]  ;;  %3187 = vmatpush1.bf16.msra.mxu1 %v4878_v26 }
   0xf   :  { %v308_v24 = vld [vmem:[%s7885_s1 + $0x8c0] sm:$0xff]  ;;  %v4887_v28 = vcombine.high %v52_v22, %v56_v23  ;;  %3272 = vmatprep.subr.bf16.mxu0 %v5135_v21  ;;  %v4886_v34 = vcombine.low %v52_v22, %v56_v23 }
  0x10   :  { %v312_v25 = vld [vmem:[%s7885_s1 + $0x8e0] sm:$0xff]  ;;  %3273 = vmatpush1.bf16.msra.mxu0 %v5134_v27 }
  0x11   :  { %v5143_v29 = vcombine.high %v308_v24, %v312_v25  ;;  %v60_v30 = vld [vmem:[%s7885_s1 + $0x100] sm:$0xff]  ;;  %3188 = vmatprep.subr.bf16.mxu1 %v4887_v28  ;;  %v5142_v35 = vcombine.low %v308_v24, %v312_v25 }
  0x12   :  { %v64_v31 = vld [vmem:[%s7885_s1 + $0x120] sm:$0xff]  ;;  %3189 = vmatpush1.bf16.msra.mxu1 %v4886_v34 }
  0x13   :  { %v316_v32 = vld [vmem:[%s7885_s1 + $0x900] sm:$0xff]  ;;  %v4895_v36 = vcombine.high %v60_v30, %v64_v31  ;;  %3274 = vmatprep.subr.bf16.mxu0 %v5143_v29  ;;  %v4894_v42 = vcombine.low %v60_v30, %v64_v31 }
  0x14   :  { %v320_v33 = vld [vmem:[%s7885_s1 + $0x920] sm:$0xff]  ;;  %3275 = vmatpush1.bf16.msra.mxu0 %v5142_v35 }
  0x15   :  { %v5151_v37 = vcombine.high %v316_v32, %v320_v33  ;;  %v68_v38 = vld [vmem:[%s7885_s1 + $0x140] sm:$0xff]  ;;  %3190 = vmatprep.subr.bf16.mxu1 %v4895_v36  ;;  %v5150_v43 = vcombine.low %v316_v32, %v320_v33 }
  0x16   :  { %v72_v39 = vld [vmem:[%s7885_s1 + $0x160] sm:$0xff]  ;;  %3191 = vmatpush1.bf16.msra.mxu1 %v4894_v42 }
  0x17   :  { %v324_v40 = vld [vmem:[%s7885_s1 + $0x940] sm:$0xff]  ;;  %v4903_v44 = vcombine.high %v68_v38, %v72_v39  ;;  %3276 = vmatprep.subr.bf16.mxu0 %v5151_v37  ;;  %v4902_v50 = vcombine.low %v68_v38, %v72_v39 }
  0x18   :  { %v328_v41 = vld [vmem:[%s7885_s1 + $0x960] sm:$0xff]  ;;  %3277 = vmatpush1.bf16.msra.mxu0 %v5150_v43 }
  0x19   :  { %v5159_v45 = vcombine.high %v324_v40, %v328_v41  ;;  %v76_v46 = vld [vmem:[%s7885_s1 + $0x180] sm:$0xff]  ;;  %3192 = vmatprep.subr.bf16.mxu1 %v4903_v44  ;;  %v5158_v51 = vcombine.low %v324_v40, %v328_v41 }
  0x1a   :  { %v80_v47 = vld [vmem:[%s7885_s1 + $0x1a0] sm:$0xff]  ;;  %3193 = vmatpush1.bf16.msra.mxu1 %v4902_v50 }
  0x1b   :  { %v332_v48 = vld [vmem:[%s7885_s1 + $0x980] sm:$0xff]  ;;  %v4911_v52 = vcombine.high %v76_v46, %v80_v47  ;;  %3278 = vmatprep.subr.bf16.mxu0 %v5159_v45  ;;  %v4910_v63 = vcombine.low %v76_v46, %v80_v47 }
  0x1c   :  { %v336_v49 = vld [vmem:[%s7885_s1 + $0x9a0] sm:$0xff]  ;;  %3279 = vmatpush1.bf16.msra.mxu0 %v5158_v51 }
  0x1d   :  { %v5892_v53 = vld [vmem:[%s7886_s0] sm:$0xff]  ;;  %v5167_v55 = vcombine.high %v332_v48, %v336_v49  ;;  %3194 = vmatprep.subr.bf16.mxu1 %v4911_v52  ;;  %v5166_v1 = vcombine.low %v332_v48, %v336_v49 }
  0x1e   :  { %v5897_v54 = vld [vmem:[%s7886_s0 + $0x20] sm:$0xff]  ;;  %3195 = vmatpush1.bf16.msra.mxu1 %v4910_v63 }
  0x1f   :  { %v84_v56 = vld [vmem:[%s7885_s1 + $0x1c0] sm:$0xff]  ;;  %v5907_v58 = vcombine.high %v5892_v53, %v5897_v54  ;;  %3280 = vmatprep.subr.bf16.mxu0 %v5167_v55 }
  0x20   :  { %v88_v57 = vld [vmem:[%s7885_s1 + $0x1e0] sm:$0xff]  ;;  %3281 = vmatpush1.bf16.msra.mxu0 %v5166_v1 }
  0x21   :  { %v340_v60 = vld [vmem:[%s7885_s1 + $0x9c0] sm:$0xff]  ;;  %3214 = vmatprep.mubr.bf16.mxu1 %v5907_v58  ;;  %v4919_v2 = vcombine.high %v84_v56, %v88_v57  ;;  %v4918_v8 = vcombine.low %v84_v56, %v88_v57 }
  0x22   :  { %v344_v61 = vld [vmem:[%s7885_s1 + $0x9e0] sm:$0xff] }
  0x23   :  { %v5175_v3 = vcombine.high %v340_v60, %v344_v61  ;;  %v92_v4 = vld [vmem:[%s7885_s1 + $0x200] sm:$0xff]  ;;  %3196 = vmatprep.subr.bf16.mxu1 %v4919_v2  ;;  %v5174_v9 = vcombine.low %v340_v60, %v344_v61 }
  0x24   :  { %v96_v5 = vld [vmem:[%s7885_s1 + $0x220] sm:$0xff]  ;;  %3197 = vmatpush1.bf16.msra.mxu1 %v4918_v8 }
  0x25   :  { %v348_v6 = vld [vmem:[%s7885_s1 + $0xa00] sm:$0xff]  ;;  %v4927_v10 = vcombine.high %v92_v4, %v96_v5  ;;  %3282 = vmatprep.subr.bf16.mxu0 %v5175_v3  ;;  %v4926_v16 = vcombine.low %v92_v4, %v96_v5 }
  0x26   :  { %v352_v7 = vld [vmem:[%s7885_s1 + $0xa20] sm:$0xff]  ;;  %3283 = vmatpush1.bf16.msra.mxu0 %v5174_v9 }
  0x27   :  { %v5183_v11 = vcombine.high %v348_v6, %v352_v7  ;;  %v100_v12 = vld [vmem:[%s7885_s1 + $0x240] sm:$0xff]  ;;  %3198 = vmatprep.subr.bf16.mxu1 %v4927_v10  ;;  %v5182_v17 = vcombine.low %v348_v6, %v352_v7 }
  0x28   :  { %v104_v13 = vld [vmem:[%s7885_s1 + $0x260] sm:$0xff]  ;;  %3199 = vmatpush1.bf16.msra.mxu1 %v4926_v16 }
  0x29   :  { %v356_v14 = vld [vmem:[%s7885_s1 + $0xa40] sm:$0xff]  ;;  %v4935_v18 = vcombine.high %v100_v12, %v104_v13  ;;  %3284 = vmatprep.subr.bf16.mxu0 %v5183_v11  ;;  %v4934_v24 = vcombine.low %v100_v12, %v104_v13 }
  0x2a   :  { %v360_v15 = vld [vmem:[%s7885_s1 + $0xa60] sm:$0xff]  ;;  %3285 = vmatpush1.bf16.msra.mxu0 %v5182_v17 }
  0x2b   :  { %v5191_v19 = vcombine.high %v356_v14, %v360_v15  ;;  %v108_v20 = vld [vmem:[%s7885_s1 + $0x280] sm:$0xff]  ;;  %3200 = vmatprep.subr.bf16.mxu1 %v4935_v18  ;;  %v5190_v25 = vcombine.low %v356_v14, %v360_v15 }
  0x2c   :  { %v112_v21 = vld [vmem:[%s7885_s1 + $0x2a0] sm:$0xff]  ;;  %3201 = vmatpush1.bf16.msra.mxu1 %v4934_v24  ;;  %v6063_v24 = vld [vmem:[%s7886_s0 + $0x28] sm:$0xff] }
  0x2d   :  { %v364_v22 = vld [vmem:[%s7885_s1 + $0xa80] sm:$0xff]  ;;  %v4943_v26 = vcombine.high %v108_v20, %v112_v21  ;;  %3286 = vmatprep.subr.bf16.mxu0 %v5191_v19  ;;  %v4942_v32 = vcombine.low %v108_v20, %v112_v21  ;;  %v6050_v21 = vcombine.low %v5892_v53, %v5897_v54  ;;  %v6067_v53 = vcombine.low %v5912_v59, %v5923_v62  ;;  %v6072_v54 = vld [vmem:[%s7886_s0 + $0x18] sm:$0xff] }
  0x2e   :  { %v368_v23 = vld [vmem:[%s7885_s1 + $0xaa0] sm:$0xff]  ;;  %3287 = vmatpush1.bf16.msra.mxu0 %v5190_v25 }
  0x2f   :  { %v5199_v27 = vcombine.high %v364_v22, %v368_v23  ;;  %v116_v28 = vld [vmem:[%s7885_s1 + $0x2c0] sm:$0xff]  ;;  %3202 = vmatprep.subr.bf16.mxu1 %v4943_v26  ;;  %v5198_v33 = vcombine.low %v364_v22, %v368_v23  ;;  %v6058_v23 = vld [vmem:[%s7886_s0 + $0x8] sm:$0xff]  ;;  %v6077_v26 = vld [vmem:[%s7886_s0 + $0x38] sm:$0xff] }
  0x30   :  { %v120_v29 = vld [vmem:[%s7885_s1 + $0x2e0] sm:$0xff]  ;;  %3203 = vmatpush1.bf16.msra.mxu1 %v4942_v32 }
  0x31   :  { %v372_v30 = vld [vmem:[%s7885_s1 + $0xac0] sm:$0xff]  ;;  %v4951_v34 = vcombine.high %v116_v28, %v120_v29  ;;  %3288 = vmatprep.subr.bf16.mxu0 %v5199_v27  ;;  %v4950_v40 = vcombine.low %v116_v28, %v120_v29 }
  0x32   :  { %v376_v31 = vld [vmem:[%s7885_s1 + $0xae0] sm:$0xff]  ;;  %3289 = vmatpush1.bf16.msra.mxu0 %v5198_v33  ;;  %v6098_v33 = vcombine.high %v6072_v54, %v6077_v26 }
  0x33   :  { %v5207_v35 = vcombine.high %v372_v30, %v376_v31  ;;  %v124_v36 = vld [vmem:[%s7885_s1 + $0x300] sm:$0xff]  ;;  %3204 = vmatprep.subr.bf16.mxu1 %v4951_v34  ;;  %v5206_v41 = vcombine.low %v372_v30, %v376_v31  ;;  %v6087_v30 = vcombine.high %v6058_v23, %v6063_v24 }
  0x34   :  { %v128_v37 = vld [vmem:[%s7885_s1 + $0x320] sm:$0xff]  ;;  %3205 = vmatpush1.bf16.msra.mxu1 %v4950_v40 }
  0x35   :  { %v380_v38 = vld [vmem:[%s7885_s1 + $0xb00] sm:$0xff]  ;;  %v4959_v42 = vcombine.high %v124_v36, %v128_v37  ;;  %3290 = vmatprep.subr.bf16.mxu0 %v5207_v35  ;;  %v4958_v48 = vcombine.low %v124_v36, %v128_v37 }
  0x36   :  { %v384_v39 = vld [vmem:[%s7885_s1 + $0xb20] sm:$0xff]  ;;  %3291 = vmatpush1.bf16.msra.mxu0 %v5206_v41 }
  0x37   :  { %v5215_v43 = vcombine.high %v380_v38, %v384_v39  ;;  %v132_v44 = vld [vmem:[%s7885_s1 + $0x340] sm:$0xff]  ;;  %3206 = vmatprep.subr.bf16.mxu1 %v4959_v42  ;;  %v5214_v49 = vcombine.low %v380_v38, %v384_v39 }
  0x38   :  { %v136_v45 = vld [vmem:[%s7885_s1 + $0x360] sm:$0xff]  ;;  %3207 = vmatpush1.bf16.msra.mxu1 %v4958_v48 }
  0x39   :  { %v388_v46 = vld [vmem:[%s7885_s1 + $0xb40] sm:$0xff]  ;;  %v4967_v50 = vcombine.high %v132_v44, %v136_v45  ;;  %3292 = vmatprep.subr.bf16.mxu0 %v5215_v43  ;;  %v4966_v60 = vcombine.low %v132_v44, %v136_v45 }
  0x3a   :  { %v392_v47 = vld [vmem:[%s7885_s1 + $0xb60] sm:$0xff]  ;;  %3293 = vmatpush1.bf16.msra.mxu0 %v5214_v49 }
  0x3b   :  { %v5223_v51 = vcombine.high %v388_v46, %v392_v47  ;;  %v140_v52 = vld [vmem:[%s7885_s1 + $0x380] sm:$0xff]  ;;  %3208 = vmatprep.subr.bf16.mxu1 %v4967_v50  ;;  %v5222_v61 = vcombine.low %v388_v46, %v392_v47 }
  0x3c   :  { %v144_v55 = vld [vmem:[%s7885_s1 + $0x3a0] sm:$0xff]  ;;  %3209 = vmatpush1.bf16.msra.mxu1 %v4966_v60 }
  0x3d   :  { %v396_v56 = vld [vmem:[%s7885_s1 + $0xb80] sm:$0xff]  ;;  %v4975_v63 = vcombine.high %v140_v52, %v144_v55  ;;  %3294 = vmatprep.subr.bf16.mxu0 %v5223_v51  ;;  %v4974_v6 = vcombine.low %v140_v52, %v144_v55 }
  0x3e   :  { %v400_v57 = vld [vmem:[%s7885_s1 + $0xba0] sm:$0xff]  ;;  %3295 = vmatpush1.bf16.msra.mxu0 %v5222_v61 }
  0x3f   :  { %v5231_v1 = vcombine.high %v396_v56, %v400_v57  ;;  %v148_v2 = vld [vmem:[%s7885_s1 + $0x3c0] sm:$0xff]  ;;  %3210 = vmatprep.subr.bf16.mxu1 %v4975_v63  ;;  %v5230_v7 = vcombine.low %v396_v56, %v400_v57 }
  0x40   :  { %v152_v3 = vld [vmem:[%s7885_s1 + $0x3e0] sm:$0xff]  ;;  %3211 = vmatpush1.bf16.msra.mxu1 %v4974_v6 }
  0x41   :  { %v404_v4 = vld [vmem:[%s7885_s1 + $0xbc0] sm:$0xff]  ;;  %v4983_v8 = vcombine.high %v148_v2, %v152_v3  ;;  %3296 = vmatprep.subr.bf16.mxu0 %v5231_v1  ;;  %v4982_v14 = vcombine.low %v148_v2, %v152_v3 }
  0x42   :  { %v408_v5 = vld [vmem:[%s7885_s1 + $0xbe0] sm:$0xff]  ;;  %3297 = vmatpush1.bf16.msra.mxu0 %v5230_v7 }
  0x43   :  { %v5239_v9 = vcombine.high %v404_v4, %v408_v5  ;;  %v156_v10 = vld [vmem:[%s7885_s1 + $0x400] sm:$0xff]  ;;  %3212 = vmatprep.subr.bf16.mxu1 %v4983_v8  ;;  %v5238_v15 = vcombine.low %v404_v4, %v408_v5 }
  0x44   :  { %v160_v11 = vld [vmem:[%s7885_s1 + $0x420] sm:$0xff]  ;;  %3213 = vmatpush1.bf16.msra.mxu1 %v4982_v14 }
  0x45   :  { %v412_v12 = vld [vmem:[%s7885_s1 + $0xc00] sm:$0xff]  ;;  %v4991_v16 = vcombine.high %v156_v10, %v160_v11  ;;  %3298 = vmatprep.subr.bf16.mxu0 %v5239_v9  ;;  %v4990_v25 = vcombine.low %v156_v10, %v160_v11 }
  0x46   :  { %v416_v13 = vld [vmem:[%s7885_s1 + $0xc20] sm:$0xff]  ;;  %3299 = vmatpush1.bf16.msra.mxu0 %v5238_v15 }
  0x47   :  { %v5247_v17 = vcombine.high %v412_v12, %v416_v13  ;;  %v164_v18 = vld [vmem:[%s7885_s1 + $0x440] sm:$0xff]  ;;  %3225 = vmatprep.subr.bf16.mxu1 %v4991_v16  ;;  %v5246_v27 = vcombine.low %v412_v12, %v416_v13  ;;  %3215 = vmatmul.mubr.bf16.vlgmr.msra.gmra.mrb[0].mxu1 %v6050_v21 }
  0x48   :  { %v168_v19 = vld [vmem:[%s7885_s1 + $0x460] sm:$0xff]  ;;  %3226 = vmatpush1.bf16.msra.mxu1 %v4990_v25  ;;  %3257 = vmatprep.mubr.bf16.mxu1 %v6087_v30 }
  0x49   :  { %v420_v20 = vld [vmem:[%s7885_s1 + $0xc40] sm:$0xff]  ;;  %v4999_v28 = vcombine.high %v164_v18, %v168_v19  ;;  %3311 = vmatprep.subr.bf16.mxu0 %v5247_v17  ;;  %3301 = vmatmul.mubr.bf16.vlgmr.msra.gmra.mrb[0].mxu0 %v6067_v53  ;;  %v4998_v34 = vcombine.low %v164_v18, %v168_v19 }
  0x4a   :  { %v424_v22 = vld [vmem:[%s7885_s1 + $0xc60] sm:$0xff]  ;;  %3312 = vmatpush1.bf16.msra.mxu0 %v5246_v27  ;;  %3343 = vmatprep.mubr.bf16.mxu0 %v6098_v33 }
  0x4b   :  { %v5255_v29 = vcombine.high %v420_v20, %v424_v22  ;;  %v172_v59 = vld [vmem:[%s7885_s1 + $0x480] sm:$0xff]  ;;  %3227 = vmatprep.subr.bf16.mxu1 %v4999_v28  ;;  %v5254_v35 = vcombine.low %v420_v20, %v424_v22 }
  0x4c   :  { %v176_v62 = vld [vmem:[%s7885_s1 + $0x4a0] sm:$0xff]  ;;  %3228 = vmatpush1.bf16.msra.mxu1 %v4998_v34 }
  0x4d   :  { %v428_v31 = vld [vmem:[%s7885_s1 + $0xc80] sm:$0xff]  ;;  %v5007_v36 = vcombine.high %v172_v59, %v176_v62  ;;  %3313 = vmatprep.subr.bf16.mxu0 %v5255_v29  ;;  %v5006_v42 = vcombine.low %v172_v59, %v176_v62 }
  0x4e   :  { %v432_v32 = vld [vmem:[%s7885_s1 + $0xca0] sm:$0xff]  ;;  %3314 = vmatpush1.bf16.msra.mxu0 %v5254_v35 }
  0x4f   :  { %v5263_v37 = vcombine.high %v428_v31, %v432_v32  ;;  %v180_v38 = vld [vmem:[%s7885_s1 + $0x4c0] sm:$0xff]  ;;  %3229 = vmatprep.subr.bf16.mxu1 %v5007_v36  ;;  %v5262_v43 = vcombine.low %v428_v31, %v432_v32 }
  0x50   :  { %v184_v39 = vld [vmem:[%s7885_s1 + $0x4e0] sm:$0xff]  ;;  %3230 = vmatpush1.bf16.msra.mxu1 %v5006_v42 }
  0x51   :  { %v436_v40 = vld [vmem:[%s7885_s1 + $0xcc0] sm:$0xff]  ;;  %v5015_v44 = vcombine.high %v180_v38, %v184_v39  ;;  %3315 = vmatprep.subr.bf16.mxu0 %v5263_v37  ;;  %v5014_v50 = vcombine.low %v180_v38, %v184_v39 }
  0x52   :  { %v440_v41 = vld [vmem:[%s7885_s1 + $0xce0] sm:$0xff]  ;;  %3316 = vmatpush1.bf16.msra.mxu0 %v5262_v43 }
  0x53   :  { %v5271_v45 = vcombine.high %v436_v40, %v440_v41  ;;  %v188_v46 = vld [vmem:[%s7885_s1 + $0x500] sm:$0xff]  ;;  %3231 = vmatprep.subr.bf16.mxu1 %v5015_v44  ;;  %v5270_v51 = vcombine.low %v436_v40, %v440_v41 }
  0x54   :  { %v192_v47 = vld [vmem:[%s7885_s1 + $0x520] sm:$0xff]  ;;  %3232 = vmatpush1.bf16.msra.mxu1 %v5014_v50 }
  0x55   :  { %v444_v48 = vld [vmem:[%s7885_s1 + $0xd00] sm:$0xff]  ;;  %v5023_v52 = vcombine.high %v188_v46, %v192_v47  ;;  %3317 = vmatprep.subr.bf16.mxu0 %v5271_v45  ;;  %v5022_v63 = vcombine.low %v188_v46, %v192_v47 }
  0x56   :  { %v448_v49 = vld [vmem:[%s7885_s1 + $0xd20] sm:$0xff]  ;;  %3318 = vmatpush1.bf16.msra.mxu0 %v5270_v51 }
  0x57   :  { %v5279_v55 = vcombine.high %v444_v48, %v448_v49  ;;  %v196_v56 = vld [vmem:[%s7885_s1 + $0x540] sm:$0xff]  ;;  %3233 = vmatprep.subr.bf16.mxu1 %v5023_v52  ;;  %v5278_v1 = vcombine.low %v444_v48, %v448_v49 }
  0x58   :  { %v200_v57 = vld [vmem:[%s7885_s1 + $0x560] sm:$0xff]  ;;  %3234 = vmatpush1.bf16.msra.mxu1 %v5022_v63 }
  0x59   :  { %v452_v60 = vld [vmem:[%s7885_s1 + $0xd40] sm:$0xff]  ;;  %v5031_v2 = vcombine.high %v196_v56, %v200_v57  ;;  %3319 = vmatprep.subr.bf16.mxu0 %v5279_v55  ;;  %v5030_v8 = vcombine.low %v196_v56, %v200_v57 }
  0x5a   :  { %v456_v61 = vld [vmem:[%s7885_s1 + $0xd60] sm:$0xff]  ;;  %3320 = vmatpush1.bf16.msra.mxu0 %v5278_v1 }
  0x5b   :  { %v5287_v3 = vcombine.high %v452_v60, %v456_v61  ;;  %v204_v4 = vld [vmem:[%s7885_s1 + $0x580] sm:$0xff]  ;;  %3235 = vmatprep.subr.bf16.mxu1 %v5031_v2  ;;  %v5286_v9 = vcombine.low %v452_v60, %v456_v61 }
  0x5c   :  { %v208_v5 = vld [vmem:[%s7885_s1 + $0x5a0] sm:$0xff]  ;;  %3236 = vmatpush1.bf16.msra.mxu1 %v5030_v8 }
  0x5d   :  { %v460_v6 = vld [vmem:[%s7885_s1 + $0xd80] sm:$0xff]  ;;  %v5039_v10 = vcombine.high %v204_v4, %v208_v5  ;;  %3321 = vmatprep.subr.bf16.mxu0 %v5287_v3  ;;  %v5038_v16 = vcombine.low %v204_v4, %v208_v5 }
  0x5e   :  { %v464_v7 = vld [vmem:[%s7885_s1 + $0xda0] sm:$0xff]  ;;  %3322 = vmatpush1.bf16.msra.mxu0 %v5286_v9 }
  0x5f   :  { %v5295_v11 = vcombine.high %v460_v6, %v464_v7  ;;  %v212_v12 = vld [vmem:[%s7885_s1 + $0x5c0] sm:$0xff]  ;;  %3237 = vmatprep.subr.bf16.mxu1 %v5039_v10  ;;  %v5294_v17 = vcombine.low %v460_v6, %v464_v7 }
  0x60   :  { %v216_v13 = vld [vmem:[%s7885_s1 + $0x5e0] sm:$0xff]  ;;  %3238 = vmatpush1.bf16.msra.mxu1 %v5038_v16 }
  0x61   :  { %v468_v14 = vld [vmem:[%s7885_s1 + $0xdc0] sm:$0xff]  ;;  %v5047_v18 = vcombine.high %v212_v12, %v216_v13  ;;  %3323 = vmatprep.subr.bf16.mxu0 %v5295_v11  ;;  %v5046_v28 = vcombine.low %v212_v12, %v216_v13 }
  0x62   :  { %v472_v15 = vld [vmem:[%s7885_s1 + $0xde0] sm:$0xff]  ;;  %3324 = vmatpush1.bf16.msra.mxu0 %v5294_v17 }
  0x63   :  { %v5303_v19 = vcombine.high %v468_v14, %v472_v15  ;;  %v220_v20 = vld [vmem:[%s7885_s1 + $0x600] sm:$0xff]  ;;  %3239 = vmatprep.subr.bf16.mxu1 %v5047_v18  ;;  %v5302_v29 = vcombine.low %v468_v14, %v472_v15 }
  0x64   :  { %v224_v22 = vld [vmem:[%s7885_s1 + $0x620] sm:$0xff]  ;;  %3240 = vmatpush1.bf16.msra.mxu1 %v5046_v28 }
  0x65   :  { %v476_v25 = vld [vmem:[%s7885_s1 + $0xe00] sm:$0xff]  ;;  %v5055_v59 = vcombine.high %v220_v20, %v224_v22  ;;  %3325 = vmatprep.subr.bf16.mxu0 %v5303_v19  ;;  %v5054_v36 = vcombine.low %v220_v20, %v224_v22 }
  0x66   :  { %v480_v27 = vld [vmem:[%s7885_s1 + $0xe20] sm:$0xff]  ;;  %3326 = vmatpush1.bf16.msra.mxu0 %v5302_v29 }
  0x67   :  { %v5311_v62 = vcombine.high %v476_v25, %v480_v27  ;;  %v228_v31 = vld [vmem:[%s7885_s1 + $0x640] sm:$0xff]  ;;  %3241 = vmatprep.subr.bf16.mxu1 %v5055_v59  ;;  %v5310_v37 = vcombine.low %v476_v25, %v480_v27 }
  0x68   :  { %v232_v32 = vld [vmem:[%s7885_s1 + $0x660] sm:$0xff]  ;;  %3242 = vmatpush1.bf16.msra.mxu1 %v5054_v36  ;;  %v30_v36 = vld [vmem:[%s7885_s1 + $0x10] sm:$0xff] }
  0x69   :  { %v484_v34 = vld [vmem:[%s7885_s1 + $0xe40] sm:$0xff]  ;;  %v5063_v38 = vcombine.high %v228_v31, %v232_v32  ;;  %3327 = vmatprep.subr.bf16.mxu0 %v5311_v62  ;;  %v5062_v44 = vcombine.low %v228_v31, %v232_v32 }
  0x6a   :  { %v488_v35 = vld [vmem:[%s7885_s1 + $0xe60] sm:$0xff]  ;;  %3328 = vmatpush1.bf16.msra.mxu0 %v5310_v37  ;;  %v34_v37 = vld [vmem:[%s7885_s1 + $0x30] sm:$0xff] }
  0x6b   :  { %v5319_v39 = vcombine.high %v484_v34, %v488_v35  ;;  %v236_v40 = vld [vmem:[%s7885_s1 + $0x680] sm:$0xff]  ;;  %3243 = vmatprep.subr.bf16.mxu1 %v5063_v38  ;;  %v5318_v45 = vcombine.low %v484_v34, %v488_v35  ;;  %v29_v34 = vld [vmem:[%s7885_s1 + $0x8] sm:$0xff] }
  0x6c   :  { %v240_v41 = vld [vmem:[%s7885_s1 + $0x6a0] sm:$0xff]  ;;  %3244 = vmatpush1.bf16.msra.mxu1 %v5062_v44  ;;  %v33_v35 = vld [vmem:[%s7885_s1 + $0x28] sm:$0xff]  ;;  %v6279_v44 = vcombine.low %v6058_v23, %v6063_v24 }
  0x6d   :  { %v492_v42 = vld [vmem:[%s7885_s1 + $0xe80] sm:$0xff]  ;;  %v5071_v46 = vcombine.high %v236_v40, %v240_v41  ;;  %3329 = vmatprep.subr.bf16.mxu0 %v5319_v39  ;;  %v5070_v52 = vcombine.low %v236_v40, %v240_v41  ;;  %v4865_v40 = vcombine.high %v29_v34, %v33_v35  ;;  %v4867_v41 = vcombine.high %v30_v36, %v34_v37  ;;  %v45_v24 = vld [vmem:[%s7885_s1 + $0x88] sm:$0xff] }
  0x6e   :  { %v496_v43 = vld [vmem:[%s7885_s1 + $0xea0] sm:$0xff]  ;;  %3330 = vmatpush1.bf16.msra.mxu0 %v5318_v45  ;;  %v38_v45 = vld [vmem:[%s7885_s1 + $0x50] sm:$0xff] }
  0x6f   :  { %v5327_v47 = vcombine.high %v492_v42, %v496_v43  ;;  %v244_v48 = vld [vmem:[%s7885_s1 + $0x6c0] sm:$0xff]  ;;  %3245 = vmatprep.subr.bf16.mxu1 %v5071_v46  ;;  %v5326_v55 = vcombine.low %v492_v42, %v496_v43  ;;  %v37_v42 = vld [vmem:[%s7885_s1 + $0x48] sm:$0xff]  ;;  %v42_v46 = vld [vmem:[%s7885_s1 + $0x70] sm:$0xff] }
  0x70   :  { %v248_v49 = vld [vmem:[%s7885_s1 + $0x6e0] sm:$0xff]  ;;  %3246 = vmatpush1.bf16.msra.mxu1 %v5070_v52  ;;  %v41_v43 = vld [vmem:[%s7885_s1 + $0x68] sm:$0xff]  ;;  %v4875_v23 = vcombine.high %v38_v45, %v42_v46 }
  0x71   :  { %v500_v50 = vld [vmem:[%s7885_s1 + $0xec0] sm:$0xff]  ;;  %v5079_v56 = vcombine.high %v244_v48, %v248_v49  ;;  %3331 = vmatprep.subr.bf16.mxu0 %v5327_v47  ;;  %v5078_v2 = vcombine.low %v244_v48, %v248_v49  ;;  %v4864_v47 = vcombine.low %v29_v34, %v33_v35  ;;  %v6289_v48 = vcombine.low %v6072_v54, %v6077_v26  ;;  %v46_v54 = vld [vmem:[%s7885_s1 + $0x90] sm:$0xff]  ;;  %v85_v34 = vld [vmem:[%s7885_s1 + $0x1c8] sm:$0xff] }
  0x72   :  { %v504_v51 = vld [vmem:[%s7885_s1 + $0xee0] sm:$0xff]  ;;  %3332 = vmatpush1.bf16.msra.mxu0 %v5326_v55  ;;  %v4866_v49 = vcombine.low %v30_v36, %v34_v37  ;;  %v50_v26 = vld [vmem:[%s7885_s1 + $0xb0] sm:$0xff]  ;;  %v4872_v52 = vcombine.low %v37_v42, %v41_v43  ;;  %v4874_v55 = vcombine.low %v38_v45, %v42_v46  ;;  %v89_v35 = vld [vmem:[%s7885_s1 + $0x1e8] sm:$0xff] }
  0x73   :  { %v5335_v57 = vcombine.high %v500_v50, %v504_v51  ;;  %v252_v60 = vld [vmem:[%s7885_s1 + $0x700] sm:$0xff]  ;;  %3247 = vmatprep.subr.bf16.mxu1 %v5079_v56  ;;  %v5334_v3 = vcombine.low %v500_v50, %v504_v51  ;;  %v4873_v50 = vcombine.high %v37_v42, %v41_v43  ;;  %v49_v51 = vld [vmem:[%s7885_s1 + $0xa8] sm:$0xff]  ;;  %v86_v36 = vld [vmem:[%s7885_s1 + $0x1d0] sm:$0xff] }
  0x74   :  { %v256_v61 = vld [vmem:[%s7885_s1 + $0x720] sm:$0xff]  ;;  %3248 = vmatpush1.bf16.msra.mxu1 %v5078_v2  ;;  %v4881_v56 = vcombine.high %v45_v24, %v49_v51  ;;  %v4880_v2 = vcombine.low %v45_v24, %v49_v51  ;;  %v90_v37 = vld [vmem:[%s7885_s1 + $0x1f0] sm:$0xff]  ;;  %v93_v42 = vld [vmem:[%s7885_s1 + $0x208] sm:$0xff] }
  0x75   :  { %v508_v63 = vld [vmem:[%s7885_s1 + $0xf00] sm:$0xff]  ;;  %v5087_v4 = vcombine.high %v252_v60, %v256_v61  ;;  %3333 = vmatprep.subr.bf16.mxu0 %v5335_v57  ;;  %v5086_v10 = vcombine.low %v252_v60, %v256_v61  ;;  %v4883_v57 = vcombine.high %v46_v54, %v50_v26  ;;  %v53_v60 = vld [vmem:[%s7885_s1 + $0xc8] sm:$0xff]  ;;  %v94_v45 = vld [vmem:[%s7885_s1 + $0x210] sm:$0xff] }
  0x76   :  { %v512_v1 = vld [vmem:[%s7885_s1 + $0xf20] sm:$0xff]  ;;  %3334 = vmatpush1.bf16.msra.mxu0 %v5334_v3  ;;  %v57_v61 = vld [vmem:[%s7885_s1 + $0xe8] sm:$0xff]  ;;  %v4882_v3 = vcombine.low %v46_v54, %v50_v26  ;;  %v98_v46 = vld [vmem:[%s7885_s1 + $0x230] sm:$0xff] }
  0x77   :  { %v5343_v5 = vcombine.high %v508_v63, %v512_v1  ;;  %v260_v6 = vld [vmem:[%s7885_s1 + $0x740] sm:$0xff]  ;;  %3249 = vmatprep.subr.bf16.mxu1 %v5087_v4  ;;  %v5342_v11 = vcombine.low %v508_v63, %v512_v1  ;;  %v54_v63 = vld [vmem:[%s7885_s1 + $0xd0] sm:$0xff]  ;;  %v4889_v4 = vcombine.high %v53_v60, %v57_v61  ;;  %v97_v43 = vld [vmem:[%s7885_s1 + $0x228] sm:$0xff] }
  0x78   :  { %v264_v7 = vld [vmem:[%s7885_s1 + $0x760] sm:$0xff]  ;;  %3250 = vmatpush1.bf16.msra.mxu1 %v5086_v10  ;;  %v58_v1 = vld [vmem:[%s7885_s1 + $0xf0] sm:$0xff]  ;;  %v4888_v10 = vcombine.low %v53_v60, %v57_v61  ;;  %v101_v24 = vld [vmem:[%s7885_s1 + $0x248] sm:$0xff] }
  0x79   :  { %v516_v8 = vld [vmem:[%s7885_s1 + $0xf40] sm:$0xff]  ;;  %v5095_v12 = vcombine.high %v260_v6, %v264_v7  ;;  %3335 = vmatprep.subr.bf16.mxu0 %v5343_v5  ;;  %v5094_v18 = vcombine.low %v260_v6, %v264_v7  ;;  %v4891_v5 = vcombine.high %v54_v63, %v58_v1  ;;  %v61_v6 = vld [vmem:[%s7885_s1 + $0x108] sm:$0xff]  ;;  %v102_v54 = vld [vmem:[%s7885_s1 + $0x250] sm:$0xff] }
  0x7a   :  { %v520_v9 = vld [vmem:[%s7885_s1 + $0xf60] sm:$0xff]  ;;  %3336 = vmatpush1.bf16.msra.mxu0 %v5342_v11  ;;  %v65_v7 = vld [vmem:[%s7885_s1 + $0x128] sm:$0xff]  ;;  %v4890_v11 = vcombine.low %v54_v63, %v58_v1  ;;  %v106_v26 = vld [vmem:[%s7885_s1 + $0x270] sm:$0xff] }
  0x7b   :  { %v5351_v13 = vcombine.high %v516_v8, %v520_v9  ;;  %v268_v14 = vld [vmem:[%s7885_s1 + $0x780] sm:$0xff]  ;;  %3251 = vmatprep.subr.bf16.mxu1 %v5095_v12  ;;  %v5350_v19 = vcombine.low %v516_v8, %v520_v9  ;;  %v62_v8 = vld [vmem:[%s7885_s1 + $0x110] sm:$0xff]  ;;  %v4897_v12 = vcombine.high %v61_v6, %v65_v7  ;;  %v105_v51 = vld [vmem:[%s7885_s1 + $0x268] sm:$0xff] }
  0x7c   :  { %v272_v15 = vld [vmem:[%s7885_s1 + $0x7a0] sm:$0xff]  ;;  %3252 = vmatpush1.bf16.msra.mxu1 %v5094_v18  ;;  %v66_v9 = vld [vmem:[%s7885_s1 + $0x130] sm:$0xff]  ;;  %v4896_v18 = vcombine.low %v61_v6, %v65_v7  ;;  %v109_v60 = vld [vmem:[%s7885_s1 + $0x288] sm:$0xff] }
  0x7d   :  { %v524_v16 = vld [vmem:[%s7885_s1 + $0xf80] sm:$0xff]  ;;  %v5103_v20 = vcombine.high %v268_v14, %v272_v15  ;;  %3337 = vmatprep.subr.bf16.mxu0 %v5351_v13  ;;  %v5102_v59 = vcombine.low %v268_v14, %v272_v15  ;;  %v4899_v13 = vcombine.high %v62_v8, %v66_v9  ;;  %v69_v14 = vld [vmem:[%s7885_s1 + $0x148] sm:$0xff]  ;;  %v110_v63 = vld [vmem:[%s7885_s1 + $0x290] sm:$0xff] }
  0x7e   :  { %v528_v17 = vld [vmem:[%s7885_s1 + $0xfa0] sm:$0xff]  ;;  %3338 = vmatpush1.bf16.msra.mxu0 %v5350_v19  ;;  %v73_v15 = vld [vmem:[%s7885_s1 + $0x168] sm:$0xff]  ;;  %v4898_v19 = vcombine.low %v62_v8, %v66_v9  ;;  %v114_v1 = vld [vmem:[%s7885_s1 + $0x2b0] sm:$0xff] }
  0x7f   :  { %v5359_v22 = vcombine.high %v524_v16, %v528_v17  ;;  %v276_v25 = vld [vmem:[%s7885_s1 + $0x7c0] sm:$0xff]  ;;  %3253 = vmatprep.subr.bf16.mxu1 %v5103_v20  ;;  %v5358_v62 = vcombine.low %v524_v16, %v528_v17  ;;  %v70_v16 = vld [vmem:[%s7885_s1 + $0x150] sm:$0xff]  ;;  %v4905_v20 = vcombine.high %v69_v14, %v73_v15  ;;  %v113_v61 = vld [vmem:[%s7885_s1 + $0x2a8] sm:$0xff] }
  0x80   :  { %v280_v27 = vld [vmem:[%s7885_s1 + $0x7e0] sm:$0xff]  ;;  %3254 = vmatpush1.bf16.msra.mxu1 %v5102_v59  ;;  %v74_v17 = vld [vmem:[%s7885_s1 + $0x170] sm:$0xff]  ;;  %v4904_v59 = vcombine.low %v69_v14, %v73_v15  ;;  %v117_v6 = vld [vmem:[%s7885_s1 + $0x2c8] sm:$0xff] }
  0x81   :  { %v532_v28 = vld [vmem:[%s7885_s1 + $0xfc0] sm:$0xff]  ;;  %v5111_v31 = vcombine.high %v276_v25, %v280_v27  ;;  %3339 = vmatprep.subr.bf16.mxu0 %v5359_v22  ;;  %v5110_v38 = vcombine.low %v276_v25, %v280_v27  ;;  %v4907_v22 = vcombine.high %v70_v16, %v74_v17  ;;  %v77_v25 = vld [vmem:[%s7885_s1 + $0x188] sm:$0xff]  ;;  %v118_v8 = vld [vmem:[%s7885_s1 + $0x2d0] sm:$0xff] }
  0x82   :  { %v536_v29 = vld [vmem:[%s7885_s1 + $0xfe0] sm:$0xff]  ;;  %3340 = vmatpush1.bf16.msra.mxu0 %v5358_v62  ;;  %v81_v27 = vld [vmem:[%s7885_s1 + $0x1a8] sm:$0xff]  ;;  %v4906_v62 = vcombine.low %v70_v16, %v74_v17  ;;  %v122_v9 = vld [vmem:[%s7885_s1 + $0x2f0] sm:$0xff] }
  0x83   :  { %v5367_v32 = vcombine.high %v532_v28, %v536_v29  ;;  %3255 = vmatprep.subr.bf16.mxu1 %v5111_v31  ;;  %v5366_v39 = vcombine.low %v532_v28, %v536_v29  ;;  %v78_v28 = vld [vmem:[%s7885_s1 + $0x190] sm:$0xff]  ;;  %v4913_v31 = vcombine.high %v77_v25, %v81_v27  ;;  %v121_v7 = vld [vmem:[%s7885_s1 + $0x2e8] sm:$0xff] }
  0x84   :  { %3256 = vmatpush1.bf16.msra.mxu1 %v5110_v38  ;;  %v82_v29 = vld [vmem:[%s7885_s1 + $0x1b0] sm:$0xff]  ;;  %v4912_v38 = vcombine.low %v77_v25, %v81_v27  ;;  %v125_v14 = vld [vmem:[%s7885_s1 + $0x308] sm:$0xff] }
  0x85   :  { %3341 = vmatprep.subr.bf16.mxu0 %v5367_v32  ;;  %3354 = vmatprep.subr.bf16.mxu1 %v4865_v40  ;;  %v4915_v32 = vcombine.high %v78_v28, %v82_v29  ;;  %v4921_v40 = vcombine.high %v85_v34, %v89_v35  ;;  %v129_v15 = vld [vmem:[%s7885_s1 + $0x328] sm:$0xff]  ;;  %v126_v16 = vld [vmem:[%s7885_s1 + $0x310] sm:$0xff] }
  0x86   :  { %3342 = vmatpush1.bf16.msra.mxu0 %v5366_v39  ;;  %v4914_v39 = vcombine.low %v78_v28, %v82_v29  ;;  %v130_v17 = vld [vmem:[%s7885_s1 + $0x330] sm:$0xff]  ;;  %v133_v25 = vld [vmem:[%s7885_s1 + $0x348] sm:$0xff] }
  0x87   :  { %3526 = vmatprep.subr.bf16.mxu0 %v4867_v41  ;;  %3258 = vmatmul.mubr.bf16.vlgmr.msra.gmra.mrb[0].mxu1 %v6279_v44  ;;  %v4923_v41 = vcombine.high %v86_v36, %v90_v37  ;;  %v137_v27 = vld [vmem:[%s7885_s1 + $0x368] sm:$0xff]  ;;  %v134_v28 = vld [vmem:[%s7885_s1 + $0x350] sm:$0xff] }
  0x88   :  { %3355 = vmatpush1.bf16.msra.mxu1 %v4864_v47  ;;  %3386 = vmatprep.mubr.bf16.mxu1 %v5907_v58  ;;  %v4920_v47 = vcombine.low %v85_v34, %v89_v35  ;;  %v138_v29 = vld [vmem:[%s7885_s1 + $0x370] sm:$0xff]  ;;  %v141_v34 = vld [vmem:[%s7885_s1 + $0x388] sm:$0xff] }
  0x89   :  { %3344 = vmatmul.mubr.bf16.vlgmr.msra.gmra.mrb[0].mxu0 %v6289_v48  ;;  %3356 = vmatprep.subr.bf16.mxu1 %v4873_v50  ;;  %v4929_v50 = vcombine.high %v93_v42, %v97_v43  ;;  %v145_v35 = vld [vmem:[%s7885_s1 + $0x3a8] sm:$0xff] }
  0x8a   :  { %3527 = vmatpush1.bf16.msra.mxu0 %v4866_v49  ;;  %3558 = vmatprep.mubr.bf16.mxu0 %v5907_v58  ;;  %v4922_v49 = vcombine.low %v86_v36, %v90_v37  ;;  %v142_v36 = vld [vmem:[%s7885_s1 + $0x390] sm:$0xff] }
  0x8b   :  { %3528 = vmatprep.subr.bf16.mxu0 %v4875_v23  ;;  %v4931_v23 = vcombine.high %v94_v45, %v98_v46  ;;  %v146_v37 = vld [vmem:[%s7885_s1 + $0x3b0] sm:$0xff] }
  0x8c   :  { %3357 = vmatpush1.bf16.msra.mxu1 %v4872_v52  ;;  %v4928_v52 = vcombine.low %v93_v42, %v97_v43  ;;  %v149_v42 = vld [vmem:[%s7885_s1 + $0x3c8] sm:$0xff] }
  0x8d   :  { %3358 = vmatprep.subr.bf16.mxu1 %v4881_v56  ;;  %v4937_v56 = vcombine.high %v101_v24, %v105_v51  ;;  %v153_v43 = vld [vmem:[%s7885_s1 + $0x3e8] sm:$0xff] }
  0x8e   :  { %3529 = vmatpush1.bf16.msra.mxu0 %v4874_v55  ;;  %v4930_v55 = vcombine.low %v94_v45, %v98_v46  ;;  %v150_v45 = vld [vmem:[%s7885_s1 + $0x3d0] sm:$0xff] }
  0x8f   :  { %3530 = vmatprep.subr.bf16.mxu0 %v4883_v57  ;;  %v4939_v57 = vcombine.high %v102_v54, %v106_v26  ;;  %v154_v46 = vld [vmem:[%s7885_s1 + $0x3f0] sm:$0xff] }
  0x90   :  { %3359 = vmatpush1.bf16.msra.mxu1 %v4880_v2  ;;  %v4936_v2 = vcombine.low %v101_v24, %v105_v51  ;;  %v157_v24 = vld [vmem:[%s7885_s1 + $0x408] sm:$0xff] }
  0x91   :  { %3360 = vmatprep.subr.bf16.mxu1 %v4889_v4  ;;  %v4945_v4 = vcombine.high %v109_v60, %v113_v61  ;;  %v161_v51 = vld [vmem:[%s7885_s1 + $0x428] sm:$0xff] }
  0x92   :  { %3531 = vmatpush1.bf16.msra.mxu0 %v4882_v3  ;;  %v4938_v3 = vcombine.low %v102_v54, %v106_v26  ;;  %v158_v54 = vld [vmem:[%s7885_s1 + $0x410] sm:$0xff] }
  0x93   :  { %3532 = vmatprep.subr.bf16.mxu0 %v4891_v5  ;;  %v4947_v5 = vcombine.high %v110_v63, %v114_v1  ;;  %v162_v26 = vld [vmem:[%s7885_s1 + $0x430] sm:$0xff] }
  0x94   :  { %3361 = vmatpush1.bf16.msra.mxu1 %v4888_v10  ;;  %v4944_v10 = vcombine.low %v109_v60, %v113_v61  ;;  %v165_v60 = vld [vmem:[%s7885_s1 + $0x448] sm:$0xff] }
  0x95   :  { %3362 = vmatprep.subr.bf16.mxu1 %v4897_v12  ;;  %v4953_v12 = vcombine.high %v117_v6, %v121_v7  ;;  %v169_v61 = vld [vmem:[%s7885_s1 + $0x468] sm:$0xff] }
  0x96   :  { %3533 = vmatpush1.bf16.msra.mxu0 %v4890_v11  ;;  %v4946_v11 = vcombine.low %v110_v63, %v114_v1  ;;  %v166_v63 = vld [vmem:[%s7885_s1 + $0x450] sm:$0xff] }
  0x97   :  { %3534 = vmatprep.subr.bf16.mxu0 %v4899_v13  ;;  %v4955_v13 = vcombine.high %v118_v8, %v122_v9  ;;  %v170_v1 = vld [vmem:[%s7885_s1 + $0x470] sm:$0xff] }
  0x98   :  { %3363 = vmatpush1.bf16.msra.mxu1 %v4896_v18  ;;  %v4952_v18 = vcombine.low %v117_v6, %v121_v7  ;;  %v173_v6 = vld [vmem:[%s7885_s1 + $0x488] sm:$0xff] }
  0x99   :  { %3364 = vmatprep.subr.bf16.mxu1 %v4905_v20  ;;  %v4961_v20 = vcombine.high %v125_v14, %v129_v15  ;;  %v177_v7 = vld [vmem:[%s7885_s1 + $0x4a8] sm:$0xff] }
  0x9a   :  { %3535 = vmatpush1.bf16.msra.mxu0 %v4898_v19  ;;  %v4954_v19 = vcombine.low %v118_v8, %v122_v9  ;;  %v174_v8 = vld [vmem:[%s7885_s1 + $0x490] sm:$0xff] }
  0x9b   :  { %3536 = vmatprep.subr.bf16.mxu0 %v4907_v22  ;;  %v4963_v22 = vcombine.high %v126_v16, %v130_v17  ;;  %v178_v9 = vld [vmem:[%s7885_s1 + $0x4b0] sm:$0xff] }
  0x9c   :  { %3365 = vmatpush1.bf16.msra.mxu1 %v4904_v59  ;;  %v4960_v59 = vcombine.low %v125_v14, %v129_v15  ;;  %v181_v14 = vld [vmem:[%s7885_s1 + $0x4c8] sm:$0xff] }
  0x9d   :  { %3366 = vmatprep.subr.bf16.mxu1 %v4913_v31  ;;  %v4969_v31 = vcombine.high %v133_v25, %v137_v27  ;;  %v185_v15 = vld [vmem:[%s7885_s1 + $0x4e8] sm:$0xff] }
  0x9e   :  { %3537 = vmatpush1.bf16.msra.mxu0 %v4906_v62  ;;  %v4962_v62 = vcombine.low %v126_v16, %v130_v17  ;;  %v182_v16 = vld [vmem:[%s7885_s1 + $0x4d0] sm:$0xff] }
  0x9f   :  { %3538 = vmatprep.subr.bf16.mxu0 %v4915_v32  ;;  %v4971_v32 = vcombine.high %v134_v28, %v138_v29  ;;  %v186_v17 = vld [vmem:[%s7885_s1 + $0x4f0] sm:$0xff] }
  0xa0   :  { %3367 = vmatpush1.bf16.msra.mxu1 %v4912_v38  ;;  %v4968_v38 = vcombine.low %v133_v25, %v137_v27  ;;  %v189_v25 = vld [vmem:[%s7885_s1 + $0x508] sm:$0xff] }
  0xa1   :  { %3368 = vmatprep.subr.bf16.mxu1 %v4921_v40  ;;  %v4977_v40 = vcombine.high %v141_v34, %v145_v35  ;;  %v193_v27 = vld [vmem:[%s7885_s1 + $0x528] sm:$0xff] }
  0xa2   :  { %3539 = vmatpush1.bf16.msra.mxu0 %v4914_v39  ;;  %v4970_v39 = vcombine.low %v134_v28, %v138_v29  ;;  %v190_v28 = vld [vmem:[%s7885_s1 + $0x510] sm:$0xff] }
  0xa3   :  { %3540 = vmatprep.subr.bf16.mxu0 %v4923_v41  ;;  %v4979_v41 = vcombine.high %v142_v36, %v146_v37  ;;  %v194_v29 = vld [vmem:[%s7885_s1 + $0x530] sm:$0xff] }
  0xa4   :  { %3369 = vmatpush1.bf16.msra.mxu1 %v4920_v47  ;;  %v4976_v47 = vcombine.low %v141_v34, %v145_v35  ;;  %v197_v34 = vld [vmem:[%s7885_s1 + $0x548] sm:$0xff] }
  0xa5   :  { %3370 = vmatprep.subr.bf16.mxu1 %v4929_v50  ;;  %v4985_v50 = vcombine.high %v149_v42, %v153_v43  ;;  %v201_v35 = vld [vmem:[%s7885_s1 + $0x568] sm:$0xff] }
  0xa6   :  { %3541 = vmatpush1.bf16.msra.mxu0 %v4922_v49  ;;  %v4978_v49 = vcombine.low %v142_v36, %v146_v37  ;;  %v198_v36 = vld [vmem:[%s7885_s1 + $0x550] sm:$0xff] }
  0xa7   :  { %3542 = vmatprep.subr.bf16.mxu0 %v4931_v23  ;;  %v4987_v23 = vcombine.high %v150_v45, %v154_v46  ;;  %v202_v37 = vld [vmem:[%s7885_s1 + $0x570] sm:$0xff] }
  0xa8   :  { %3371 = vmatpush1.bf16.msra.mxu1 %v4928_v52  ;;  %v4984_v52 = vcombine.low %v149_v42, %v153_v43  ;;  %v205_v42 = vld [vmem:[%s7885_s1 + $0x588] sm:$0xff] }
  0xa9   :  { %3372 = vmatprep.subr.bf16.mxu1 %v4937_v56  ;;  %v4993_v56 = vcombine.high %v157_v24, %v161_v51  ;;  %v209_v43 = vld [vmem:[%s7885_s1 + $0x5a8] sm:$0xff] }
  0xaa   :  { %3543 = vmatpush1.bf16.msra.mxu0 %v4930_v55  ;;  %v4986_v55 = vcombine.low %v150_v45, %v154_v46  ;;  %v206_v45 = vld [vmem:[%s7885_s1 + $0x590] sm:$0xff] }
  0xab   :  { %3544 = vmatprep.subr.bf16.mxu0 %v4939_v57  ;;  %v4995_v57 = vcombine.high %v158_v54, %v162_v26  ;;  %v210_v46 = vld [vmem:[%s7885_s1 + $0x5b0] sm:$0xff] }
  0xac   :  { %3373 = vmatpush1.bf16.msra.mxu1 %v4936_v2  ;;  %v4992_v2 = vcombine.low %v157_v24, %v161_v51  ;;  %v213_v24 = vld [vmem:[%s7885_s1 + $0x5c8] sm:$0xff] }
  0xad   :  { %3374 = vmatprep.subr.bf16.mxu1 %v4945_v4  ;;  %v5001_v4 = vcombine.high %v165_v60, %v169_v61  ;;  %v217_v51 = vld [vmem:[%s7885_s1 + $0x5e8] sm:$0xff] }
  0xae   :  { %3545 = vmatpush1.bf16.msra.mxu0 %v4938_v3  ;;  %v4994_v3 = vcombine.low %v158_v54, %v162_v26  ;;  %v214_v54 = vld [vmem:[%s7885_s1 + $0x5d0] sm:$0xff] }
  0xaf   :  { %3546 = vmatprep.subr.bf16.mxu0 %v4947_v5  ;;  %v5003_v5 = vcombine.high %v166_v63, %v170_v1  ;;  %v218_v26 = vld [vmem:[%s7885_s1 + $0x5f0] sm:$0xff] }
  0xb0   :  { %3375 = vmatpush1.bf16.msra.mxu1 %v4944_v10  ;;  %v5000_v10 = vcombine.low %v165_v60, %v169_v61  ;;  %v221_v60 = vld [vmem:[%s7885_s1 + $0x608] sm:$0xff] }
  0xb1   :  { %3376 = vmatprep.subr.bf16.mxu1 %v4953_v12  ;;  %v5009_v12 = vcombine.high %v173_v6, %v177_v7  ;;  %v225_v61 = vld [vmem:[%s7885_s1 + $0x628] sm:$0xff] }
  0xb2   :  { %3547 = vmatpush1.bf16.msra.mxu0 %v4946_v11  ;;  %v5002_v11 = vcombine.low %v166_v63, %v170_v1  ;;  %v222_v63 = vld [vmem:[%s7885_s1 + $0x610] sm:$0xff] }
  0xb3   :  { %3548 = vmatprep.subr.bf16.mxu0 %v4955_v13  ;;  %v5011_v13 = vcombine.high %v174_v8, %v178_v9  ;;  %v226_v1 = vld [vmem:[%s7885_s1 + $0x630] sm:$0xff] }
  0xb4   :  { %3377 = vmatpush1.bf16.msra.mxu1 %v4952_v18  ;;  %v5008_v18 = vcombine.low %v173_v6, %v177_v7  ;;  %v229_v6 = vld [vmem:[%s7885_s1 + $0x648] sm:$0xff] }
  0xb5   :  { %3378 = vmatprep.subr.bf16.mxu1 %v4961_v20  ;;  %v5017_v20 = vcombine.high %v181_v14, %v185_v15  ;;  %v233_v7 = vld [vmem:[%s7885_s1 + $0x668] sm:$0xff] }
  0xb6   :  { %3549 = vmatpush1.bf16.msra.mxu0 %v4954_v19  ;;  %v5010_v19 = vcombine.low %v174_v8, %v178_v9  ;;  %v230_v8 = vld [vmem:[%s7885_s1 + $0x650] sm:$0xff] }
  0xb7   :  { %3550 = vmatprep.subr.bf16.mxu0 %v4963_v22  ;;  %v5019_v22 = vcombine.high %v182_v16, %v186_v17  ;;  %v234_v9 = vld [vmem:[%s7885_s1 + $0x670] sm:$0xff] }
  0xb8   :  { %3379 = vmatpush1.bf16.msra.mxu1 %v4960_v59  ;;  %v5016_v59 = vcombine.low %v181_v14, %v185_v15  ;;  %v237_v14 = vld [vmem:[%s7885_s1 + $0x688] sm:$0xff] }
  0xb9   :  { %3380 = vmatprep.subr.bf16.mxu1 %v4969_v31  ;;  %v5025_v31 = vcombine.high %v189_v25, %v193_v27  ;;  %v241_v15 = vld [vmem:[%s7885_s1 + $0x6a8] sm:$0xff] }
  0xba   :  { %3551 = vmatpush1.bf16.msra.mxu0 %v4962_v62  ;;  %v5018_v62 = vcombine.low %v182_v16, %v186_v17  ;;  %v238_v16 = vld [vmem:[%s7885_s1 + $0x690] sm:$0xff] }
  0xbb   :  { %3552 = vmatprep.subr.bf16.mxu0 %v4971_v32  ;;  %v5027_v32 = vcombine.high %v190_v28, %v194_v29  ;;  %v242_v17 = vld [vmem:[%s7885_s1 + $0x6b0] sm:$0xff] }
  0xbc   :  { %3381 = vmatpush1.bf16.msra.mxu1 %v4968_v38  ;;  %v5024_v38 = vcombine.low %v189_v25, %v193_v27  ;;  %v245_v25 = vld [vmem:[%s7885_s1 + $0x6c8] sm:$0xff] }
  0xbd   :  { %3382 = vmatprep.subr.bf16.mxu1 %v4977_v40  ;;  %v5033_v40 = vcombine.high %v197_v34, %v201_v35  ;;  %v249_v27 = vld [vmem:[%s7885_s1 + $0x6e8] sm:$0xff] }
  0xbe   :  { %3553 = vmatpush1.bf16.msra.mxu0 %v4970_v39  ;;  %v5026_v39 = vcombine.low %v190_v28, %v194_v29  ;;  %v246_v28 = vld [vmem:[%s7885_s1 + $0x6d0] sm:$0xff] }
  0xbf   :  { %3554 = vmatprep.subr.bf16.mxu0 %v4979_v41  ;;  %v5035_v41 = vcombine.high %v198_v36, %v202_v37  ;;  %v250_v29 = vld [vmem:[%s7885_s1 + $0x6f0] sm:$0xff] }
  0xc0   :  { %3383 = vmatpush1.bf16.msra.mxu1 %v4976_v47  ;;  %v5032_v47 = vcombine.low %v197_v34, %v201_v35  ;;  %v253_v34 = vld [vmem:[%s7885_s1 + $0x708] sm:$0xff] }
  0xc1   :  { %3384 = vmatprep.subr.bf16.mxu1 %v4985_v50  ;;  %v5041_v50 = vcombine.high %v205_v42, %v209_v43  ;;  %v257_v35 = vld [vmem:[%s7885_s1 + $0x728] sm:$0xff] }
  0xc2   :  { %3555 = vmatpush1.bf16.msra.mxu0 %v4978_v49  ;;  %v5034_v49 = vcombine.low %v198_v36, %v202_v37  ;;  %v254_v36 = vld [vmem:[%s7885_s1 + $0x710] sm:$0xff] }
  0xc3   :  { %3556 = vmatprep.subr.bf16.mxu0 %v4987_v23  ;;  %v5043_v23 = vcombine.high %v206_v45, %v210_v46  ;;  %v258_v37 = vld [vmem:[%s7885_s1 + $0x730] sm:$0xff] }
  0xc4   :  { %3385 = vmatpush1.bf16.msra.mxu1 %v4984_v52  ;;  %v5040_v52 = vcombine.low %v205_v42, %v209_v43  ;;  %v261_v42 = vld [vmem:[%s7885_s1 + $0x748] sm:$0xff] }
  0xc5   :  { %3397 = vmatprep.subr.bf16.mxu1 %v4993_v56  ;;  %v5049_v56 = vcombine.high %v213_v24, %v217_v51  ;;  %v265_v43 = vld [vmem:[%s7885_s1 + $0x768] sm:$0xff] }
  0xc6   :  { %3557 = vmatpush1.bf16.msra.mxu0 %v4986_v55  ;;  %v5042_v55 = vcombine.low %v206_v45, %v210_v46  ;;  %v262_v45 = vld [vmem:[%s7885_s1 + $0x750] sm:$0xff] }
  0xc7   :  { %3569 = vmatprep.subr.bf16.mxu0 %v4995_v57  ;;  %3387 = vmatmul.mubr.bf16.vlgmr.msra.gmra.mrb[4].mxu1 %v6050_v21  ;;  %v5051_v57 = vcombine.high %v214_v54, %v218_v26  ;;  %v266_v46 = vld [vmem:[%s7885_s1 + $0x770] sm:$0xff] }
  0xc8   :  { %3398 = vmatpush1.bf16.msra.mxu1 %v4992_v2  ;;  %3429 = vmatprep.mubr.bf16.mxu1 %v6087_v30  ;;  %v5048_v2 = vcombine.low %v213_v24, %v217_v51  ;;  %v269_v24 = vld [vmem:[%s7885_s1 + $0x788] sm:$0xff] }
  0xc9   :  { %3559 = vmatmul.mubr.bf16.vlgmr.msra.gmra.mrb[4].mxu0 %v6050_v21  ;;  %3399 = vmatprep.subr.bf16.mxu1 %v5001_v4  ;;  %v5057_v4 = vcombine.high %v221_v60, %v225_v61  ;;  %v273_v51 = vld [vmem:[%s7885_s1 + $0x7a8] sm:$0xff] }
  0xca   :  { %3570 = vmatpush1.bf16.msra.mxu0 %v4994_v3  ;;  %3601 = vmatprep.mubr.bf16.mxu0 %v6087_v30  ;;  %v5050_v3 = vcombine.low %v214_v54, %v218_v26  ;;  %v270_v54 = vld [vmem:[%s7885_s1 + $0x790] sm:$0xff] }
  0xcb   :  { %3571 = vmatprep.subr.bf16.mxu0 %v5003_v5  ;;  %v5059_v5 = vcombine.high %v222_v63, %v226_v1  ;;  %v274_v26 = vld [vmem:[%s7885_s1 + $0x7b0] sm:$0xff] }
  0xcc   :  { %3400 = vmatpush1.bf16.msra.mxu1 %v5000_v10  ;;  %v5056_v10 = vcombine.low %v221_v60, %v225_v61  ;;  %v277_v60 = vld [vmem:[%s7885_s1 + $0x7c8] sm:$0xff] }
  0xcd   :  { %3401 = vmatprep.subr.bf16.mxu1 %v5009_v12  ;;  %v5065_v12 = vcombine.high %v229_v6, %v233_v7  ;;  %v281_v61 = vld [vmem:[%s7885_s1 + $0x7e8] sm:$0xff] }
  0xce   :  { %3572 = vmatpush1.bf16.msra.mxu0 %v5002_v11  ;;  %v5058_v11 = vcombine.low %v222_v63, %v226_v1  ;;  %v278_v63 = vld [vmem:[%s7885_s1 + $0x7d0] sm:$0xff] }
  0xcf   :  { %3573 = vmatprep.subr.bf16.mxu0 %v5011_v13  ;;  %v5067_v13 = vcombine.high %v230_v8, %v234_v9  ;;  %v282_v1 = vld [vmem:[%s7885_s1 + $0x7f0] sm:$0xff] }
  0xd0   :  { %3402 = vmatpush1.bf16.msra.mxu1 %v5008_v18  ;;  %v5064_v18 = vcombine.low %v229_v6, %v233_v7  ;;  %v285_v6 = vld [vmem:[%s7885_s1 + $0x808] sm:$0xff] }
  0xd1   :  { %3403 = vmatprep.subr.bf16.mxu1 %v5017_v20  ;;  %v5073_v20 = vcombine.high %v237_v14, %v241_v15  ;;  %v289_v7 = vld [vmem:[%s7885_s1 + $0x828] sm:$0xff] }
  0xd2   :  { %3574 = vmatpush1.bf16.msra.mxu0 %v5010_v19  ;;  %v5066_v19 = vcombine.low %v230_v8, %v234_v9  ;;  %v286_v8 = vld [vmem:[%s7885_s1 + $0x810] sm:$0xff] }
  0xd3   :  { %3575 = vmatprep.subr.bf16.mxu0 %v5019_v22  ;;  %v5075_v22 = vcombine.high %v238_v16, %v242_v17  ;;  %v290_v9 = vld [vmem:[%s7885_s1 + $0x830] sm:$0xff] }
  0xd4   :  { %3404 = vmatpush1.bf16.msra.mxu1 %v5016_v59  ;;  %v5072_v59 = vcombine.low %v237_v14, %v241_v15  ;;  %v293_v14 = vld [vmem:[%s7885_s1 + $0x848] sm:$0xff] }
  0xd5   :  { %3405 = vmatprep.subr.bf16.mxu1 %v5025_v31  ;;  %v5081_v31 = vcombine.high %v245_v25, %v249_v27  ;;  %v297_v15 = vld [vmem:[%s7885_s1 + $0x868] sm:$0xff] }
  0xd6   :  { %3576 = vmatpush1.bf16.msra.mxu0 %v5018_v62  ;;  %v5074_v62 = vcombine.low %v238_v16, %v242_v17  ;;  %v294_v16 = vld [vmem:[%s7885_s1 + $0x850] sm:$0xff] }
  0xd7   :  { %3577 = vmatprep.subr.bf16.mxu0 %v5027_v32  ;;  %v5083_v32 = vcombine.high %v246_v28, %v250_v29  ;;  %v298_v17 = vld [vmem:[%s7885_s1 + $0x870] sm:$0xff] }
  0xd8   :  { %3406 = vmatpush1.bf16.msra.mxu1 %v5024_v38  ;;  %v5080_v38 = vcombine.low %v245_v25, %v249_v27  ;;  %v305_v25 = vld [vmem:[%s7885_s1 + $0x8a8] sm:$0xff]  ;;  %v5131_v27 = vcombine.high %v294_v16, %v298_v17 }
  0xd9   :  { %3407 = vmatprep.subr.bf16.mxu1 %v5033_v40  ;;  %v5089_v40 = vcombine.high %v253_v34, %v257_v35 }
  0xda   :  { %3578 = vmatpush1.bf16.msra.mxu0 %v5026_v39  ;;  %v5082_v39 = vcombine.low %v246_v28, %v250_v29  ;;  %v302_v28 = vld [vmem:[%s7885_s1 + $0x890] sm:$0xff] }
  0xdb   :  { %3579 = vmatprep.subr.bf16.mxu0 %v5035_v41  ;;  %v5091_v41 = vcombine.high %v254_v36, %v258_v37  ;;  %v306_v29 = vld [vmem:[%s7885_s1 + $0x8b0] sm:$0xff] }
  0xdc   :  { %3408 = vmatpush1.bf16.msra.mxu1 %v5032_v47  ;;  %v5088_v47 = vcombine.low %v253_v34, %v257_v35  ;;  %v313_v34 = vld [vmem:[%s7885_s1 + $0x8e8] sm:$0xff]  ;;  %v5139_v35 = vcombine.high %v302_v28, %v306_v29 }
  0xdd   :  { %3409 = vmatprep.subr.bf16.mxu1 %v5041_v50  ;;  %v5097_v50 = vcombine.high %v261_v42, %v265_v43 }
  0xde   :  { %3580 = vmatpush1.bf16.msra.mxu0 %v5034_v49  ;;  %v5090_v49 = vcombine.low %v254_v36, %v258_v37  ;;  %v310_v36 = vld [vmem:[%s7885_s1 + $0x8d0] sm:$0xff] }
  0xdf   :  { %3581 = vmatprep.subr.bf16.mxu0 %v5043_v23  ;;  %v5099_v23 = vcombine.high %v262_v45, %v266_v46  ;;  %v314_v37 = vld [vmem:[%s7885_s1 + $0x8f0] sm:$0xff] }
  0xe0   :  { %3410 = vmatpush1.bf16.msra.mxu1 %v5040_v52  ;;  %v5096_v52 = vcombine.low %v261_v42, %v265_v43  ;;  %v321_v42 = vld [vmem:[%s7885_s1 + $0x928] sm:$0xff]  ;;  %v318_v43 = vld [vmem:[%s7885_s1 + $0x910] sm:$0xff] }
  0xe1   :  { %3411 = vmatprep.subr.bf16.mxu1 %v5049_v56  ;;  %v5105_v56 = vcombine.high %v269_v24, %v273_v51 }
  0xe2   :  { %3582 = vmatpush1.bf16.msra.mxu0 %v5042_v55  ;;  %v5098_v55 = vcombine.low %v262_v45, %v266_v46  ;;  %v5147_v45 = vcombine.high %v310_v36, %v314_v37  ;;  %v322_v46 = vld [vmem:[%s7885_s1 + $0x930] sm:$0xff] }
  0xe3   :  { %3583 = vmatprep.subr.bf16.mxu0 %v5051_v57  ;;  %v5107_v57 = vcombine.high %v270_v54, %v274_v26 }
  0xe4   :  { %3412 = vmatpush1.bf16.msra.mxu1 %v5048_v2  ;;  %v5104_v2 = vcombine.low %v269_v24, %v273_v51  ;;  %v329_v24 = vld [vmem:[%s7885_s1 + $0x968] sm:$0xff]  ;;  %v326_v51 = vld [vmem:[%s7885_s1 + $0x950] sm:$0xff] }
  0xe5   :  { %3413 = vmatprep.subr.bf16.mxu1 %v5057_v4  ;;  %v5113_v4 = vcombine.high %v277_v60, %v281_v61 }
  0xe6   :  { %3584 = vmatpush1.bf16.msra.mxu0 %v5050_v3  ;;  %v5106_v3 = vcombine.low %v270_v54, %v274_v26  ;;  %v5155_v54 = vcombine.high %v318_v43, %v322_v46  ;;  %v330_v26 = vld [vmem:[%s7885_s1 + $0x970] sm:$0xff] }
  0xe7   :  { %3585 = vmatprep.subr.bf16.mxu0 %v5059_v5  ;;  %v5115_v5 = vcombine.high %v278_v63, %v282_v1 }
  0xe8   :  { %3414 = vmatpush1.bf16.msra.mxu1 %v5056_v10  ;;  %v5112_v10 = vcombine.low %v277_v60, %v281_v61  ;;  %v337_v60 = vld [vmem:[%s7885_s1 + $0x9a8] sm:$0xff]  ;;  %v334_v61 = vld [vmem:[%s7885_s1 + $0x990] sm:$0xff] }
  0xe9   :  { %3415 = vmatprep.subr.bf16.mxu1 %v5065_v12  ;;  %v5121_v12 = vcombine.high %v285_v6, %v289_v7 }
  0xea   :  { %3586 = vmatpush1.bf16.msra.mxu0 %v5058_v11  ;;  %v5114_v11 = vcombine.low %v278_v63, %v282_v1  ;;  %v5163_v63 = vcombine.high %v326_v51, %v330_v26  ;;  %v338_v1 = vld [vmem:[%s7885_s1 + $0x9b0] sm:$0xff] }
  0xeb   :  { %3587 = vmatprep.subr.bf16.mxu0 %v5067_v13  ;;  %v5123_v13 = vcombine.high %v286_v8, %v290_v9 }
  0xec   :  { %3416 = vmatpush1.bf16.msra.mxu1 %v5064_v18  ;;  %v5120_v18 = vcombine.low %v285_v6, %v289_v7  ;;  %v345_v6 = vld [vmem:[%s7885_s1 + $0x9e8] sm:$0xff]  ;;  %v342_v7 = vld [vmem:[%s7885_s1 + $0x9d0] sm:$0xff] }
  0xed   :  { %3417 = vmatprep.subr.bf16.mxu1 %v5073_v20  ;;  %v5129_v20 = vcombine.high %v293_v14, %v297_v15 }
  0xee   :  { %3588 = vmatpush1.bf16.msra.mxu0 %v5066_v19  ;;  %v5122_v19 = vcombine.low %v286_v8, %v290_v9  ;;  %v5171_v8 = vcombine.high %v334_v61, %v338_v1  ;;  %v346_v9 = vld [vmem:[%s7885_s1 + $0x9f0] sm:$0xff] }
  0xef   :  { %3589 = vmatprep.subr.bf16.mxu0 %v5075_v22  ;;  %v301_v22 = vld [vmem:[%s7885_s1 + $0x888] sm:$0xff] }
  0xf0   :  { %3418 = vmatpush1.bf16.msra.mxu1 %v5072_v59  ;;  %v5128_v59 = vcombine.low %v293_v14, %v297_v15  ;;  %v353_v14 = vld [vmem:[%s7885_s1 + $0xa28] sm:$0xff]  ;;  %v350_v15 = vld [vmem:[%s7885_s1 + $0xa10] sm:$0xff] }
  0xf1   :  { %3419 = vmatprep.subr.bf16.mxu1 %v5081_v31  ;;  %v5137_v31 = vcombine.high %v301_v22, %v305_v25 }
  0xf2   :  { %3590 = vmatpush1.bf16.msra.mxu0 %v5074_v62  ;;  %v5130_v62 = vcombine.low %v294_v16, %v298_v17  ;;  %v5179_v16 = vcombine.high %v342_v7, %v346_v9  ;;  %v354_v17 = vld [vmem:[%s7885_s1 + $0xa30] sm:$0xff] }
  0xf3   :  { %3591 = vmatprep.subr.bf16.mxu0 %v5083_v32  ;;  %v309_v32 = vld [vmem:[%s7885_s1 + $0x8c8] sm:$0xff] }
  0xf4   :  { %3420 = vmatpush1.bf16.msra.mxu1 %v5080_v38  ;;  %v5136_v38 = vcombine.low %v301_v22, %v305_v25  ;;  %v357_v22 = vld [vmem:[%s7885_s1 + $0xa48] sm:$0xff] }
  0xf5   :  { %3421 = vmatprep.subr.bf16.mxu1 %v5089_v40  ;;  %v5145_v40 = vcombine.high %v309_v32, %v313_v34  ;;  %v361_v25 = vld [vmem:[%s7885_s1 + $0xa68] sm:$0xff] }
  0xf6   :  { %3592 = vmatpush1.bf16.msra.mxu0 %v5082_v39  ;;  %v5138_v39 = vcombine.low %v302_v28, %v306_v29  ;;  %v5187_v28 = vcombine.high %v350_v15, %v354_v17  ;;  %v362_v29 = vld [vmem:[%s7885_s1 + $0xa70] sm:$0xff] }
  0xf7   :  { %3593 = vmatprep.subr.bf16.mxu0 %v5091_v41  ;;  %v317_v41 = vld [vmem:[%s7885_s1 + $0x908] sm:$0xff] }
  0xf8   :  { %3422 = vmatpush1.bf16.msra.mxu1 %v5088_v47  ;;  %v5144_v47 = vcombine.low %v309_v32, %v313_v34  ;;  %v365_v32 = vld [vmem:[%s7885_s1 + $0xa88] sm:$0xff] }
  0xf9   :  { %3423 = vmatprep.subr.bf16.mxu1 %v5097_v50  ;;  %v5153_v50 = vcombine.high %v317_v41, %v321_v42  ;;  %v369_v34 = vld [vmem:[%s7885_s1 + $0xaa8] sm:$0xff] }
  0xfa   :  { %3594 = vmatpush1.bf16.msra.mxu0 %v5090_v49  ;;  %v5146_v49 = vcombine.low %v310_v36, %v314_v37  ;;  %v370_v37 = vld [vmem:[%s7885_s1 + $0xab0] sm:$0xff] }
  0xfb   :  { %3595 = vmatprep.subr.bf16.mxu0 %v5099_v23  ;;  %v325_v23 = vld [vmem:[%s7885_s1 + $0x948] sm:$0xff] }
  0xfc   :  { %3424 = vmatpush1.bf16.msra.mxu1 %v5096_v52  ;;  %v5152_v52 = vcombine.low %v317_v41, %v321_v42  ;;  %v373_v41 = vld [vmem:[%s7885_s1 + $0xac8] sm:$0xff] }
  0xfd   :  { %3425 = vmatprep.subr.bf16.mxu1 %v5105_v56  ;;  %v5161_v56 = vcombine.high %v325_v23, %v329_v24  ;;  %v377_v42 = vld [vmem:[%s7885_s1 + $0xae8] sm:$0xff] }
  0xfe   :  { %3596 = vmatpush1.bf16.msra.mxu0 %v5098_v55  ;;  %v5154_v55 = vcombine.low %v318_v43, %v322_v46  ;;  %v374_v43 = vld [vmem:[%s7885_s1 + $0xad0] sm:$0xff] }
  0xff   :  { %3597 = vmatprep.subr.bf16.mxu0 %v5107_v57  ;;  %v333_v57 = vld [vmem:[%s7885_s1 + $0x988] sm:$0xff]  ;;  %v378_v46 = vld [vmem:[%s7885_s1 + $0xaf0] sm:$0xff] }
 0x100   :  { %3426 = vmatpush1.bf16.msra.mxu1 %v5104_v2  ;;  %v5160_v2 = vcombine.low %v325_v23, %v329_v24  ;;  %v381_v23 = vld [vmem:[%s7885_s1 + $0xb08] sm:$0xff] }
 0x101   :  { %3427 = vmatprep.subr.bf16.mxu1 %v5113_v4  ;;  %v5169_v4 = vcombine.high %v333_v57, %v337_v60  ;;  %v385_v24 = vld [vmem:[%s7885_s1 + $0xb28] sm:$0xff] }
 0x102   :  { %3598 = vmatpush1.bf16.msra.mxu0 %v5106_v3  ;;  %v5162_v3 = vcombine.low %v326_v51, %v330_v26  ;;  %v382_v51 = vld [vmem:[%s7885_s1 + $0xb10] sm:$0xff] }
 0x103   :  { %3599 = vmatprep.subr.bf16.mxu0 %v5115_v5  ;;  %v341_v5 = vld [vmem:[%s7885_s1 + $0x9c8] sm:$0xff]  ;;  %v386_v26 = vld [vmem:[%s7885_s1 + $0xb30] sm:$0xff] }
 0x104   :  { %3428 = vmatpush1.bf16.msra.mxu1 %v5112_v10  ;;  %v5168_v10 = vcombine.low %v333_v57, %v337_v60  ;;  %v389_v57 = vld [vmem:[%s7885_s1 + $0xb48] sm:$0xff] }
 0x105   :  { %3440 = vmatprep.subr.bf16.mxu1 %v5121_v12  ;;  %v5177_v12 = vcombine.high %v341_v5, %v345_v6  ;;  %v393_v60 = vld [vmem:[%s7885_s1 + $0xb68] sm:$0xff] }
 0x106   :  { %3600 = vmatpush1.bf16.msra.mxu0 %v5114_v11  ;;  %v5170_v11 = vcombine.low %v334_v61, %v338_v1  ;;  %v390_v61 = vld [vmem:[%s7885_s1 + $0xb50] sm:$0xff] }
 0x107   :  { %3612 = vmatprep.subr.bf16.mxu0 %v5123_v13  ;;  %3430 = vmatmul.mubr.bf16.vlgmr.msra.gmra.mrb[4].mxu1 %v6279_v44  ;;  %v349_v13 = vld [vmem:[%s7885_s1 + $0xa08] sm:$0xff]  ;;  %v394_v1 = vld [vmem:[%s7885_s1 + $0xb70] sm:$0xff] }
 0x108   :  { %3441 = vmatpush1.bf16.msra.mxu1 %v5120_v18  ;;  %3472 = vmatprep.mubr.bf16.mxu1 %v5928_v0  ;;  %v5176_v18 = vcombine.low %v341_v5, %v345_v6  ;;  %v397_v5 = vld [vmem:[%s7885_s1 + $0xb88] sm:$0xff] }
 0x109   :  { %3602 = vmatmul.mubr.bf16.vlgmr.msra.gmra.mrb[4].mxu0 %v6279_v44  ;;  %3442 = vmatprep.subr.bf16.mxu1 %v5129_v20  ;;  %v5185_v20 = vcombine.high %v349_v13, %v353_v14  ;;  %v401_v6 = vld [vmem:[%s7885_s1 + $0xba8] sm:$0xff] }
 0x10a   :  { %3613 = vmatpush1.bf16.msra.mxu0 %v5122_v19  ;;  %3644 = vmatprep.mubr.bf16.mxu0 %v5928_v0  ;;  %v5178_v19 = vcombine.low %v342_v7, %v346_v9  ;;  %v398_v7 = vld [vmem:[%s7885_s1 + $0xb90] sm:$0xff] }
 0x10b   :  { %3614 = vmatprep.subr.bf16.mxu0 %v5131_v27  ;;  %v358_v27 = vld [vmem:[%s7885_s1 + $0xa50] sm:$0xff] }
 0x10c   :  { %3443 = vmatpush1.bf16.msra.mxu1 %v5128_v59  ;;  %v5184_v59 = vcombine.low %v349_v13, %v353_v14  ;;  %v5195_v36 = vcombine.high %v358_v27, %v362_v29  ;;  %v402_v9 = vld [vmem:[%s7885_s1 + $0xbb0] sm:$0xff]  ;;  %v405_v13 = vld [vmem:[%s7885_s1 + $0xbc8] sm:$0xff] }
 0x10d   :  { %3444 = vmatprep.subr.bf16.mxu1 %v5137_v31  ;;  %v5193_v31 = vcombine.high %v357_v22, %v361_v25  ;;  %v409_v14 = vld [vmem:[%s7885_s1 + $0xbe8] sm:$0xff] }
 0x10e   :  { %3615 = vmatpush1.bf16.msra.mxu0 %v5130_v62  ;;  %v5186_v62 = vcombine.low %v350_v15, %v354_v17  ;;  %v406_v15 = vld [vmem:[%s7885_s1 + $0xbd0] sm:$0xff] }
 0x10f   :  { %3616 = vmatprep.subr.bf16.mxu0 %v5139_v35  ;;  %v366_v35 = vld [vmem:[%s7885_s1 + $0xa90] sm:$0xff] }
 0x110   :  { %3445 = vmatpush1.bf16.msra.mxu1 %v5136_v38  ;;  %v5192_v38 = vcombine.low %v357_v22, %v361_v25  ;;  %v410_v17 = vld [vmem:[%s7885_s1 + $0xbf0] sm:$0xff]  ;;  %v413_v22 = vld [vmem:[%s7885_s1 + $0xc08] sm:$0xff] }
 0x111   :  { %3446 = vmatprep.subr.bf16.mxu1 %v5145_v40  ;;  %v5201_v40 = vcombine.high %v365_v32, %v369_v34  ;;  %v417_v25 = vld [vmem:[%s7885_s1 + $0xc28] sm:$0xff] }
 0x112   :  { %3617 = vmatpush1.bf16.msra.mxu0 %v5138_v39  ;;  %v5194_v39 = vcombine.low %v358_v27, %v362_v29  ;;  %v414_v27 = vld [vmem:[%s7885_s1 + $0xc10] sm:$0xff] }
 0x113   :  { %3618 = vmatprep.subr.bf16.mxu0 %v5147_v45  ;;  %v5203_v45 = vcombine.high %v366_v35, %v370_v37  ;;  %v418_v29 = vld [vmem:[%s7885_s1 + $0xc30] sm:$0xff] }
 0x114   :  { %3447 = vmatpush1.bf16.msra.mxu1 %v5144_v47  ;;  %v5200_v47 = vcombine.low %v365_v32, %v369_v34  ;;  %v421_v32 = vld [vmem:[%s7885_s1 + $0xc48] sm:$0xff] }
 0x115   :  { %3448 = vmatprep.subr.bf16.mxu1 %v5153_v50  ;;  %v5209_v50 = vcombine.high %v373_v41, %v377_v42  ;;  %v425_v34 = vld [vmem:[%s7885_s1 + $0xc68] sm:$0xff] }
 0x116   :  { %3619 = vmatpush1.bf16.msra.mxu0 %v5146_v49  ;;  %v5202_v49 = vcombine.low %v366_v35, %v370_v37  ;;  %v422_v35 = vld [vmem:[%s7885_s1 + $0xc50] sm:$0xff] }
 0x117   :  { %3620 = vmatprep.subr.bf16.mxu0 %v5155_v54  ;;  %v5211_v54 = vcombine.high %v374_v43, %v378_v46  ;;  %v426_v37 = vld [vmem:[%s7885_s1 + $0xc70] sm:$0xff] }
 0x118   :  { %3449 = vmatpush1.bf16.msra.mxu1 %v5152_v52  ;;  %v5208_v52 = vcombine.low %v373_v41, %v377_v42  ;;  %v5259_v41 = vcombine.high %v422_v35, %v426_v37  ;;  %v429_v42 = vld [vmem:[%s7885_s1 + $0xc88] sm:$0xff] }
 0x119   :  { %3450 = vmatprep.subr.bf16.mxu1 %v5161_v56  ;;  %v5217_v56 = vcombine.high %v381_v23, %v385_v24 }
 0x11a   :  { %3621 = vmatpush1.bf16.msra.mxu0 %v5154_v55  ;;  %v5210_v55 = vcombine.low %v374_v43, %v378_v46  ;;  %v433_v43 = vld [vmem:[%s7885_s1 + $0xca8] sm:$0xff]  ;;  %v434_v46 = vld [vmem:[%s7885_s1 + $0xcb0] sm:$0xff] }
 0x11b   :  { %3622 = vmatprep.subr.bf16.mxu0 %v5163_v63  ;;  %v5219_v63 = vcombine.high %v382_v51, %v386_v26 }
 0x11c   :  { %3451 = vmatpush1.bf16.msra.mxu1 %v5160_v2  ;;  %v5216_v2 = vcombine.low %v381_v23, %v385_v24  ;;  %v437_v24 = vld [vmem:[%s7885_s1 + $0xcc8] sm:$0xff] }
 0x11d   :  { %3452 = vmatprep.subr.bf16.mxu1 %v5169_v4  ;;  %v5225_v4 = vcombine.high %v389_v57, %v393_v60 }
 0x11e   :  { %3623 = vmatpush1.bf16.msra.mxu0 %v5162_v3  ;;  %v5218_v3 = vcombine.low %v382_v51, %v386_v26  ;;  %v441_v51 = vld [vmem:[%s7885_s1 + $0xce8] sm:$0xff]  ;;  %v442_v26 = vld [vmem:[%s7885_s1 + $0xcf0] sm:$0xff] }
 0x11f   :  { %3624 = vmatprep.subr.bf16.mxu0 %v5171_v8  ;;  %v5227_v8 = vcombine.high %v390_v61, %v394_v1 }
 0x120   :  { %3453 = vmatpush1.bf16.msra.mxu1 %v5168_v10  ;;  %v5224_v10 = vcombine.low %v389_v57, %v393_v60  ;;  %v5273_v57 = vcombine.high %v437_v24, %v441_v51 }
 0x121   :  { %3454 = vmatprep.subr.bf16.mxu1 %v5177_v12  ;;  %v5233_v12 = vcombine.high %v397_v5, %v401_v6 }
 0x122   :  { %3625 = vmatpush1.bf16.msra.mxu0 %v5170_v11  ;;  %v5226_v11 = vcombine.low %v390_v61, %v394_v1  ;;  %v445_v61 = vld [vmem:[%s7885_s1 + $0xd08] sm:$0xff]  ;;  %v446_v1 = vld [vmem:[%s7885_s1 + $0xd10] sm:$0xff] }
 0x123   :  { %3626 = vmatprep.subr.bf16.mxu0 %v5179_v16  ;;  %v5235_v16 = vcombine.high %v398_v7, %v402_v9 }
 0x124   :  { %3455 = vmatpush1.bf16.msra.mxu1 %v5176_v18  ;;  %v5232_v18 = vcombine.low %v397_v5, %v401_v6 }
 0x125   :  { %3456 = vmatprep.subr.bf16.mxu1 %v5185_v20  ;;  %v5241_v20 = vcombine.high %v405_v13, %v409_v14 }
 0x126   :  { %3627 = vmatpush1.bf16.msra.mxu0 %v5178_v19  ;;  %v5234_v19 = vcombine.low %v398_v7, %v402_v9  ;;  %v457_v9 = vld [vmem:[%s7885_s1 + $0xd68] sm:$0xff] }
 0x127   :  { %3628 = vmatprep.subr.bf16.mxu0 %v5187_v28  ;;  %v5243_v28 = vcombine.high %v406_v15, %v410_v17 }
 0x128   :  { %3457 = vmatpush1.bf16.msra.mxu1 %v5184_v59  ;;  %v5240_v59 = vcombine.low %v405_v13, %v409_v14  ;;  %v540_v14 = vld [vmem:[%s7888_s2] sm:$0xff] }
 0x129   :  { %3458 = vmatprep.subr.bf16.mxu1 %v5193_v31  ;;  %v5249_v31 = vcombine.high %v413_v22, %v417_v25 }
 0x12a   :  { %3629 = vmatpush1.bf16.msra.mxu0 %v5186_v62  ;;  %v5242_v62 = vcombine.low %v406_v15, %v410_v17 }
 0x12b   :  { %3630 = vmatprep.subr.bf16.mxu0 %v5195_v36  ;;  %v5251_v36 = vcombine.high %v414_v27, %v418_v29 }
 0x12c   :  { %3459 = vmatpush1.bf16.msra.mxu1 %v5192_v38  ;;  %v5248_v38 = vcombine.low %v413_v22, %v417_v25  ;;  %v462_v25 = vld [vmem:[%s7885_s1 + $0xd90] sm:$0xff] }
 0x12d   :  { %3460 = vmatprep.subr.bf16.mxu1 %v5201_v40  ;;  %v5257_v40 = vcombine.high %v421_v32, %v425_v34 }
 0x12e   :  { %3631 = vmatpush1.bf16.msra.mxu0 %v5194_v39  ;;  %v5250_v39 = vcombine.low %v414_v27, %v418_v29  ;;  %v466_v27 = vld [vmem:[%s7885_s1 + $0xdb0] sm:$0xff] }
 0x12f   :  { %3632 = vmatprep.subr.bf16.mxu0 %v5203_v45  ;;  %v430_v45 = vld [vmem:[%s7885_s1 + $0xc90] sm:$0xff] }
 0x130   :  { %3461 = vmatpush1.bf16.msra.mxu1 %v5200_v47  ;;  %v5256_v47 = vcombine.low %v421_v32, %v425_v34  ;;  %v5267_v23 = vcombine.high %v430_v45, %v434_v46  ;;  %v5299_v32 = vcombine.high %v462_v25, %v466_v27  ;;  %v469_v34 = vld [vmem:[%s7885_s1 + $0xdc8] sm:$0xff] }
 0x131   :  { %3462 = vmatprep.subr.bf16.mxu1 %v5209_v50  ;;  %v5265_v50 = vcombine.high %v429_v42, %v433_v43 }
 0x132   :  { %3633 = vmatpush1.bf16.msra.mxu0 %v5202_v49  ;;  %v5258_v49 = vcombine.low %v422_v35, %v426_v37  ;;  %v473_v35 = vld [vmem:[%s7885_s1 + $0xde8] sm:$0xff] }
 0x133   :  { %3634 = vmatprep.subr.bf16.mxu0 %v5211_v54  ;;  %v438_v54 = vld [vmem:[%s7885_s1 + $0xcd0] sm:$0xff] }
 0x134   :  { %3463 = vmatpush1.bf16.msra.mxu1 %v5208_v52  ;;  %v542_v52 = vlaneseq  ;;  %v5275_v60 = vcombine.high %v438_v54, %v442_v26  ;;  %v5274_v5 = vcombine.low %v438_v54, %v442_v26 }
 0x135   :  { %3464 = vmatprep.subr.bf16.mxu1 %v5217_v56  ;;  %v5266_v56 = vcombine.low %v430_v45, %v434_v46  ;;  %v5298_v46 = vcombine.low %v462_v25, %v466_v27  ;;  %v493_v25 = vld [vmem:[%s7885_s1 + $0xe88] sm:$0xff] }
 0x136   :  { %3635 = vmatpush1.bf16.msra.mxu0 %v5210_v55  ;;  %v5264_v55 = vcombine.low %v429_v42, %v433_v43  ;;  %v497_v27 = vld [vmem:[%s7885_s1 + $0xea8] sm:$0xff] }
 0x137   :  { %3636 = vmatprep.subr.bf16.mxu0 %v5219_v63  ;;  %v449_v63 = vld [vmem:[%s7885_s1 + $0xd28] sm:$0xff] }
 0x138   :  { %3465 = vmatpush1.bf16.msra.mxu1 %v5216_v2  ;;  %v450_v2 = vld [vmem:[%s7885_s1 + $0xd30] sm:$0xff]  ;;  %v5281_v6 = vcombine.high %v445_v61, %v449_v63  ;;  %v5280_v13 = vcombine.low %v445_v61, %v449_v63 }
 0x139   :  { %3466 = vmatprep.subr.bf16.mxu1 %v5225_v4  ;;  %v5272_v4 = vcombine.low %v437_v24, %v441_v51  ;;  %v5283_v7 = vcombine.high %v446_v1, %v450_v2  ;;  %v5305_v24 = vcombine.high %v469_v34, %v473_v35  ;;  %v482_v61 = vld [vmem:[%s7885_s1 + $0xe30] sm:$0xff] }
 0x13a   :  { %3637 = vmatpush1.bf16.msra.mxu0 %v5218_v3  ;;  %v6919_v3 = vshrl.u32 %v542_v52, 7 }
 0x13b   :  { %3638 = vmatprep.subr.bf16.mxu0 %v5227_v8  ;;  %v453_v8 = vld [vmem:[%s7885_s1 + $0xd48] sm:$0xff] }
 0x13c   :  { %3467 = vmatpush1.bf16.msra.mxu1 %v5224_v10  ;;  %v544_v10 = vsub.s32 0, %v6919_v3  ;;  %v548_v15 = vsub.s32 1, %v6919_v3  ;;  %v5289_v17 = vcombine.high %v453_v8, %v457_v9  ;;  %v5288_v29 = vcombine.low %v453_v8, %v457_v9 }
 0x13d   :  { %3468 = vmatprep.subr.bf16.mxu1 %v5233_v12  ;;  %v458_v12 = vld [vmem:[%s7885_s1 + $0xd70] sm:$0xff] }
 0x13e   :  { %3639 = vmatpush1.bf16.msra.mxu0 %v5226_v11  ;;  %v454_v11 = vld [vmem:[%s7885_s1 + $0xd50] sm:$0xff]  ;;  %v545_v22 = vrot.slane %v540_v14, %v544_v10 }
 0x13f   :  { %3640 = vmatprep.subr.bf16.mxu0 %v5235_v16  ;;  %v5282_v16 = vcombine.low %v446_v1, %v450_v2  ;;  %v5304_v1 = vcombine.low %v469_v34, %v473_v35  ;;  %v501_v34 = vld [vmem:[%s7885_s1 + $0xec8] sm:$0xff] }
 0x140   :  { %3469 = vmatpush1.bf16.msra.mxu1 %v5232_v18  ;;  %v5291_v18 = vcombine.high %v454_v11, %v458_v12  ;;  %v505_v35 = vld [vmem:[%s7885_s1 + $0xee8] sm:$0xff] }
 0x141   :  { %3470 = vmatprep.subr.bf16.mxu1 %v5241_v20  ;;  %v465_v20 = vld [vmem:[%s7885_s1 + $0xda8] sm:$0xff] }
 0x142   :  { %3641 = vmatpush1.bf16.msra.mxu0 %v5234_v19  ;;  %v461_v19 = vld [vmem:[%s7885_s1 + $0xd88] sm:$0xff] }
 0x143   :  { %3642 = vmatprep.subr.bf16.mxu0 %v5243_v28  ;;  %v549_v28 = vrot.slane %v540_v14, %v548_v15  ;;  %v5296_v45 = vcombine.low %v461_v19, %v465_v20  ;;  %v486_v14 = vld [vmem:[%s7885_s1 + $0xe50] sm:$0xff] }
 0x144   :  { %3471 = vmatpush1.bf16.msra.mxu1 %v5240_v59  ;;  %v5290_v59 = vcombine.low %v454_v11, %v458_v12  ;;  %v485_v11 = vld [vmem:[%s7885_s1 + $0xe48] sm:$0xff] }
 0x145   :  { %3483 = vmatprep.subr.bf16.mxu1 %v5249_v31  ;;  %v489_v12 = vld [vmem:[%s7885_s1 + $0xe68] sm:$0xff] }
 0x146   :  { %3643 = vmatpush1.bf16.msra.mxu0 %v5242_v62  ;;  %v5297_v62 = vcombine.high %v461_v19, %v465_v20  ;;  %v5321_v20 = vcombine.high %v485_v11, %v489_v12 }
 0x147   :  { %3655 = vmatprep.subr.bf16.mxu0 %v5251_v36  ;;  %3473 = vmatmul.mubr.bf16.vlgmr.msra.gmra.mrb[4].mxu1 %v6067_v53 }
 0x148   :  { %3484 = vmatpush1.bf16.msra.mxu1 %v5248_v38  ;;  %3515 = vmatprep.mubr.bf16.mxu1 %v6098_v33 }
 0x149   :  { %3645 = vmatmul.mubr.bf16.vlgmr.msra.gmra.mrb[4].mxu0 %v6067_v53  ;;  %3485 = vmatprep.subr.bf16.mxu1 %v5257_v40  ;;  %v474_v40 = vld [vmem:[%s7885_s1 + $0xdf0] sm:$0xff] }
 0x14a   :  { %3656 = vmatpush1.bf16.msra.mxu0 %v5250_v39  ;;  %3687 = vmatprep.mubr.bf16.mxu0 %v6098_v33  ;;  %v470_v39 = vld [vmem:[%s7885_s1 + $0xdd0] sm:$0xff] }
 0x14b   :  { %3657 = vmatprep.subr.bf16.mxu0 %v5259_v41  ;;  %v5307_v52 = vcombine.high %v470_v39, %v474_v40 }
 0x14c   :  { %3486 = vmatpush1.bf16.msra.mxu1 %v5256_v47 }
 0x14d   :  { %3487 = vmatprep.subr.bf16.mxu1 %v5265_v50 }
 0x14e   :  { %3658 = vmatpush1.bf16.msra.mxu0 %v5258_v49 }
 0x14f   :  { %3659 = vmatprep.subr.bf16.mxu0 %v5267_v23 }
 0x150   :  { %3488 = vmatpush1.bf16.msra.mxu1 %v5264_v55  ;;  %v477_v55 = vld [vmem:[%s7885_s1 + $0xe08] sm:$0xff] }
 0x151   :  { %3489 = vmatprep.subr.bf16.mxu1 %v5273_v57 }
 0x152   :  { %3660 = vmatpush1.bf16.msra.mxu0 %v5266_v56  ;;  %v481_v56 = vld [vmem:[%s7885_s1 + $0xe28] sm:$0xff] }
 0x153   :  { %3661 = vmatprep.subr.bf16.mxu0 %v5275_v60  ;;  %v478_v60 = vld [vmem:[%s7885_s1 + $0xe10] sm:$0xff] }
 0x154   :  { %3490 = vmatpush1.bf16.msra.mxu1 %v5272_v4  ;;  %v5315_v9 = vcombine.high %v478_v60, %v482_v61  ;;  %v5314_v19 = vcombine.low %v478_v60, %v482_v61  ;;  %v525_v60 = vld [vmem:[%s7885_s1 + $0xf88] sm:$0xff] }
 0x155   :  { %3491 = vmatprep.subr.bf16.mxu1 %v5281_v6  ;;  %v5313_v6 = vcombine.high %v477_v55, %v481_v56  ;;  %v529_v61 = vld [vmem:[%s7885_s1 + $0xfa8] sm:$0xff] }
 0x156   :  { %3662 = vmatpush1.bf16.msra.mxu0 %v5274_v5  ;;  %v5306_v5 = vcombine.low %v470_v39, %v474_v40  ;;  %v5337_v40 = vcombine.high %v501_v34, %v505_v35 }
 0x157   :  { %3663 = vmatprep.subr.bf16.mxu0 %v5283_v7 }
 0x158   :  { %3492 = vmatpush1.bf16.msra.mxu1 %v5280_v13 }
 0x159   :  { %3493 = vmatprep.subr.bf16.mxu1 %v5289_v17 }
 0x15a   :  { %3664 = vmatpush1.bf16.msra.mxu0 %v5282_v16  ;;  %v3259_v31 = vpop.f32.mrb[0].mxu1  ;;  %v490_v16 = vld [vmem:[%s7885_s1 + $0xe70] sm:$0xff] }
 0x15b   :  { %3665 = vmatprep.subr.bf16.mxu0 %v5291_v18  ;;  %v5502_v36 = vadd.f32 %v3259_v31, %v545_v22  ;;  %v3261_v37 = vpop.f32.mrb[1].mxu1  ;;  %v5312_v18 = vcombine.low %v477_v55, %v481_v56  ;;  %v5329_v31 = vcombine.high %v493_v25, %v497_v27 }
 0x15c   :  { %v3345_v38 = vpop.f32.mrb[0].mxu0  ;;  %v5504_v41 = vadd.f32 %v3261_v37, %v549_v28  ;;  %v3263_v42 = vpop.f32.mrb[2].mxu1  ;;  %3494 = vmatpush1.bf16.msra.mxu1 %v5288_v29  ;;  %v498_v29 = vld [vmem:[%s7885_s1 + $0xeb0] sm:$0xff] }
 0x15d   :  { %v3347_v43 = vpop.f32.mrb[1].mxu0  ;;  %v5506_v47 = vadd.f32 %v3263_v42, %v545_v22  ;;  %v5503_v49 = vadd.f32 %v5502_v36, %v3345_v38  ;;  %v3265_v50 = vpop.f32.mrb[3].mxu1  ;;  %3495 = vmatprep.subr.bf16.mxu1 %v5297_v62  ;;  %v5323_v22 = vcombine.high %v486_v14, %v490_v16  ;;  %v5322_v62 = vcombine.low %v486_v14, %v490_v16  ;;  %v502_v36 = vld [vmem:[%s7885_s1 + $0xed0] sm:$0xff]  ;;  %v509_v42 = vld [vmem:[%s7885_s1 + $0xf08] sm:$0xff] }
 0x15e   :  { %3666 = vmatpush1.bf16.msra.mxu0 %v5290_v59  ;;  %v3349_v23 = vpop.f32.mrb[2].mxu0  ;;  %v5508_v51 = vadd.f32 %v3265_v50, %v549_v28  ;;  %v5505_v54 = vadd.f32 %v5504_v41, %v3347_v43  ;;  %v494_v28 = vld [vmem:[%s7885_s1 + $0xe90] sm:$0xff]  ;;  %v5320_v59 = vcombine.low %v485_v11, %v489_v12  ;;  %v5328_v38 = vcombine.low %v493_v25, %v497_v27  ;;  %v513_v43 = vld [vmem:[%s7885_s1 + $0xf28] sm:$0xff] }
 0x15f   :  { %v3351_v26 = vpop.f32.mrb[3].mxu0  ;;  %3667 = vmatprep.subr.bf16.mxu0 %v5299_v32  ;;  %v5507_v57 = vadd.f32 %v5506_v47, %v3349_v23  ;;  %v3870_v2 = vmax.f32 %v5503_v49, 0.0  ;;  %v5331_v32 = vcombine.high %v494_v28, %v498_v29  ;;  %v506_v37 = vld [vmem:[%s7885_s1 + $0xef0] sm:$0xff]  ;;  %v5330_v39 = vcombine.low %v494_v28, %v498_v29  ;;  %v5584_v28 = vld [vmem:[%s7887_s3 + $0x4] ss:$8 sps:$4 sm:$0xff]   ;;  %v39_v29 = vld [vmem:[%s7885_s1 + $0x58] sm:$0xff] }
 0x160   :  { %v5509_v63 = vadd.f32 %v5508_v51, %v3351_v26  ;;  %3496 = vmatpush1.bf16.msra.mxu1 %v5296_v45  ;;  %v3871_v7 = vmax.f32 %v5505_v54, 0.0  ;;  %v5339_v41 = vcombine.high %v502_v36, %v506_v37  ;;  %v510_v45 = vld [vmem:[%s7885_s1 + $0xf10] sm:$0xff]  ;;  %v5336_v47 = vcombine.low %v501_v34, %v505_v35  ;;  %v521_v51 = vld [vmem:[%s7885_s1 + $0xf68] sm:$0xff]  ;;  %v47_v35 = vld [vmem:[%s7885_s1 + $0x98] sm:$0xff] }
 0x161   :  { %v3878_v4 = vmax.f32 %v5507_v57, 0.0  ;;  %3497 = vmatprep.subr.bf16.mxu1 %v5305_v24  ;;  %v5338_v49 = vcombine.low %v502_v36, %v506_v37  ;;  %v5345_v50 = vcombine.high %v509_v42, %v513_v43  ;;  %v517_v24 = vld [vmem:[%s7885_s1 + $0xf48] sm:$0xff]  ;;  %v518_v54 = vld [vmem:[%s7885_s1 + $0xf50] sm:$0xff]  ;;  %v5360_v12 = vcombine.low %v525_v60, %v529_v61  ;;  %v51_v36 = vld [vmem:[%s7885_s1 + $0xb8] sm:$0xff] }
 0x162   :  { %3668 = vmatpush1.bf16.msra.mxu0 %v5298_v46  ;;  %v3879_v8 = vmax.f32 %v5509_v63, 0.0  ;;  %v514_v46 = vld [vmem:[%s7885_s1 + $0xf30] sm:$0xff]  ;;  %v5353_v56 = vcombine.high %v517_v24, %v521_v51 }
 0x163   :  { %3669 = vmatprep.subr.bf16.mxu0 %v5307_v52  ;;  %v6984_v13 = vpack.c.bf16 %v3878_v4, %v3870_v2  ;;  %v5347_v23 = vcombine.high %v510_v45, %v514_v46  ;;  %v522_v26 = vld [vmem:[%s7885_s1 + $0xf70] sm:$0xff]  ;;  %v5344_v52 = vcombine.low %v509_v42, %v513_v43  ;;  %v5346_v55 = vcombine.low %v510_v45, %v514_v46  ;;  %v59_v42 = vld [vmem:[%s7885_s1 + $0xf8] sm:$0xff]  ;;  %v5588_v43 = vld [vmem:[%s7887_s3 + $0x20] ss:$8 sps:$4 sm:$0xff]  }
 0x164   :  { %v6992_v17 = vpack.c.bf16 %v3879_v8, %v3871_v7  ;;  %3498 = vmatpush1.bf16.msra.mxu1 %v5304_v1  ;;  %v5355_v57 = vcombine.high %v518_v54, %v522_v26  ;;  %v526_v63 = vld [vmem:[%s7885_s1 + $0xf90] sm:$0xff]  ;;  %v5352_v2 = vcombine.low %v517_v24, %v521_v51  ;;  %v5354_v4 = vcombine.low %v518_v54, %v522_v26  ;;  %v533_v7 = vld [vmem:[%s7885_s1 + $0xfc8] sm:$0xff]  ;;  %v71_v51 = vld [vmem:[%s7885_s1 + $0x158] sm:$0xff] }
 0x165   :  { %3499 = vmatprep.subr.bf16.mxu1 %v5313_v6  ;;  %v530_v1 = vld [vmem:[%s7885_s1 + $0xfb0] sm:$0xff]  ;;  %v537_v8 = vld [vmem:[%s7885_s1 + $0xfe8] sm:$0xff]  ;;  %v75_v54 = vld [vmem:[%s7885_s1 + $0x178] sm:$0xff] }
 0x166   :  { %3670 = vmatpush1.bf16.msra.mxu0 %v5306_v5  ;;  %v5361_v5 = vcombine.high %v525_v60, %v529_v61  ;;  %v5363_v6 = vcombine.high %v526_v63, %v530_v1  ;;  %v538_v11 = vld [vmem:[%s7885_s1 + $0xff0] sm:$0xff]  ;;  %v5362_v14 = vcombine.low %v526_v63, %v530_v1  ;;  %v5369_v16 = vcombine.high %v533_v7, %v537_v8  ;;  %v5596_v24 = vld [vmem:[%s7887_s3 + $0x44] ss:$8 sps:$4 sm:$0xff]   ;;  %v83_v60 = vld [vmem:[%s7885_s1 + $0x1b8] sm:$0xff] }
 0x167   :  { %3671 = vmatprep.subr.bf16.mxu0 %v5315_v9  ;;  %v534_v9 = vld [vmem:[%s7885_s1 + $0xfd0] sm:$0xff]  ;;  %v4908_v61 = vcombine.low %v71_v51, %v75_v54 }
 0x168   :  { %3500 = vmatpush1.bf16.msra.mxu1 %v5312_v18  ;;  %v5371_v18 = vcombine.high %v534_v9, %v538_v11  ;;  %v5370_v25 = vcombine.low %v534_v9, %v538_v11  ;;  %v5587_v34 = vld [vmem:[%s7887_s3 + $0x14] ss:$8 sps:$4 sm:$0xff]   ;;  %v5597_v63 = vld [vmem:[%s7887_s3 + $0x50] ss:$8 sps:$4 sm:$0xff]  }
 0x169   :  { %3501 = vmatprep.subr.bf16.mxu1 %v5321_v20  ;;  %v35_v20 = vld [vmem:[%s7885_s1 + $0x38] sm:$0xff] }
 0x16a   :  { %3672 = vmatpush1.bf16.msra.mxu0 %v5314_v19  ;;  %v31_v19 = vld [vmem:[%s7885_s1 + $0x18] sm:$0xff] }
 0x16b   :  { %3673 = vmatprep.subr.bf16.mxu0 %v5323_v22  ;;  %v5368_v22 = vcombine.low %v533_v7, %v537_v8  ;;  %v4869_v27 = vcombine.high %v31_v19, %v35_v20  ;;  %v5593_v46 = vld [vmem:[%s7887_s3 + $0x34] ss:$8 sps:$4 sm:$0xff]   ;;  %v5600_v7 = vld [vmem:[%s7887_s3 + $0x60] ss:$8 sps:$4 sm:$0xff]  }
 0x16c   :  { %3502 = vmatpush1.bf16.msra.mxu1 %v5320_v59  ;;  %v43_v59 = vld [vmem:[%s7885_s1 + $0x78] sm:$0xff] }
 0x16d   :  { %3503 = vmatprep.subr.bf16.mxu1 %v5329_v31  ;;  %v5582_v31 = vld [vmem:[%s7887_s3] ss:$8 sps:$4 sm:$0xff]   ;;  %v4876_v37 = vcombine.low %v39_v29, %v43_v59  ;;  %v5605_v9 = vld [vmem:[%s7887_s3 + $0x74] ss:$8 sps:$4 sm:$0xff]  }
 0x16e   :  { %3674 = vmatpush1.bf16.msra.mxu0 %v5322_v62  ;;  %v4868_v62 = vcombine.low %v31_v19, %v35_v20  ;;  %v95_v11 = vld [vmem:[%s7885_s1 + $0x218] sm:$0xff]  ;;  %v5608_v19 = vld [vmem:[%s7887_s3 + $0x84] ss:$8 sps:$4 sm:$0xff]  }
 0x16f   :  { %3675 = vmatprep.subr.bf16.mxu0 %v5331_v32  ;;  %v4877_v32 = vcombine.high %v39_v29, %v43_v59  ;;  %v103_v20 = vld [vmem:[%s7885_s1 + $0x258] sm:$0xff] }
 0x170   :  { %3504 = vmatpush1.bf16.msra.mxu1 %v5328_v38  ;;  %v5585_v38 = vld [vmem:[%s7887_s3 + $0x10] ss:$8 sps:$4 sm:$0xff]   ;;  %v5611_v29 = vld [vmem:[%s7887_s3 + $0x94] ss:$8 sps:$4 sm:$0xff]  }
 0x171   :  { %3505 = vmatprep.subr.bf16.mxu1 %v5337_v40  ;;  %v5590_v40 = vld [vmem:[%s7887_s3 + $0x24] ss:$8 sps:$4 sm:$0xff]   ;;  %v111_v59 = vld [vmem:[%s7885_s1 + $0x298] sm:$0xff] }
 0x172   :  { %3676 = vmatpush1.bf16.msra.mxu0 %v5330_v39  ;;  %v4885_v39 = vcombine.high %v47_v35, %v51_v36 }
 0x173   :  { %3677 = vmatprep.subr.bf16.mxu0 %v5339_v41  ;;  %v55_v41 = vld [vmem:[%s7885_s1 + $0xd8] sm:$0xff] }
 0x174   :  { %3506 = vmatpush1.bf16.msra.mxu1 %v5336_v47  ;;  %v4893_v45 = vcombine.high %v55_v41, %v59_v42  ;;  %v63_v47 = vld [vmem:[%s7885_s1 + $0x118] sm:$0xff] }
 0x175   :  { %3507 = vmatprep.subr.bf16.mxu1 %v5345_v50  ;;  %v5591_v50 = vld [vmem:[%s7887_s3 + $0x30] ss:$8 sps:$4 sm:$0xff]  }
 0x176   :  { %3678 = vmatpush1.bf16.msra.mxu0 %v5338_v49  ;;  %v4892_v49 = vcombine.low %v55_v41, %v59_v42  ;;  %v5617_v41 = vld [vmem:[%s7887_s3 + $0xb4] ss:$8 sps:$4 sm:$0xff]  }
 0x177   :  { %3679 = vmatprep.subr.bf16.mxu0 %v5347_v23  ;;  %v127_v42 = vld [vmem:[%s7885_s1 + $0x318] sm:$0xff] }
 0x178   :  { %3508 = vmatpush1.bf16.msra.mxu1 %v5344_v52  ;;  %v5594_v52 = vld [vmem:[%s7887_s3 + $0x40] ss:$8 sps:$4 sm:$0xff]  }
 0x179   :  { %3509 = vmatprep.subr.bf16.mxu1 %v5353_v56  ;;  %v5599_v56 = vld [vmem:[%s7887_s3 + $0x54] ss:$8 sps:$4 sm:$0xff]  }
 0x17a   :  { %3680 = vmatpush1.bf16.msra.mxu0 %v5346_v55  ;;  %v4909_v55 = vcombine.high %v71_v51, %v75_v54  ;;  %v5623_v51 = vld [vmem:[%s7887_s3 + $0xd4] ss:$8 sps:$4 sm:$0xff]  }
 0x17b   :  { %3681 = vmatprep.subr.bf16.mxu0 %v5355_v57  ;;  %v79_v57 = vld [vmem:[%s7885_s1 + $0x198] sm:$0xff] }
 0x17c   :  { %3510 = vmatpush1.bf16.msra.mxu1 %v5352_v2  ;;  %v4917_v1 = vcombine.high %v79_v57, %v83_v60  ;;  %v5602_v2 = vld [vmem:[%s7887_s3 + $0x64] ss:$8 sps:$4 sm:$0xff]   ;;  %v143_v54 = vld [vmem:[%s7885_s1 + $0x398] sm:$0xff] }
 0x17d   :  { %3511 = vmatprep.subr.bf16.mxu1 %v5361_v5  ;;  %v91_v5 = vld [vmem:[%s7885_s1 + $0x1f8] sm:$0xff] }
 0x17e   :  { %3682 = vmatpush1.bf16.msra.mxu0 %v5354_v4  ;;  %v87_v4 = vld [vmem:[%s7885_s1 + $0x1d8] sm:$0xff] }
 0x17f   :  { %3683 = vmatprep.subr.bf16.mxu0 %v5363_v6  ;;  %v4916_v6 = vcombine.low %v79_v57, %v83_v60  ;;  %v4925_v8 = vcombine.high %v87_v4, %v91_v5  ;;  %v5626_v57 = vld [vmem:[%s7887_s3 + $0xe4] ss:$8 sps:$4 sm:$0xff]   ;;  %v151_v60 = vld [vmem:[%s7885_s1 + $0x3d8] sm:$0xff] }
 0x180   :  { %3512 = vmatpush1.bf16.msra.mxu1 %v5360_v12  ;;  %v99_v12 = vld [vmem:[%s7885_s1 + $0x238] sm:$0xff] }
 0x181   :  { %3513 = vmatprep.subr.bf16.mxu1 %v5369_v16  ;;  %v5603_v16 = vld [vmem:[%s7887_s3 + $0x70] ss:$8 sps:$4 sm:$0xff]  }
 0x182   :  { %3684 = vmatpush1.bf16.msra.mxu0 %v5362_v14  ;;  %v4924_v14 = vcombine.low %v87_v4, %v91_v5  ;;  %v5629_v4 = vld [vmem:[%s7887_s3 + $0xf4] ss:$8 sps:$4 sm:$0xff]  }
 0x183   :  { %3685 = vmatprep.subr.bf16.mxu0 %v5371_v18  ;;  %v4933_v18 = vcombine.high %v95_v11, %v99_v12  ;;  %v159_v5 = vld [vmem:[%s7885_s1 + $0x418] sm:$0xff] }
 0x184   :  { %3514 = vmatpush1.bf16.msra.mxu1 %v5368_v22  ;;  %v107_v22 = vld [vmem:[%s7885_s1 + $0x278] sm:$0xff] }
 0x185   :  { %3698 = vmatprep.subr.bf16.mxu1 %v4869_v27  ;;  %v5606_v27 = vld [vmem:[%s7887_s3 + $0x80] ss:$8 sps:$4 sm:$0xff]  }
 0x186   :  { %3686 = vmatpush1.bf16.msra.mxu0 %v5370_v25  ;;  %v4932_v25 = vcombine.low %v95_v11, %v99_v12  ;;  %v167_v11 = vld [vmem:[%s7885_s1 + $0x458] sm:$0xff] }
 0x187   :  { %4674 = vmatprep.subr.bf16.mxu0 %v5584_v28  ;;  %3516 = vmatmul.mubr.bf16.vlgmr.msra.gmra.mrb[4].mxu1 %v6289_v48  ;;  %v4941_v28 = vcombine.high %v103_v20, %v107_v22  ;;  %v171_v12 = vld [vmem:[%s7885_s1 + $0x478] sm:$0xff] }
 0x188   :  { %3699 = vmatpush1.bf16.msra.mxu1 %v4868_v62  ;;  %3730 = vmatprep.mubr.bf16.mxu1 %v5907_v58  ;;  %v67_v58 = vld [vmem:[%s7885_s1 + $0x138] sm:$0xff] }
 0x189   :  { %3688 = vmatmul.mubr.bf16.vlgmr.msra.gmra.mrb[4].mxu0 %v6289_v48  ;;  %3700 = vmatprep.subr.bf16.mxu1 %v4877_v32  ;;  %v4901_v23 = vcombine.high %v63_v47, %v67_v58  ;;  %v4900_v26 = vcombine.low %v63_v47, %v67_v58  ;;  %v115_v62 = vld [vmem:[%s7885_s1 + $0x2b8] sm:$0xff]  ;;  %v5620_v47 = vld [vmem:[%s7887_s3 + $0xc4] ss:$8 sps:$4 sm:$0xff]  }
 0x18a   :  { %4675 = vmatpush1.bf16.msra.mxu0 %v5582_v31  ;;  %4706 = vmatprep.mubr.bf16.mxu0 %v6992_v17  ;;  %v4884_v17 = vcombine.low %v47_v35, %v51_v36  ;;  %v4940_v31 = vcombine.low %v103_v20, %v107_v22  ;;  %v5609_v32 = vld [vmem:[%s7887_s3 + $0x90] ss:$8 sps:$4 sm:$0xff]   ;;  %v5614_v35 = vld [vmem:[%s7887_s3 + $0xa4] ss:$8 sps:$4 sm:$0xff]   ;;  %v5630_v22 = vld [vmem:[%s7887_s3 + $0x100] ss:$8 sps:$4 sm:$0xff]  }
 0x18b   :  { %4676 = vmatprep.subr.bf16.mxu0 %v5587_v34  ;;  %v4949_v34 = vcombine.high %v111_v59, %v115_v62  ;;  %v119_v36 = vld [vmem:[%s7885_s1 + $0x2d8] sm:$0xff] }
 0x18c   :  { %3701 = vmatpush1.bf16.msra.mxu1 %v4876_v37  ;;  %v123_v37 = vld [vmem:[%s7885_s1 + $0x2f8] sm:$0xff] }
 0x18d   :  { %3702 = vmatprep.subr.bf16.mxu1 %v4885_v39  ;;  %v5612_v39 = vld [vmem:[%s7887_s3 + $0xa0] ss:$8 sps:$4 sm:$0xff]   ;;  %v135_v58 = vld [vmem:[%s7885_s1 + $0x358] sm:$0xff] }
 0x18e   :  { %4677 = vmatpush1.bf16.msra.mxu0 %v5585_v38  ;;  %v4948_v38 = vcombine.low %v111_v59, %v115_v62  ;;  %v179_v20 = vld [vmem:[%s7885_s1 + $0x4b8] sm:$0xff] }
 0x18f   :  { %4678 = vmatprep.subr.bf16.mxu0 %v5590_v40  ;;  %v4957_v40 = vcombine.high %v119_v36, %v123_v37  ;;  %v5633_v59 = vld [vmem:[%s7887_s3 + $0x110] ss:$8 sps:$4 sm:$0xff]  }
 0x190   :  { %3703 = vmatpush1.bf16.msra.mxu1 %v4884_v17  ;;  %v131_v17 = vld [vmem:[%s7885_s1 + $0x338] sm:$0xff] }
 0x191   :  { %3704 = vmatprep.subr.bf16.mxu1 %v4893_v45  ;;  %v5615_v45 = vld [vmem:[%s7887_s3 + $0xb0] ss:$8 sps:$4 sm:$0xff]  }
 0x192   :  { %4679 = vmatpush1.bf16.msra.mxu0 %v5588_v43  ;;  %v4956_v43 = vcombine.low %v119_v36, %v123_v37 }
 0x193   :  { %4680 = vmatprep.subr.bf16.mxu0 %v5593_v46  ;;  %v4965_v46 = vcombine.high %v127_v42, %v131_v17 }
 0x194   :  { %3705 = vmatpush1.bf16.msra.mxu1 %v4892_v49  ;;  %v139_v49 = vld [vmem:[%s7885_s1 + $0x378] sm:$0xff] }
 0x195   :  { %3706 = vmatprep.subr.bf16.mxu1 %v4901_v23  ;;  %v5618_v23 = vld [vmem:[%s7887_s3 + $0xc0] ss:$8 sps:$4 sm:$0xff]  }
 0x196   :  { %4681 = vmatpush1.bf16.msra.mxu0 %v5591_v50  ;;  %v4964_v50 = vcombine.low %v127_v42, %v131_v17 }
 0x197   :  { %4682 = vmatprep.subr.bf16.mxu0 %v5596_v24  ;;  %v4973_v24 = vcombine.high %v135_v58, %v139_v49 }
 0x198   :  { %3707 = vmatpush1.bf16.msra.mxu1 %v4900_v26  ;;  %v147_v26 = vld [vmem:[%s7885_s1 + $0x3b8] sm:$0xff] }
 0x199   :  { %3708 = vmatprep.subr.bf16.mxu1 %v4909_v55  ;;  %v5621_v55 = vld [vmem:[%s7887_s3 + $0xd0] ss:$8 sps:$4 sm:$0xff]  }
 0x19a   :  { %4683 = vmatpush1.bf16.msra.mxu0 %v5594_v52  ;;  %v4972_v52 = vcombine.low %v135_v58, %v139_v49 }
 0x19b   :  { %4684 = vmatprep.subr.bf16.mxu0 %v5599_v56  ;;  %v4981_v56 = vcombine.high %v143_v54, %v147_v26 }
 0x19c   :  { %3709 = vmatpush1.bf16.msra.mxu1 %v4908_v61  ;;  %v155_v61 = vld [vmem:[%s7885_s1 + $0x3f8] sm:$0xff] }
 0x19d   :  { %3710 = vmatprep.subr.bf16.mxu1 %v4917_v1  ;;  %v5624_v1 = vld [vmem:[%s7887_s3 + $0xe0] ss:$8 sps:$4 sm:$0xff]  }
 0x19e   :  { %4685 = vmatpush1.bf16.msra.mxu0 %v5597_v63  ;;  %v4980_v63 = vcombine.low %v143_v54, %v147_v26 }
 0x19f   :  { %4686 = vmatprep.subr.bf16.mxu0 %v5602_v2  ;;  %v4989_v2 = vcombine.high %v151_v60, %v155_v61 }
 0x1a0   :  { %3711 = vmatpush1.bf16.msra.mxu1 %v4916_v6  ;;  %v163_v6 = vld [vmem:[%s7885_s1 + $0x438] sm:$0xff] }
 0x1a1   :  { %3712 = vmatprep.subr.bf16.mxu1 %v4925_v8  ;;  %v5627_v8 = vld [vmem:[%s7887_s3 + $0xf0] ss:$8 sps:$4 sm:$0xff]  }
 0x1a2   :  { %4687 = vmatpush1.bf16.msra.mxu0 %v5600_v7  ;;  %v4988_v7 = vcombine.low %v151_v60, %v155_v61 }
 0x1a3   :  { %4688 = vmatprep.subr.bf16.mxu0 %v5605_v9  ;;  %v4997_v9 = vcombine.high %v159_v5, %v163_v6 }
 0x1a4   :  { %3713 = vmatpush1.bf16.msra.mxu1 %v4924_v14  ;;  %v5632_v14 = vld [vmem:[%s7887_s3 + $0x104] ss:$8 sps:$4 sm:$0xff]  }
 0x1a5   :  { %3714 = vmatprep.subr.bf16.mxu1 %v4933_v18  ;;  %v5005_v18 = vcombine.high %v167_v11, %v171_v12 }
 0x1a6   :  { %4689 = vmatpush1.bf16.msra.mxu0 %v5603_v16  ;;  %v4996_v16 = vcombine.low %v159_v5, %v163_v6 }
 0x1a7   :  { %4690 = vmatprep.subr.bf16.mxu0 %v5608_v19  ;;  %v175_v19 = vld [vmem:[%s7885_s1 + $0x498] sm:$0xff] }
 0x1a8   :  { %3715 = vmatpush1.bf16.msra.mxu1 %v4932_v25  ;;  %v5635_v25 = vld [vmem:[%s7887_s3 + $0x114] ss:$8 sps:$4 sm:$0xff]  }
 0x1a9   :  { %3716 = vmatprep.subr.bf16.mxu1 %v4941_v28  ;;  %v5013_v28 = vcombine.high %v175_v19, %v179_v20 }
 0x1aa   :  { %4691 = vmatpush1.bf16.msra.mxu0 %v5606_v27  ;;  %v5004_v27 = vcombine.low %v167_v11, %v171_v12  ;;  %v5659_v11 = vld [vmem:[%s7887_s3 + $0x194] ss:$8 sps:$4 sm:$0xff]  }
 0x1ab   :  { %4692 = vmatprep.subr.bf16.mxu0 %v5611_v29  ;;  %v183_v29 = vld [vmem:[%s7885_s1 + $0x4d8] sm:$0xff] }
 0x1ac   :  { %3717 = vmatpush1.bf16.msra.mxu1 %v4940_v31  ;;  %v191_v31 = vld [vmem:[%s7885_s1 + $0x518] sm:$0xff] }
 0x1ad   :  { %3718 = vmatprep.subr.bf16.mxu1 %v4949_v34  ;;  %v5636_v34 = vld [vmem:[%s7887_s3 + $0x120] ss:$8 sps:$4 sm:$0xff]  }
 0x1ae   :  { %4693 = vmatpush1.bf16.msra.mxu0 %v5609_v32  ;;  %v195_v32 = vld [vmem:[%s7885_s1 + $0x538] sm:$0xff] }
 0x1af   :  { %4694 = vmatprep.subr.bf16.mxu0 %v5614_v35  ;;  %v5641_v35 = vld [vmem:[%s7887_s3 + $0x134] ss:$8 sps:$4 sm:$0xff]   ;;  %v5029_v37 = vcombine.high %v191_v31, %v195_v32  ;;  %v5028_v42 = vcombine.low %v191_v31, %v195_v32  ;;  %v5663_v31 = vld [vmem:[%s7887_s3 + $0x1b0] ss:$8 sps:$4 sm:$0xff]   ;;  %v5668_v32 = vld [vmem:[%s7887_s3 + $0x1c4] ss:$8 sps:$4 sm:$0xff]  }
 0x1b0   :  { %3719 = vmatpush1.bf16.msra.mxu1 %v4948_v38  ;;  %v199_v38 = vld [vmem:[%s7885_s1 + $0x558] sm:$0xff] }
 0x1b1   :  { %3720 = vmatprep.subr.bf16.mxu1 %v4957_v40  ;;  %v5639_v40 = vld [vmem:[%s7887_s3 + $0x130] ss:$8 sps:$4 sm:$0xff]  }
 0x1b2   :  { %4695 = vmatpush1.bf16.msra.mxu0 %v5612_v39  ;;  %v203_v39 = vld [vmem:[%s7885_s1 + $0x578] sm:$0xff] }
 0x1b3   :  { %4696 = vmatprep.subr.bf16.mxu0 %v5617_v41  ;;  %v5644_v41 = vld [vmem:[%s7887_s3 + $0x144] ss:$8 sps:$4 sm:$0xff]   ;;  %v5037_v17 = vcombine.high %v199_v38, %v203_v39  ;;  %v5036_v58 = vcombine.low %v199_v38, %v203_v39  ;;  %v5666_v38 = vld [vmem:[%s7887_s3 + $0x1c0] ss:$8 sps:$4 sm:$0xff]   ;;  %v5671_v39 = vld [vmem:[%s7887_s3 + $0x1d4] ss:$8 sps:$4 sm:$0xff]  }
 0x1b4   :  { %3721 = vmatpush1.bf16.msra.mxu1 %v4956_v43  ;;  %v207_v43 = vld [vmem:[%s7885_s1 + $0x598] sm:$0xff] }
 0x1b5   :  { %3722 = vmatprep.subr.bf16.mxu1 %v4965_v46  ;;  %v5642_v46 = vld [vmem:[%s7887_s3 + $0x140] ss:$8 sps:$4 sm:$0xff]  }
 0x1b6   :  { %4697 = vmatpush1.bf16.msra.mxu0 %v5615_v45  ;;  %v211_v45 = vld [vmem:[%s7885_s1 + $0x5b8] sm:$0xff] }
 0x1b7   :  { %4698 = vmatprep.subr.bf16.mxu0 %v5620_v47  ;;  %v5647_v47 = vld [vmem:[%s7887_s3 + $0x154] ss:$8 sps:$4 sm:$0xff]   ;;  %v5045_v49 = vcombine.high %v207_v43, %v211_v45  ;;  %v5044_v54 = vcombine.low %v207_v43, %v211_v45  ;;  %v5669_v43 = vld [vmem:[%s7887_s3 + $0x1d0] ss:$8 sps:$4 sm:$0xff]   ;;  %v5674_v45 = vld [vmem:[%s7887_s3 + $0x1e4] ss:$8 sps:$4 sm:$0xff]  }
 0x1b8   :  { %3723 = vmatpush1.bf16.msra.mxu1 %v4964_v50  ;;  %v215_v50 = vld [vmem:[%s7885_s1 + $0x5d8] sm:$0xff] }
 0x1b9   :  { %3724 = vmatprep.subr.bf16.mxu1 %v4973_v24  ;;  %v5645_v24 = vld [vmem:[%s7887_s3 + $0x150] ss:$8 sps:$4 sm:$0xff]  }
 0x1ba   :  { %4699 = vmatpush1.bf16.msra.mxu0 %v5618_v23  ;;  %v219_v23 = vld [vmem:[%s7885_s1 + $0x5f8] sm:$0xff] }
 0x1bb   :  { %4700 = vmatprep.subr.bf16.mxu0 %v5623_v51  ;;  %v5650_v51 = vld [vmem:[%s7887_s3 + $0x164] ss:$8 sps:$4 sm:$0xff]   ;;  %v5053_v26 = vcombine.high %v215_v50, %v219_v23  ;;  %v5052_v60 = vcombine.low %v215_v50, %v219_v23  ;;  %v5672_v50 = vld [vmem:[%s7887_s3 + $0x1e0] ss:$8 sps:$4 sm:$0xff]   ;;  %v5677_v23 = vld [vmem:[%s7887_s3 + $0x1f4] ss:$8 sps:$4 sm:$0xff]  }
 0x1bc   :  { %3725 = vmatpush1.bf16.msra.mxu1 %v4972_v52  ;;  %v223_v52 = vld [vmem:[%s7885_s1 + $0x618] sm:$0xff] }
 0x1bd   :  { %3726 = vmatprep.subr.bf16.mxu1 %v4981_v56  ;;  %v5648_v56 = vld [vmem:[%s7887_s3 + $0x160] ss:$8 sps:$4 sm:$0xff]  }
 0x1be   :  { %4701 = vmatpush1.bf16.msra.mxu0 %v5621_v55  ;;  %v227_v55 = vld [vmem:[%s7885_s1 + $0x638] sm:$0xff] }
 0x1bf   :  { %4702 = vmatprep.subr.bf16.mxu0 %v5626_v57  ;;  %v5653_v57 = vld [vmem:[%s7887_s3 + $0x174] ss:$8 sps:$4 sm:$0xff]   ;;  %v5061_v61 = vcombine.high %v223_v52, %v227_v55  ;;  %v5060_v5 = vcombine.low %v223_v52, %v227_v55  ;;  %v5675_v52 = vld [vmem:[%s7887_s3 + $0x1f0] ss:$8 sps:$4 sm:$0xff]   ;;  %v5680_v55 = vld [vmem:[%s7887_s3 + $0x204] ss:$8 sps:$4 sm:$0xff]  }
 0x1c0   :  { %3727 = vmatpush1.bf16.msra.mxu1 %v4980_v63  ;;  %v231_v63 = vld [vmem:[%s7885_s1 + $0x658] sm:$0xff] }
 0x1c1   :  { %3728 = vmatprep.subr.bf16.mxu1 %v4989_v2  ;;  %v5651_v2 = vld [vmem:[%s7887_s3 + $0x170] ss:$8 sps:$4 sm:$0xff]  }
 0x1c2   :  { %4703 = vmatpush1.bf16.msra.mxu0 %v5624_v1  ;;  %v235_v1 = vld [vmem:[%s7885_s1 + $0x678] sm:$0xff] }
 0x1c3   :  { %4704 = vmatprep.subr.bf16.mxu0 %v5629_v4  ;;  %v5656_v4 = vld [vmem:[%s7887_s3 + $0x184] ss:$8 sps:$4 sm:$0xff]   ;;  %v5069_v6 = vcombine.high %v231_v63, %v235_v1  ;;  %v5068_v12 = vcombine.low %v231_v63, %v235_v1 }
 0x1c4   :  { %3729 = vmatpush1.bf16.msra.mxu1 %v4988_v7  ;;  %v239_v7 = vld [vmem:[%s7885_s1 + $0x698] sm:$0xff] }
 0x1c5   :  { %3741 = vmatprep.subr.bf16.mxu1 %v4997_v9  ;;  %v5654_v9 = vld [vmem:[%s7887_s3 + $0x180] ss:$8 sps:$4 sm:$0xff]  }
 0x1c6   :  { %4705 = vmatpush1.bf16.msra.mxu0 %v5627_v8  ;;  %v243_v8 = vld [vmem:[%s7885_s1 + $0x6b8] sm:$0xff] }
 0x1c7   :  { %4717 = vmatprep.subr.bf16.mxu0 %v5632_v14  ;;  %3731 = vmatmul.mubr.bf16.vlgmr.msra.gmra.mrb[8].mxu1 %v6050_v21  ;;  %v187_v21 = vld [vmem:[%s7885_s1 + $0x4f8] sm:$0xff]  ;;  %v5077_v14 = vcombine.high %v239_v7, %v243_v8 }
 0x1c8   :  { %3742 = vmatpush1.bf16.msra.mxu1 %v4996_v16  ;;  %3773 = vmatprep.mubr.bf16.mxu1 %v6087_v30  ;;  %v5012_v30 = vcombine.low %v175_v19, %v179_v20  ;;  %v5021_v62 = vcombine.high %v183_v29, %v187_v21  ;;  %v5020_v36 = vcombine.low %v183_v29, %v187_v21  ;;  %v247_v16 = vld [vmem:[%s7885_s1 + $0x6d8] sm:$0xff]  ;;  %v5662_v20 = vld [vmem:[%s7887_s3 + $0x1a4] ss:$8 sps:$4 sm:$0xff]   ;;  %v5660_v29 = vld [vmem:[%s7887_s3 + $0x1a0] ss:$8 sps:$4 sm:$0xff]  }
 0x1c9   :  { %4707 = vmatmul.mubr.bf16.vlgmr.msra.gmra.mrb[8].mxu0 %v6984_v13  ;;  %3743 = vmatprep.subr.bf16.mxu1 %v5005_v18  ;;  %v5638_v13 = vld [vmem:[%s7887_s3 + $0x124] ss:$8 sps:$4 sm:$0xff]   ;;  %v251_v18 = vld [vmem:[%s7885_s1 + $0x6f8] sm:$0xff] }
 0x1ca   :  { %4718 = vmatpush1.bf16.msra.mxu0 %v5630_v22  ;;  %v5657_v19 = vld [vmem:[%s7887_s3 + $0x190] ss:$8 sps:$4 sm:$0xff]   ;;  %v5076_v22 = vcombine.low %v239_v7, %v243_v8  ;;  %v5665_v21 = vld [vmem:[%s7887_s3 + $0x1b4] ss:$8 sps:$4 sm:$0xff]  }
 0x1cb   :  { %4719 = vmatprep.subr.bf16.mxu0 %v5635_v25  ;;  %v5085_v25 = vcombine.high %v247_v16, %v251_v18 }
 0x1cc   :  { %3744 = vmatpush1.bf16.msra.mxu1 %v5004_v27  ;;  %v255_v27 = vld [vmem:[%s7885_s1 + $0x718] sm:$0xff] }
 0x1cd   :  { %3745 = vmatprep.subr.bf16.mxu1 %v5013_v28  ;;  %v259_v28 = vld [vmem:[%s7885_s1 + $0x738] sm:$0xff] }
 0x1ce   :  { %4720 = vmatpush1.bf16.msra.mxu0 %v5633_v59  ;;  %v5084_v59 = vcombine.low %v247_v16, %v251_v18  ;;  %v335_v16 = vld [vmem:[%s7885_s1 + $0x998] sm:$0xff] }
 0x1cf   :  { %4721 = vmatprep.subr.bf16.mxu0 %v5638_v13  ;;  %v5093_v13 = vcombine.high %v255_v27, %v259_v28  ;;  %v339_v18 = vld [vmem:[%s7885_s1 + $0x9b8] sm:$0xff] }
 0x1d0   :  { %3746 = vmatpush1.bf16.msra.mxu1 %v5012_v30  ;;  %v263_v30 = vld [vmem:[%s7885_s1 + $0x758] sm:$0xff] }
 0x1d1   :  { %3747 = vmatprep.subr.bf16.mxu1 %v5021_v62  ;;  %v267_v62 = vld [vmem:[%s7885_s1 + $0x778] sm:$0xff] }
 0x1d2   :  { %4722 = vmatpush1.bf16.msra.mxu0 %v5636_v34  ;;  %v5092_v34 = vcombine.low %v255_v27, %v259_v28  ;;  %v5172_v27 = vcombine.low %v335_v16, %v339_v18 }
 0x1d3   :  { %4723 = vmatprep.subr.bf16.mxu0 %v5641_v35  ;;  %v5101_v35 = vcombine.high %v263_v30, %v267_v62 }
 0x1d4   :  { %3748 = vmatpush1.bf16.msra.mxu1 %v5020_v36  ;;  %v271_v36 = vld [vmem:[%s7885_s1 + $0x798] sm:$0xff] }
 0x1d5   :  { %3749 = vmatprep.subr.bf16.mxu1 %v5029_v37  ;;  %v275_v37 = vld [vmem:[%s7885_s1 + $0x7b8] sm:$0xff] }
 0x1d6   :  { %4724 = vmatpush1.bf16.msra.mxu0 %v5639_v40  ;;  %v5100_v40 = vcombine.low %v263_v30, %v267_v62  ;;  %v359_v30 = vld [vmem:[%s7885_s1 + $0xa58] sm:$0xff] }
 0x1d7   :  { %4725 = vmatprep.subr.bf16.mxu0 %v5644_v41  ;;  %v5109_v41 = vcombine.high %v271_v36, %v275_v37  ;;  %v363_v62 = vld [vmem:[%s7885_s1 + $0xa78] sm:$0xff] }
 0x1d8   :  { %3750 = vmatpush1.bf16.msra.mxu1 %v5028_v42  ;;  %v279_v42 = vld [vmem:[%s7885_s1 + $0x7d8] sm:$0xff] }
 0x1d9   :  { %3751 = vmatprep.subr.bf16.mxu1 %v5037_v17  ;;  %v283_v17 = vld [vmem:[%s7885_s1 + $0x7f8] sm:$0xff] }
 0x1da   :  { %4726 = vmatpush1.bf16.msra.mxu0 %v5642_v46  ;;  %v5108_v46 = vcombine.low %v271_v36, %v275_v37  ;;  %v5196_v36 = vcombine.low %v359_v30, %v363_v62 }
 0x1db   :  { %4727 = vmatprep.subr.bf16.mxu0 %v5647_v47  ;;  %v5117_v47 = vcombine.high %v279_v42, %v283_v17 }
 0x1dc   :  { %3752 = vmatpush1.bf16.msra.mxu1 %v5036_v58  ;;  %v287_v58 = vld [vmem:[%s7885_s1 + $0x818] sm:$0xff] }
 0x1dd   :  { %3753 = vmatprep.subr.bf16.mxu1 %v5045_v49  ;;  %v291_v49 = vld [vmem:[%s7885_s1 + $0x838] sm:$0xff] }
 0x1de   :  { %4728 = vmatpush1.bf16.msra.mxu0 %v5645_v24  ;;  %v5116_v24 = vcombine.low %v279_v42, %v283_v17  ;;  %v383_v42 = vld [vmem:[%s7885_s1 + $0xb18] sm:$0xff] }
 0x1df   :  { %4729 = vmatprep.subr.bf16.mxu0 %v5650_v51  ;;  %v5125_v51 = vcombine.high %v287_v58, %v291_v49  ;;  %v387_v17 = vld [vmem:[%s7885_s1 + $0xb38] sm:$0xff] }
 0x1e0   :  { %3754 = vmatpush1.bf16.msra.mxu1 %v5044_v54  ;;  %v295_v54 = vld [vmem:[%s7885_s1 + $0x858] sm:$0xff] }
 0x1e1   :  { %3755 = vmatprep.subr.bf16.mxu1 %v5053_v26  ;;  %v299_v26 = vld [vmem:[%s7885_s1 + $0x878] sm:$0xff] }
 0x1e2   :  { %4730 = vmatpush1.bf16.msra.mxu0 %v5648_v56  ;;  %v5124_v56 = vcombine.low %v287_v58, %v291_v49  ;;  %v5132_v63 = vcombine.low %v295_v54, %v299_v26  ;;  %v5220_v58 = vcombine.low %v383_v42, %v387_v17 }
 0x1e3   :  { %4731 = vmatprep.subr.bf16.mxu0 %v5653_v57  ;;  %v5133_v57 = vcombine.high %v295_v54, %v299_v26  ;;  %v407_v54 = vld [vmem:[%s7885_s1 + $0xbd8] sm:$0xff] }
 0x1e4   :  { %3756 = vmatpush1.bf16.msra.mxu1 %v5052_v60  ;;  %v303_v60 = vld [vmem:[%s7885_s1 + $0x898] sm:$0xff] }
 0x1e5   :  { %3757 = vmatprep.subr.bf16.mxu1 %v5061_v61  ;;  %v307_v61 = vld [vmem:[%s7885_s1 + $0x8b8] sm:$0xff] }
 0x1e6   :  { %4732 = vmatpush1.bf16.msra.mxu0 %v5651_v2  ;;  %v5141_v1 = vcombine.high %v303_v60, %v307_v61  ;;  %v311_v2 = vld [vmem:[%s7885_s1 + $0x8d8] sm:$0xff] }
 0x1e7   :  { %4733 = vmatprep.subr.bf16.mxu0 %v5656_v4  ;;  %v315_v4 = vld [vmem:[%s7885_s1 + $0x8f8] sm:$0xff] }
 0x1e8   :  { %3758 = vmatpush1.bf16.msra.mxu1 %v5060_v5  ;;  %v5140_v5 = vcombine.low %v303_v60, %v307_v61  ;;  %v5148_v7 = vcombine.low %v311_v2, %v315_v4  ;;  %v411_v26 = vld [vmem:[%s7885_s1 + $0xbf8] sm:$0xff] }
 0x1e9   :  { %3759 = vmatprep.subr.bf16.mxu1 %v5069_v6  ;;  %v5149_v6 = vcombine.high %v311_v2, %v315_v4  ;;  %v5244_v60 = vcombine.low %v407_v54, %v411_v26 }
 0x1ea   :  { %4734 = vmatpush1.bf16.msra.mxu0 %v5654_v9  ;;  %v327_v9 = vld [vmem:[%s7885_s1 + $0x958] sm:$0xff] }
 0x1eb   :  { %4735 = vmatprep.subr.bf16.mxu0 %v5659_v11  ;;  %v331_v11 = vld [vmem:[%s7885_s1 + $0x978] sm:$0xff] }
 0x1ec   :  { %3760 = vmatpush1.bf16.msra.mxu1 %v5068_v12 }
 0x1ed   :  { %3761 = vmatprep.subr.bf16.mxu1 %v5077_v14  ;;  %v5165_v14 = vcombine.high %v327_v9, %v331_v11 }
 0x1ee   :  { %4736 = vmatpush1.bf16.msra.mxu0 %v5657_v19  ;;  %v5164_v19 = vcombine.low %v327_v9, %v331_v11 }
 0x1ef   :  { %4737 = vmatprep.subr.bf16.mxu0 %v5662_v20  ;;  %v5173_v20 = vcombine.high %v335_v16, %v339_v18  ;;  %v455_v16 = vld [vmem:[%s7885_s1 + $0xd58] sm:$0xff] }
 0x1f0   :  { %3762 = vmatpush1.bf16.msra.mxu1 %v5076_v22  ;;  %v343_v22 = vld [vmem:[%s7885_s1 + $0x9d8] sm:$0xff] }
 0x1f1   :  { %3763 = vmatprep.subr.bf16.mxu1 %v5085_v25  ;;  %v347_v25 = vld [vmem:[%s7885_s1 + $0x9f8] sm:$0xff] }
 0x1f2   :  { %4738 = vmatpush1.bf16.msra.mxu0 %v5660_v29  ;;  %v5181_v28 = vcombine.high %v343_v22, %v347_v25  ;;  %v351_v29 = vld [vmem:[%s7885_s1 + $0xa18] sm:$0xff] }
 0x1f3   :  { %4739 = vmatprep.subr.bf16.mxu0 %v5665_v21  ;;  %v355_v21 = vld [vmem:[%s7885_s1 + $0xa38] sm:$0xff] }
 0x1f4   :  { %3764 = vmatpush1.bf16.msra.mxu1 %v5084_v59  ;;  %v5180_v59 = vcombine.low %v343_v22, %v347_v25  ;;  %v459_v18 = vld [vmem:[%s7885_s1 + $0xd78] sm:$0xff]  ;;  %v560_v22 = vsub.s32 4, %v6919_v3  ;;  %v556_v25 = vsub.s32 3, %v6919_v3 }
 0x1f5   :  { %3765 = vmatprep.subr.bf16.mxu1 %v5093_v13  ;;  %v5189_v13 = vcombine.high %v351_v29, %v355_v21 }
 0x1f6   :  { %4740 = vmatpush1.bf16.msra.mxu0 %v5663_v31  ;;  %v5188_v31 = vcombine.low %v351_v29, %v355_v21  ;;  %v463_v29 = vld [vmem:[%s7885_s1 + $0xd98] sm:$0xff] }
 0x1f7   :  { %4741 = vmatprep.subr.bf16.mxu0 %v5668_v32  ;;  %v5197_v32 = vcombine.high %v359_v30, %v363_v62  ;;  %v467_v21 = vld [vmem:[%s7885_s1 + $0xdb8] sm:$0xff] }
 0x1f8   :  { %3766 = vmatpush1.bf16.msra.mxu1 %v5092_v34  ;;  %v367_v34 = vld [vmem:[%s7885_s1 + $0xa98] sm:$0xff] }
 0x1f9   :  { %3767 = vmatprep.subr.bf16.mxu1 %v5101_v35  ;;  %v371_v35 = vld [vmem:[%s7885_s1 + $0xab8] sm:$0xff] }
 0x1fa   :  { %4742 = vmatpush1.bf16.msra.mxu0 %v5666_v38  ;;  %v5205_v37 = vcombine.high %v367_v34, %v371_v35  ;;  %v375_v38 = vld [vmem:[%s7885_s1 + $0xad8] sm:$0xff] }
 0x1fb   :  { %4743 = vmatprep.subr.bf16.mxu0 %v5671_v39  ;;  %v379_v39 = vld [vmem:[%s7885_s1 + $0xaf8] sm:$0xff] }
 0x1fc   :  { %3768 = vmatpush1.bf16.msra.mxu1 %v5100_v40  ;;  %v5204_v40 = vcombine.low %v367_v34, %v371_v35  ;;  %v5301_v34 = vcombine.high %v463_v29, %v467_v21 }
 0x1fd   :  { %3769 = vmatprep.subr.bf16.mxu1 %v5109_v41  ;;  %v5213_v41 = vcombine.high %v375_v38, %v379_v39 }
 0x1fe   :  { %4744 = vmatpush1.bf16.msra.mxu0 %v5669_v43  ;;  %v5212_v43 = vcombine.low %v375_v38, %v379_v39 }
 0x1ff   :  { %4745 = vmatprep.subr.bf16.mxu0 %v5674_v45  ;;  %v5221_v45 = vcombine.high %v383_v42, %v387_v17 }
 0x200   :  { %3770 = vmatpush1.bf16.msra.mxu1 %v5108_v46  ;;  %v391_v46 = vld [vmem:[%s7885_s1 + $0xb58] sm:$0xff] }
 0x201   :  { %3771 = vmatprep.subr.bf16.mxu1 %v5117_v47  ;;  %v395_v47 = vld [vmem:[%s7885_s1 + $0xb78] sm:$0xff] }
 0x202   :  { %4746 = vmatpush1.bf16.msra.mxu0 %v5672_v50  ;;  %v5229_v49 = vcombine.high %v391_v46, %v395_v47  ;;  %v399_v50 = vld [vmem:[%s7885_s1 + $0xb98] sm:$0xff] }
 0x203   :  { %4747 = vmatprep.subr.bf16.mxu0 %v5677_v23  ;;  %v403_v23 = vld [vmem:[%s7885_s1 + $0xbb8] sm:$0xff] }
 0x204   :  { %3772 = vmatpush1.bf16.msra.mxu1 %v5116_v24  ;;  %v5228_v24 = vcombine.low %v391_v46, %v395_v47 }
 0x205   :  { %3784 = vmatprep.subr.bf16.mxu1 %v5125_v51  ;;  %v5237_v51 = vcombine.high %v399_v50, %v403_v23 }
 0x206   :  { %4748 = vmatpush1.bf16.msra.mxu0 %v5675_v52  ;;  %v5236_v52 = vcombine.low %v399_v50, %v403_v23 }
 0x207   :  { %3774 = vmatmul.mubr.bf16.vlgmr.msra.gmra.mrb[8].mxu1 %v6279_v44  ;;  %4760 = vmatprep.subr.bf16.mxu0 %v5680_v55  ;;  %v319_v44 = vld [vmem:[%s7885_s1 + $0x918] sm:$0xff]  ;;  %v5245_v55 = vcombine.high %v407_v54, %v411_v26 }
 0x208   :  { %3785 = vmatpush1.bf16.msra.mxu1 %v5124_v56  ;;  %3816 = vmatprep.mubr.bf16.mxu1 %v5928_v0  ;;  %v323_v0 = vld [vmem:[%s7885_s1 + $0x938] sm:$0xff] }
 0x209   :  { %3786 = vmatprep.subr.bf16.mxu1 %v5133_v57  ;;  %v5157_v8 = vcombine.high %v319_v44, %v323_v0  ;;  %v5156_v12 = vcombine.low %v319_v44, %v323_v0  ;;  %v415_v56 = vld [vmem:[%s7885_s1 + $0xc18] sm:$0xff] }
 0x20a   :  { %v419_v57 = vld [vmem:[%s7885_s1 + $0xc38] sm:$0xff] }
 0x20b   :  { %v5253_v61 = vcombine.high %v415_v56, %v419_v57  ;;  %v5252_v2 = vcombine.low %v415_v56, %v419_v57  ;;  %v479_v26 = vld [vmem:[%s7885_s1 + $0xe18] sm:$0xff] }
 0x20c   :  { %3787 = vmatpush1.bf16.msra.mxu1 %v5132_v63  ;;  %v423_v63 = vld [vmem:[%s7885_s1 + $0xc58] sm:$0xff] }
 0x20d   :  { %3788 = vmatprep.subr.bf16.mxu1 %v5141_v1  ;;  %v427_v1 = vld [vmem:[%s7885_s1 + $0xc78] sm:$0xff] }
 0x20e   :  { %v5261_v4 = vcombine.high %v423_v63, %v427_v1  ;;  %v5260_v44 = vcombine.low %v423_v63, %v427_v1 }
 0x210   :  { %3789 = vmatpush1.bf16.msra.mxu1 %v5140_v5  ;;  %v431_v5 = vld [vmem:[%s7885_s1 + $0xc98] sm:$0xff] }
 0x211   :  { %3790 = vmatprep.subr.bf16.mxu1 %v5149_v6  ;;  %v435_v6 = vld [vmem:[%s7885_s1 + $0xcb8] sm:$0xff] }
 0x212   :  { %v5269_v0 = vcombine.high %v431_v5, %v435_v6  ;;  %v5268_v9 = vcombine.low %v431_v5, %v435_v6 }
 0x214   :  { %3791 = vmatpush1.bf16.msra.mxu1 %v5148_v7  ;;  %v439_v7 = vld [vmem:[%s7885_s1 + $0xcd8] sm:$0xff] }
 0x215   :  { %3792 = vmatprep.subr.bf16.mxu1 %v5157_v8  ;;  %v443_v8 = vld [vmem:[%s7885_s1 + $0xcf8] sm:$0xff] }
 0x216   :  { %v5277_v11 = vcombine.high %v439_v7, %v443_v8 }
 0x218   :  { %3793 = vmatpush1.bf16.msra.mxu1 %v5156_v12  ;;  %v5276_v12 = vcombine.low %v439_v7, %v443_v8  ;;  %v5678_v7 = vld [vmem:[%s7887_s3 + $0x200] ss:$8 sps:$4 sm:$0xff]   ;;  %v487_v8 = vld [vmem:[%s7885_s1 + $0xe58] sm:$0xff] }
 0x219   :  { %3794 = vmatprep.subr.bf16.mxu1 %v5165_v14 }
 0x21c   :  { %3795 = vmatpush1.bf16.msra.mxu1 %v5164_v19  ;;  %v552_v19 = vsub.s32 2, %v6919_v3 }
 0x21d   :  { %3796 = vmatprep.subr.bf16.mxu1 %v5173_v20 }
 0x220   :  { %3797 = vmatpush1.bf16.msra.mxu1 %v5172_v27  ;;  %v564_v27 = vsub.s32 5, %v6919_v3 }
 0x221   :  { %3798 = vmatprep.subr.bf16.mxu1 %v5181_v28  ;;  %v5293_v28 = vcombine.high %v455_v16, %v459_v18 }
 0x224   :  { %3799 = vmatpush1.bf16.msra.mxu1 %v5180_v59  ;;  %v7609_v59 = vld [vmem:[%s7888_s2] sm:$0xff] }
 0x225   :  { %3800 = vmatprep.subr.bf16.mxu1 %v5189_v13  ;;  %v553_v13 = vrot.slane %v7609_v59, %v552_v19  ;;  %v561_v30 = vrot.slane %v7609_v59, %v560_v22  ;;  %v557_v62 = vrot.slane %v7609_v59, %v556_v25  ;;  %v5686_v19 = vld [vmem:[%s7887_s3 + $0x224] ss:$8 sps:$4 sm:$0xff]   ;;  %v5684_v25 = vld [vmem:[%s7887_s3 + $0x220] ss:$8 sps:$4 sm:$0xff]  }
 0x228   :  { %3801 = vmatpush1.bf16.msra.mxu1 %v5188_v31  ;;  %v5292_v31 = vcombine.low %v455_v16, %v459_v18  ;;  %v495_v16 = vld [vmem:[%s7885_s1 + $0xe98] sm:$0xff] }
 0x229   :  { %3802 = vmatprep.subr.bf16.mxu1 %v5197_v32  ;;  %v565_v32 = vrot.slane %v7609_v59, %v564_v27  ;;  %v499_v18 = vld [vmem:[%s7885_s1 + $0xeb8] sm:$0xff] }
 0x22a   :  { %v5333_v22 = vcombine.high %v495_v16, %v499_v18  ;;  %v503_v27 = vld [vmem:[%s7885_s1 + $0xed8] sm:$0xff] }
 0x22c   :  { %3803 = vmatpush1.bf16.msra.mxu1 %v5196_v36  ;;  %v471_v36 = vld [vmem:[%s7885_s1 + $0xdd8] sm:$0xff] }
 0x22d   :  { %3804 = vmatprep.subr.bf16.mxu1 %v5205_v37  ;;  %v475_v37 = vld [vmem:[%s7885_s1 + $0xdf8] sm:$0xff] }
 0x22e   :  { %v5309_v50 = vcombine.high %v471_v36, %v475_v37 }
 0x230   :  { %3805 = vmatpush1.bf16.msra.mxu1 %v5204_v40 }
 0x231   :  { %3806 = vmatprep.subr.bf16.mxu1 %v5213_v41 }
 0x234   :  { %3807 = vmatpush1.bf16.msra.mxu1 %v5212_v43 }
 0x235   :  { %3808 = vmatprep.subr.bf16.mxu1 %v5221_v45  ;;  %v5300_v45 = vcombine.low %v463_v29, %v467_v21  ;;  %v5689_v29 = vld [vmem:[%s7887_s3 + $0x234] ss:$8 sps:$4 sm:$0xff]   ;;  %v5332_v21 = vcombine.low %v495_v16, %v499_v18  ;;  %v5735_v16 = vld [vmem:[%s7887_s3 + $0x330] ss:$8 sps:$4 sm:$0xff]   ;;  %v5740_v18 = vld [vmem:[%s7887_s3 + $0x344] ss:$8 sps:$4 sm:$0xff]  }
 0x238   :  { %3809 = vmatpush1.bf16.msra.mxu1 %v5220_v58 }
 0x239   :  { %3810 = vmatprep.subr.bf16.mxu1 %v5229_v49 }
 0x23c   :  { %3811 = vmatpush1.bf16.msra.mxu1 %v5228_v24 }
 0x23d   :  { %3812 = vmatprep.subr.bf16.mxu1 %v5237_v51 }
 0x240   :  { %3813 = vmatpush1.bf16.msra.mxu1 %v5236_v52  ;;  %v483_v52 = vld [vmem:[%s7885_s1 + $0xe38] sm:$0xff] }
 0x241   :  { %3814 = vmatprep.subr.bf16.mxu1 %v5245_v55  ;;  %v5317_v6 = vcombine.high %v479_v26, %v483_v52 }
 0x244   :  { %3815 = vmatpush1.bf16.msra.mxu1 %v5244_v60 }
 0x245   :  { %3827 = vmatprep.subr.bf16.mxu1 %v5253_v61 }
 0x247   :  { %3817 = vmatmul.mubr.bf16.vlgmr.msra.gmra.mrb[8].mxu1 %v6067_v53  ;;  %v447_v53 = vld [vmem:[%s7885_s1 + $0xd18] sm:$0xff] }
 0x248   :  { %3828 = vmatpush1.bf16.msra.mxu1 %v5252_v2  ;;  %3859 = vmatprep.mubr.bf16.mxu1 %v6098_v33  ;;  %v451_v33 = vld [vmem:[%s7885_s1 + $0xd38] sm:$0xff]  ;;  %v5308_v2 = vcombine.low %v471_v36, %v475_v37  ;;  %v5690_v36 = vld [vmem:[%s7887_s3 + $0x240] ss:$8 sps:$4 sm:$0xff]  }
 0x249   :  { %3829 = vmatprep.subr.bf16.mxu1 %v5261_v4  ;;  %v5285_v14 = vcombine.high %v447_v53, %v451_v33  ;;  %v5284_v20 = vcombine.low %v447_v53, %v451_v33  ;;  %v5683_v53 = vld [vmem:[%s7887_s3 + $0x214] ss:$8 sps:$4 sm:$0xff]   ;;  %v5316_v33 = vcombine.low %v479_v26, %v483_v52  ;;  %v5704_v26 = vld [vmem:[%s7887_s3 + $0x284] ss:$8 sps:$4 sm:$0xff]  }
 0x24a   :  { %v519_v37 = vld [vmem:[%s7885_s1 + $0xf58] sm:$0xff] }
 0x24c   :  { %3830 = vmatpush1.bf16.msra.mxu1 %v5260_v44 }
 0x24d   :  { %3831 = vmatprep.subr.bf16.mxu1 %v5269_v0 }
 0x250   :  { %3832 = vmatpush1.bf16.msra.mxu1 %v5268_v9  ;;  %v491_v9 = vld [vmem:[%s7885_s1 + $0xe78] sm:$0xff] }
 0x251   :  { %3833 = vmatprep.subr.bf16.mxu1 %v5277_v11 }
 0x254   :  { %3834 = vmatpush1.bf16.msra.mxu1 %v5276_v12  ;;  %v5325_v12 = vcombine.high %v487_v8, %v491_v9 }
 0x255   :  { %3835 = vmatprep.subr.bf16.mxu1 %v5285_v14  ;;  %v5681_v14 = vld [vmem:[%s7887_s3 + $0x210] ss:$8 sps:$4 sm:$0xff]  }
 0x258   :  { %3836 = vmatpush1.bf16.msra.mxu1 %v5284_v20  ;;  %v5324_v20 = vcombine.low %v487_v8, %v491_v9  ;;  %v5723_v8 = vld [vmem:[%s7887_s3 + $0x2f0] ss:$8 sps:$4 sm:$0xff]   ;;  %v5728_v9 = vld [vmem:[%s7887_s3 + $0x304] ss:$8 sps:$4 sm:$0xff]  }
 0x259   :  { %3837 = vmatprep.subr.bf16.mxu1 %v5293_v28  ;;  %v507_v28 = vld [vmem:[%s7885_s1 + $0xef8] sm:$0xff] }
 0x25a   :  { %v3517_v35 = vpop.f32.mrb[4].mxu1 }
 0x25b   :  { %v5510_v38 = vadd.f32 %v3517_v35, %v553_v13  ;;  %v3519_v40 = vpop.f32.mrb[5].mxu1 }
 0x25c   :  { %v3689_v39 = vpop.f32.mrb[4].mxu0  ;;  %v5511_v42 = vadd.f32 %v3519_v40, %v557_v62  ;;  %v3521_v43 = vpop.f32.mrb[6].mxu1  ;;  %3838 = vmatpush1.bf16.msra.mxu1 %v5292_v31  ;;  %v515_v31 = vld [vmem:[%s7885_s1 + $0xf38] sm:$0xff] }
 0x25d   :  { %v5514_v41 = vadd.f32 %v3689_v39, %v561_v30  ;;  %v3691_v17 = vpop.f32.mrb[5].mxu0  ;;  %v5512_v47 = vadd.f32 %v3521_v43, %v553_v13  ;;  %v3523_v49 = vpop.f32.mrb[7].mxu1  ;;  %3839 = vmatprep.subr.bf16.mxu1 %v5301_v34  ;;  %v3872_v55 = vmax.f32 %v5510_v38, 0.0  ;;  %v5341_v13 = vcombine.high %v503_v27, %v507_v28  ;;  %v523_v38 = vld [vmem:[%s7885_s1 + $0xf78] sm:$0xff] }
 0x25e   :  { %v5515_v46 = vadd.f32 %v3691_v17, %v565_v32  ;;  %v3693_v58 = vpop.f32.mrb[6].mxu0  ;;  %v5513_v51 = vadd.f32 %v3523_v49, %v557_v62  ;;  %v3873_v61 = vmax.f32 %v5511_v42, 0.0  ;;  %v511_v62 = vld [vmem:[%s7885_s1 + $0xf18] sm:$0xff]  ;;  %v5340_v34 = vcombine.low %v503_v27, %v507_v28  ;;  %v5744_v27 = vld [vmem:[%s7887_s3 + $0x360] ss:$8 sps:$4 sm:$0xff]  }
 0x25f   :  { %v3874_v23 = vmax.f32 %v5514_v41, 0.0  ;;  %v5516_v24 = vadd.f32 %v3693_v58, %v561_v30  ;;  %v3695_v54 = vpop.f32.mrb[7].mxu0  ;;  %v3880_v57 = vmax.f32 %v5512_v47, 0.0  ;;  %v5687_v30 = vld [vmem:[%s7887_s3 + $0x230] ss:$8 sps:$4 sm:$0xff]   ;;  %v5349_v35 = vcombine.high %v511_v62, %v515_v31 }
 0x260   :  { %v3875_v56 = vmax.f32 %v5515_v46, 0.0  ;;  %v5517_v60 = vadd.f32 %v3695_v54, %v565_v32  ;;  %v3881_v1 = vmax.f32 %v5513_v51, 0.0  ;;  %3840 = vmatpush1.bf16.msra.mxu1 %v5300_v45  ;;  %v5692_v32 = vld [vmem:[%s7887_s3 + $0x244] ss:$8 sps:$4 sm:$0xff]   ;;  %v5695_v39 = vld [vmem:[%s7887_s3 + $0x254] ss:$8 sps:$4 sm:$0xff]   ;;  %v5348_v40 = vcombine.low %v511_v62, %v515_v31 }
 0x261   :  { %v3882_v63 = vmax.f32 %v5516_v24, 0.0  ;;  %v3888_v4 = vpack.c.bf16 %v3880_v57, %v3872_v55  ;;  %3841 = vmatprep.subr.bf16.mxu1 %v5309_v50  ;;  %v5357_v41 = vcombine.high %v519_v37, %v523_v38  ;;  %v5693_v42 = vld [vmem:[%s7887_s3 + $0x250] ss:$8 sps:$4 sm:$0xff]   ;;  %v5698_v45 = vld [vmem:[%s7887_s3 + $0x264] ss:$8 sps:$4 sm:$0xff]   ;;  %v5356_v46 = vcombine.low %v519_v37, %v523_v38 }
 0x262   :  { %v3883_v5 = vmax.f32 %v5517_v60, 0.0  ;;  %v3889_v0 = vpack.c.bf16 %v3881_v1, %v3873_v61  ;;  %v527_v17 = vld [vmem:[%s7885_s1 + $0xf98] sm:$0xff]  ;;  %v5696_v58 = vld [vmem:[%s7887_s3 + $0x260] ss:$8 sps:$4 sm:$0xff]   ;;  %v5710_v60 = vld [vmem:[%s7887_s3 + $0x2a4] ss:$8 sps:$4 sm:$0xff]  }
 0x263   :  { %v7627_v44 = vpack.c.bf16 %v3882_v63, %v3874_v23  ;;  %v531_v43 = vld [vmem:[%s7885_s1 + $0xfb8] sm:$0xff]  ;;  %v5702_v55 = vld [vmem:[%s7887_s3 + $0x280] ss:$8 sps:$4 sm:$0xff]   ;;  %v5716_v1 = vld [vmem:[%s7887_s3 + $0x2c4] ss:$8 sps:$4 sm:$0xff]  }
 0x264   :  { %v3891_v11 = vpack.c.bf16 %v3883_v5, %v3875_v56  ;;  %3842 = vmatpush1.bf16.msra.mxu1 %v5308_v2  ;;  %4749 = vmatprep.mubr.bf16.mxu0 %v3889_v0  ;;  %v5365_v47 = vcombine.high %v527_v17, %v531_v43  ;;  %v535_v49 = vld [vmem:[%s7885_s1 + $0xfd8] sm:$0xff]  ;;  %v5364_v24 = vcombine.low %v527_v17, %v531_v43  ;;  %v5708_v61 = vld [vmem:[%s7887_s3 + $0x2a0] ss:$8 sps:$4 sm:$0xff]   ;;  %v5758_v31 = vld [vmem:[%s7887_s3 + $0x3a4] ss:$8 sps:$4 sm:$0xff]   ;;  %v568_v43 = vsub.s32 6, %v6919_v3 }
 0x265   :  { %4750 = vmatmul.mubr.bf16.vlgmr.msra.gmra.mrb[8].mxu0 %v3888_v4  ;;  %3843 = vmatprep.subr.bf16.mxu1 %v5317_v6  ;;  %v539_v50 = vld [vmem:[%s7885_s1 + $0xff8] sm:$0xff]  ;;  %v5714_v2 = vld [vmem:[%s7887_s3 + $0x2c0] ss:$8 sps:$4 sm:$0xff]   ;;  %v5722_v6 = vld [vmem:[%s7887_s3 + $0x2e4] ss:$8 sps:$4 sm:$0xff]  }
 0x266   :  { %4761 = vmatpush1.bf16.msra.mxu0 %v5678_v7  ;;  %4792 = vmatprep.mubr.bf16.mxu0 %v3891_v11  ;;  %v5701_v23 = vld [vmem:[%s7887_s3 + $0x274] ss:$8 sps:$4 sm:$0xff]   ;;  %v5373_v51 = vcombine.high %v535_v49, %v539_v50  ;;  %v5699_v54 = vld [vmem:[%s7887_s3 + $0x270] ss:$8 sps:$4 sm:$0xff]   ;;  %v5372_v52 = vcombine.low %v535_v49, %v539_v50  ;;  %v5720_v0 = vld [vmem:[%s7887_s3 + $0x2e0] ss:$8 sps:$4 sm:$0xff]  }
 0x267   :  { %4762 = vmatprep.subr.bf16.mxu0 %v5683_v53  ;;  %v5707_v56 = vld [vmem:[%s7887_s3 + $0x294] ss:$8 sps:$4 sm:$0xff]   ;;  %v5705_v57 = vld [vmem:[%s7887_s3 + $0x290] ss:$8 sps:$4 sm:$0xff]   ;;  %v5726_v11 = vld [vmem:[%s7887_s3 + $0x300] ss:$8 sps:$4 sm:$0xff]  }
 0x268   :  { %3844 = vmatpush1.bf16.msra.mxu1 %v5316_v33  ;;  %v5713_v63 = vld [vmem:[%s7887_s3 + $0x2b4] ss:$8 sps:$4 sm:$0xff]   ;;  %v5717_v5 = vld [vmem:[%s7887_s3 + $0x2d0] ss:$8 sps:$4 sm:$0xff]   ;;  %v5762_v37 = vld [vmem:[%s7887_s3 + $0x3c0] ss:$8 sps:$4 sm:$0xff]  }
 0x269   :  { %3845 = vmatprep.subr.bf16.mxu1 %v5325_v12  ;;  %v5719_v4 = vld [vmem:[%s7887_s3 + $0x2d4] ss:$8 sps:$4 sm:$0xff]   ;;  %v5729_v33 = vld [vmem:[%s7887_s3 + $0x310] ss:$8 sps:$4 sm:$0xff]   ;;  %v5734_v12 = vld [vmem:[%s7887_s3 + $0x324] ss:$8 sps:$4 sm:$0xff]  }
 0x26a   :  { %4763 = vmatpush1.bf16.msra.mxu0 %v5681_v14  ;;  %v5725_v7 = vld [vmem:[%s7887_s3 + $0x2f4] ss:$8 sps:$4 sm:$0xff]   ;;  %v5732_v14 = vld [vmem:[%s7887_s3 + $0x320] ss:$8 sps:$4 sm:$0xff]   ;;  %v5753_v62 = vld [vmem:[%s7887_s3 + $0x390] ss:$8 sps:$4 sm:$0xff]  }
 0x26b   :  { %4764 = vmatprep.subr.bf16.mxu0 %v5686_v19  ;;  %v5731_v53 = vld [vmem:[%s7887_s3 + $0x314] ss:$8 sps:$4 sm:$0xff]   ;;  %v5738_v19 = vld [vmem:[%s7887_s3 + $0x340] ss:$8 sps:$4 sm:$0xff]   ;;  %v5771_v17 = vld [vmem:[%s7887_s3 + $0x3f0] ss:$8 sps:$4 sm:$0xff]  }
 0x26c   :  { %3846 = vmatpush1.bf16.msra.mxu1 %v5324_v20  ;;  %v5743_v20 = vld [vmem:[%s7887_s3 + $0x354] ss:$8 sps:$4 sm:$0xff]  }
 0x26d   :  { %3847 = vmatprep.subr.bf16.mxu1 %v5333_v22  ;;  %v5741_v22 = vld [vmem:[%s7887_s3 + $0x350] ss:$8 sps:$4 sm:$0xff]   ;;  %v5749_v28 = vld [vmem:[%s7887_s3 + $0x374] ss:$8 sps:$4 sm:$0xff]  }
 0x26e   :  { %4765 = vmatpush1.bf16.msra.mxu0 %v5684_v25  ;;  %v5746_v25 = vld [vmem:[%s7887_s3 + $0x364] ss:$8 sps:$4 sm:$0xff]   ;;  %v5767_v38 = vld [vmem:[%s7887_s3 + $0x3d4] ss:$8 sps:$4 sm:$0xff]  }
 0x26f   :  { %4766 = vmatprep.subr.bf16.mxu0 %v5689_v29  ;;  %v5747_v29 = vld [vmem:[%s7887_s3 + $0x370] ss:$8 sps:$4 sm:$0xff]  }
 0x270   :  { %3848 = vmatpush1.bf16.msra.mxu1 %v5332_v21  ;;  %v5752_v21 = vld [vmem:[%s7887_s3 + $0x384] ss:$8 sps:$4 sm:$0xff]  }
 0x271   :  { %3849 = vmatprep.subr.bf16.mxu1 %v5341_v13  ;;  %v5750_v13 = vld [vmem:[%s7887_s3 + $0x380] ss:$8 sps:$4 sm:$0xff]  }
 0x272   :  { %4767 = vmatpush1.bf16.msra.mxu0 %v5687_v30  ;;  %v5755_v30 = vld [vmem:[%s7887_s3 + $0x394] ss:$8 sps:$4 sm:$0xff]  }
 0x273   :  { %4768 = vmatprep.subr.bf16.mxu0 %v5692_v32  ;;  %v5756_v32 = vld [vmem:[%s7887_s3 + $0x3a0] ss:$8 sps:$4 sm:$0xff]  }
 0x274   :  { %3850 = vmatpush1.bf16.msra.mxu1 %v5340_v34  ;;  %v5761_v34 = vld [vmem:[%s7887_s3 + $0x3b4] ss:$8 sps:$4 sm:$0xff]  }
 0x275   :  { %3851 = vmatprep.subr.bf16.mxu1 %v5349_v35  ;;  %v5759_v35 = vld [vmem:[%s7887_s3 + $0x3b0] ss:$8 sps:$4 sm:$0xff]  }
 0x276   :  { %4769 = vmatpush1.bf16.msra.mxu0 %v5690_v36  ;;  %v5764_v36 = vld [vmem:[%s7887_s3 + $0x3c4] ss:$8 sps:$4 sm:$0xff]  }
 0x277   :  { %4770 = vmatprep.subr.bf16.mxu0 %v5695_v39  ;;  %v5765_v39 = vld [vmem:[%s7887_s3 + $0x3d0] ss:$8 sps:$4 sm:$0xff]  }
 0x278   :  { %3852 = vmatpush1.bf16.msra.mxu1 %v5348_v40  ;;  %v5770_v40 = vld [vmem:[%s7887_s3 + $0x3e4] ss:$8 sps:$4 sm:$0xff]  }
 0x279   :  { %3853 = vmatprep.subr.bf16.mxu1 %v5357_v41  ;;  %v5768_v41 = vld [vmem:[%s7887_s3 + $0x3e0] ss:$8 sps:$4 sm:$0xff]  }
 0x27a   :  { %4771 = vmatpush1.bf16.msra.mxu0 %v5693_v42  ;;  %v5773_v42 = vld [vmem:[%s7887_s3 + $0x3f4] ss:$8 sps:$4 sm:$0xff]  }
 0x27b   :  { %4772 = vmatprep.subr.bf16.mxu0 %v5698_v45  ;;  %v572_v45 = vsub.s32 7, %v6919_v3 }
 0x27c   :  { %3854 = vmatpush1.bf16.msra.mxu1 %v5356_v46  ;;  %v569_v46 = vrot.slane %v7609_v59, %v568_v43 }
 0x27d   :  { %3855 = vmatprep.subr.bf16.mxu1 %v5365_v47  ;;  %v573_v47 = vrot.slane %v7609_v59, %v572_v45  ;;  %v4022_v59 = vld [vmem:[%s7889_s4] sm:$0x3] }
 0x27e   :  { %4773 = vmatpush1.bf16.msra.mxu0 %v5696_v58 }
 0x27f   :  { %4774 = vmatprep.subr.bf16.mxu0 %v5701_v23 }
 0x280   :  { %3856 = vmatpush1.bf16.msra.mxu1 %v5364_v24 }
 0x281   :  { %3857 = vmatprep.subr.bf16.mxu1 %v5373_v51 }
 0x282   :  { %4775 = vmatpush1.bf16.msra.mxu0 %v5699_v54 }
 0x283   :  { %4776 = vmatprep.subr.bf16.mxu0 %v5704_v26 }
 0x284   :  { %3858 = vmatpush1.bf16.msra.mxu1 %v5372_v52 }
 0x286   :  { %4777 = vmatpush1.bf16.msra.mxu0 %v5702_v55 }
 0x287   :  { %3860 = vmatmul.mubr.bf16.vlgmr.msra.gmra.mrb[8].mxu1 %v6289_v48  ;;  %4778 = vmatprep.subr.bf16.mxu0 %v5707_v56  ;;  %v5711_v48 = vld [vmem:[%s7887_s3 + $0x2b0] ss:$8 sps:$4 sm:$0xff]  }
 0x28a   :  { %4779 = vmatpush1.bf16.msra.mxu0 %v5705_v57 }
 0x28b   :  { %4780 = vmatprep.subr.bf16.mxu0 %v5710_v60 }
 0x28e   :  { %4781 = vmatpush1.bf16.msra.mxu0 %v5708_v61 }
 0x28f   :  { %4782 = vmatprep.subr.bf16.mxu0 %v5713_v63  ;;  %v4027_v63 = vrot.slane %v4022_v59, %v544_v10 }
 0x292   :  { %4783 = vmatpush1.bf16.msra.mxu0 %v5711_v48  ;;  %v4031_v48 = vrot.slane %v4022_v59, %v548_v15 }
 0x293   :  { %4784 = vmatprep.subr.bf16.mxu0 %v5716_v1 }
 0x296   :  { %4785 = vmatpush1.bf16.msra.mxu0 %v5714_v2 }
 0x297   :  { %4786 = vmatprep.subr.bf16.mxu0 %v5719_v4 }
 0x29a   :  { %4787 = vmatpush1.bf16.msra.mxu0 %v5717_v5 }
 0x29b   :  { %4788 = vmatprep.subr.bf16.mxu0 %v5722_v6 }
 0x29e   :  { %4789 = vmatpush1.bf16.msra.mxu0 %v5720_v0 }
 0x29f   :  { %4790 = vmatprep.subr.bf16.mxu0 %v5725_v7 }
 0x2a2   :  { %4791 = vmatpush1.bf16.msra.mxu0 %v5723_v8 }
 0x2a3   :  { %4803 = vmatprep.subr.bf16.mxu0 %v5728_v9 }
 0x2a5   :  { %4793 = vmatmul.mubr.bf16.vlgmr.msra.gmra.mrb[8].mxu0 %v7627_v44  ;;  %v5737_v44 = vld [vmem:[%s7887_s3 + $0x334] ss:$8 sps:$4 sm:$0xff]  }
 0x2a6   :  { %4804 = vmatpush1.bf16.msra.mxu0 %v5726_v11 }
 0x2a7   :  { %4805 = vmatprep.subr.bf16.mxu0 %v5731_v53 }
 0x2aa   :  { %4806 = vmatpush1.bf16.msra.mxu0 %v5729_v33 }
 0x2ab   :  { %4807 = vmatprep.subr.bf16.mxu0 %v5734_v12 }
 0x2ae   :  { %4808 = vmatpush1.bf16.msra.mxu0 %v5732_v14 }
 0x2af   :  { %4809 = vmatprep.subr.bf16.mxu0 %v5737_v44 }
 0x2b2   :  { %4810 = vmatpush1.bf16.msra.mxu0 %v5735_v16 }
 0x2b3   :  { %4811 = vmatprep.subr.bf16.mxu0 %v5740_v18 }
 0x2b6   :  { %4812 = vmatpush1.bf16.msra.mxu0 %v5738_v19 }
 0x2b7   :  { %4813 = vmatprep.subr.bf16.mxu0 %v5743_v20 }
 0x2ba   :  { %4814 = vmatpush1.bf16.msra.mxu0 %v5741_v22 }
 0x2bb   :  { %4815 = vmatprep.subr.bf16.mxu0 %v5746_v25 }
 0x2be   :  { %4816 = vmatpush1.bf16.msra.mxu0 %v5744_v27 }
 0x2bf   :  { %4817 = vmatprep.subr.bf16.mxu0 %v5749_v28 }
 0x2c2   :  { %4818 = vmatpush1.bf16.msra.mxu0 %v5747_v29 }
 0x2c3   :  { %4819 = vmatprep.subr.bf16.mxu0 %v5752_v21 }
 0x2c6   :  { %4820 = vmatpush1.bf16.msra.mxu0 %v5750_v13 }
 0x2c7   :  { %4821 = vmatprep.subr.bf16.mxu0 %v5755_v30 }
 0x2ca   :  { %4822 = vmatpush1.bf16.msra.mxu0 %v5753_v62 }
 0x2cb   :  { %4823 = vmatprep.subr.bf16.mxu0 %v5758_v31 }
 0x2ce   :  { %4824 = vmatpush1.bf16.msra.mxu0 %v5756_v32 }
 0x2cf   :  { %4825 = vmatprep.subr.bf16.mxu0 %v5761_v34 }
 0x2d2   :  { %4826 = vmatpush1.bf16.msra.mxu0 %v5759_v35 }
 0x2d3   :  { %4827 = vmatprep.subr.bf16.mxu0 %v5764_v36 }
 0x2d6   :  { %4828 = vmatpush1.bf16.msra.mxu0 %v5762_v37 }
 0x2d7   :  { %4829 = vmatprep.subr.bf16.mxu0 %v5767_v38 }
 0x2da   :  { %4830 = vmatpush1.bf16.msra.mxu0 %v5765_v39 }
 0x2db   :  { %4831 = vmatprep.subr.bf16.mxu0 %v5770_v40 }
 0x2de   :  { %4832 = vmatpush1.bf16.msra.mxu0 %v5768_v41 }
 0x2df   :  { %4833 = vmatprep.subr.bf16.mxu0 %v5773_v42 }
 0x2e2   :  { %4834 = vmatpush1.bf16.msra.mxu0 %v5771_v17 }
 0x35a   :  { %v3861_v58 = vpop.f32.mrb[8].mxu1 }
 0x35b   :  { %v5518_v49 = vadd.f32 %v3861_v58, %v569_v46  ;;  %v3863_v50 = vpop.f32.mrb[9].mxu1 }
 0x35c   :  { %v5519_v23 = vadd.f32 %v3863_v50, %v573_v47  ;;  %v3865_v24 = vpop.f32.mrb[10].mxu1 }
 0x35d   :  { %v5520_v51 = vadd.f32 %v3865_v24, %v569_v46  ;;  %v3867_v54 = vpop.f32.mrb[11].mxu1  ;;  %v3876_v52 = vmax.f32 %v5518_v49, 0.0 }
 0x35e   :  { %v5521_v26 = vadd.f32 %v3867_v54, %v573_v47  ;;  %v3877_v56 = vmax.f32 %v5519_v23, 0.0 }
 0x35f   :  { %v3884_v55 = vmax.f32 %v5520_v51, 0.0 }
 0x360   :  { %v3885_v57 = vmax.f32 %v5521_v26, 0.0 }
 0x361   :  { %v3892_v60 = vpack.c.bf16 %v3884_v55, %v3876_v52 }
 0x362   :  { %v3893_v61 = vpack.c.bf16 %v3885_v57, %v3877_v56 }
 0x364   :  { %4835 = vmatprep.mubr.bf16.mxu0 %v3893_v61 }
 0x365   :  { %4836 = vmatmul.mubr.bf16.vlgmr.msra.gmra.mrb[8].mxu0 %v3892_v60 }
 0x438   :  { %v4837_v1 = vpop.f32.mrb[8].mxu0 }
 0x439   :  { %v5522_v2 = vadd.f32 %v4837_v1, %v4027_v63  ;;  %v4839_v4 = vpop.f32.mrb[9].mxu0 }
 0x43a   :  { %v5523_v5 = vadd.f32 %v4839_v4, %v4031_v48  ;;  %v4841_v6 = vpop.f32.mrb[10].mxu0 }
 0x43b   :  { %4846 = vst [vmem:[%s7890_s5] sm:$0xff] %v5522_v2  ;;  %v5524_v0 = vadd.f32 %v4841_v6, %v4027_v63  ;;  %v4843_v7 = vpop.f32.mrb[11].mxu0 }
 0x43c   :  { %4847 = vst [vmem:[%s7890_s5 + $0x8] sm:$0xff] %v5523_v5  ;;  %v5525_v8 = vadd.f32 %v4843_v7, %v4031_v48 }
 0x43d   :  { %4848 = vst [vmem:[%s7890_s5 + $0x10] sm:$0xff] %v5524_v0 }
 0x43e   :  { %4849 = vst [vmem:[%s7890_s5 + $0x18] sm:$0xff] %v5525_v8 }

</bundles_post_ra>
